<compile_context>
chip_gen: v5e
topology: v5e:2x2
jax: 0.10.0
libtpu: 0.0.40
codegen_flags: <defaults>
</compile_context>

<pallas_src>
import functools

import jax
import jax.numpy as jnp
from jax import lax
from jax.experimental import pallas as pl
from jax.experimental.pallas import tpu as pltpu

D_MODEL = 512
NUM_HEADS = 8
D_K = D_MODEL // NUM_HEADS  # 64


# ------------------------- Fused MHA forward kernel --------------------------
def _mha_fused_kernel(xq_ref, xk_ref, xv_ref,
                      wq_ref, wk_ref, wv_ref, wo_ref,
                      bq_ref, bk_ref, bv_ref, bo_ref,
                      o_ref, *, compute_dtype, approx_recip):
    """One batch element per grid step; computes the full MHA forward."""
    cd = compute_dtype

    def proj(x_ref, w_ref, b_ref):
        # [S, D] @ [D, D] + [1, D] -> f32 [S, D]
        x = x_ref[0].astype(cd)
        return (jnp.dot(x, w_ref[...].astype(cd),
                        preferred_element_type=jnp.float32)
                + b_ref[...].astype(jnp.float32))

    q = proj(xq_ref, wq_ref, bq_ref)
    k = proj(xk_ref, wk_ref, bk_ref)
    v = proj(xv_ref, wv_ref, bv_ref)

    # Scale q before QK^T: touches S*d_k elements instead of S*S scores.
    q = q * (1.0 / (D_K ** 0.5))

    # Per-head attention, heads unrolled (H = 8).  Static lane slices replace
    # the XLA split-heads transpose; the final lane concatenation replaces the
    # merge-heads transpose and yields a lane-dense 512-wide store.
    head_outs = []
    for h in range(NUM_HEADS):
        sl = slice(h * D_K, (h + 1) * D_K)
        q_h = q[:, sl].astype(cd)     # [S, d_k]
        k_h = k[:, sl].astype(cd)     # [S, d_k]
        v_h = v[:, sl].astype(cd)     # [S, d_k]

        # QK^T via dot_general contracting the last dims (no k.T copy).
        scores = lax.dot_general(
            q_h, k_h,
            dimension_numbers=(((1,), (1,)), ((), ())),
            preferred_element_type=jnp.float32)           # [S, S] f32

        # TODO(synk): optional attention mask (masked_fill(mask == 1, -inf))
        # not wired in; the reference forward is exercised with mask=None.
        m = jnp.max(scores, axis=-1, keepdims=True)
        e = jnp.exp(scores - m)
        denom = jnp.sum(e, axis=-1, keepdims=True)
        p = e * pl.reciprocal(denom, approx=approx_recip)

        head_outs.append(
            jnp.dot(p.astype(cd), v_h, preferred_element_type=jnp.float32))

    attn = jnp.concatenate(head_outs, axis=-1)            # [S, D] f32 (merged)

    out = (jnp.dot(attn.astype(cd), wo_ref[...].astype(cd),
                   preferred_element_type=jnp.float32)
           + bo_ref[...].astype(jnp.float32))
    o_ref[0] = out.astype(o_ref.dtype)


# ------------------------------ Python wrapper --------------------------------
def multi_head_attention(query, key, value, params, *,
                         compute_dtype=jnp.float32):
    """MHA forward. Weights stored as [in, out] so y = x @ W + b."""
    B, S, D = query.shape
    assert D == D_MODEL
    assert query.shape == key.shape == value.shape

    wdt = compute_dtype
    wq = params["wq"].astype(wdt)
    wk = params["wk"].astype(wdt)
    wv = params["wv"].astype(wdt)
    wo = params["wo"].astype(wdt)
    bq = params["bq"].reshape(1, D).astype(jnp.float32)
    bk = params["bk"].reshape(1, D).astype(jnp.float32)
    bv = params["bv"].reshape(1, D).astype(jnp.float32)
    bo = params["bo"].reshape(1, D).astype(jnp.float32)

    act_spec = pl.BlockSpec((1, S, D), lambda b: (b, 0, 0))
    w_spec = pl.BlockSpec((D, D), lambda b: (0, 0))   # grid-invariant, stays in VMEM
    b_spec = pl.BlockSpec((1, D), lambda b: (0, 0))

    kernel = functools.partial(
        _mha_fused_kernel,
        compute_dtype=compute_dtype,
        approx_recip=(compute_dtype == jnp.bfloat16))

    out = pl.pallas_call(
        kernel,
        out_shape=jax.ShapeDtypeStruct((B, S, D), jnp.float32),
        grid=(B,),
        in_specs=[act_spec, act_spec, act_spec,
                  w_spec, w_spec, w_spec, w_spec,
                  b_spec, b_spec, b_spec, b_spec],
        out_specs=act_spec,
        compiler_params=pltpu.CompilerParams(
            dimension_semantics=("parallel",),
            vmem_limit_bytes=32 * 1024 * 1024),
    )(query, key, value, wq, wk, wv, wo, bq, bk, bv, bo)
    return out


# ------------------------------ Reference (plain JAX) ------------------------
def reference_mha(query, key, value, params):
    B, S, D = query.shape

    def lin(x, w, b):
        return x @ w + b

    q = lin(query, params["wq"], params["bq"])
    k = lin(key, params["wk"], params["bk"])
    v = lin(value, params["wv"], params["bv"])

    def split(x):
        return x.reshape(B, S, NUM_HEADS, D_K).transpose(0, 2, 1, 3)

    q, k, v = split(q), split(k), split(v)
    scores = jnp.einsum("bhqd,bhkd->bhqk", q, k) / (D_K ** 0.5)
    p = jax.nn.softmax(scores, axis=-1)
    o = jnp.einsum("bhqk,bhkd->bhqd", p, v)
    o = o.transpose(0, 2, 1, 3).reshape(B, S, D)
    return lin(o, params["wo"], params["bo"])


if __name__ == "__main__":
    B, S = 2, 8  # small shapes; batch=2 exercises the grid, seq=8 keeps it tiny

    key0 = jax.random.PRNGKey(0)
    keys = jax.random.split(key0, 12)

    scale = 1.0 / (D_MODEL ** 0.5)
    params = {
        "wq": jax.random.normal(keys[0], (D_MODEL, D_MODEL), jnp.float32) * scale,
        "bq": jax.random.normal(keys[1], (D_MODEL,), jnp.float32) * 0.01,
        "wk": jax.random.normal(keys[2], (D_MODEL, D_MODEL), jnp.float32) * scale,
        "bk": jax.random.normal(keys[3], (D_MODEL,), jnp.float32) * 0.01,
        "wv": jax.random.normal(keys[4], (D_MODEL, D_MODEL), jnp.float32) * scale,
        "bv": jax.random.normal(keys[5], (D_MODEL,), jnp.float32) * 0.01,
        "wo": jax.random.normal(keys[6], (D_MODEL, D_MODEL), jnp.float32) * scale,
        "bo": jax.random.normal(keys[7], (D_MODEL,), jnp.float32) * 0.01,
    }

    query = jax.random.normal(keys[8], (B, S, D_MODEL), jnp.float32)
    key_in = jax.random.normal(keys[9], (B, S, D_MODEL), jnp.float32)
    value = jax.random.normal(keys[10], (B, S, D_MODEL), jnp.float32)

    ref = reference_mha(query, key_in, value, params)

    # f32 path (exact reciprocal): tight validation against the reference.
    out = multi_head_attention(query, key_in, value, params)
    out = jax.block_until_ready(out)
    assert out.shape == (B, S, D_MODEL)
    assert jnp.allclose(out, ref, atol=1e-4, rtol=1e-4), "f32 mismatch vs reference"

    # bf16-matmul path (MXU-native on v5e/v6e/v7x; softmax stays f32,
    # approx EUP reciprocal): looser tolerance per bf16 operand rounding.
    out_bf16 = multi_head_attention(query, key_in, value, params,
                                    compute_dtype=jnp.bfloat16)
    out_bf16 = jax.block_until_ready(out_bf16)
    assert jnp.allclose(out_bf16, ref, atol=1e-1, rtol=1e-1), "bf16 mismatch vs reference"

    print("KERNEL_OK")
</pallas_src>

<mosaic_0001>
module attributes {stable_mosaic.version = 11 : i64} {
  func.func @_mha_fused_kernel(%arg0: i32, %arg1: memref<1x8x512xf32, #tpu.memory_space<vmem>>, %arg2: memref<1x8x512xf32, #tpu.memory_space<vmem>>, %arg3: memref<1x8x512xf32, #tpu.memory_space<vmem>>, %arg4: memref<512x512xf32, #tpu.memory_space<vmem>>, %arg5: memref<512x512xf32, #tpu.memory_space<vmem>>, %arg6: memref<512x512xf32, #tpu.memory_space<vmem>>, %arg7: memref<512x512xf32, #tpu.memory_space<vmem>>, %arg8: memref<1x512xf32, #tpu.memory_space<vmem>>, %arg9: memref<1x512xf32, #tpu.memory_space<vmem>>, %arg10: memref<1x512xf32, #tpu.memory_space<vmem>>, %arg11: memref<1x512xf32, #tpu.memory_space<vmem>>, %arg12: memref<1x8x512xf32, #tpu.memory_space<vmem>>) attributes {dimension_semantics = [#tpu.dimension_semantics<parallel>], iteration_bounds = array<i64: 2>, scalar_prefetch = 0 : i64, scratch_operands = 0 : i64, tpu.core_type = #tpu.core_type<tc>, window_params = [{transform_indices = @transform_0, window_bounds = array<i64: 1, 8, 512>}, {transform_indices = @transform_1, window_bounds = array<i64: 1, 8, 512>}, {transform_indices = @transform_2, window_bounds = array<i64: 1, 8, 512>}, {pipeline_mode = #tpu.pipeline_mode<synchronous>, transform_indices = @transform_3, window_bounds = array<i64: 512, 512>}, {pipeline_mode = #tpu.pipeline_mode<synchronous>, transform_indices = @transform_4, window_bounds = array<i64: 512, 512>}, {pipeline_mode = #tpu.pipeline_mode<synchronous>, transform_indices = @transform_5, window_bounds = array<i64: 512, 512>}, {pipeline_mode = #tpu.pipeline_mode<synchronous>, transform_indices = @transform_6, window_bounds = array<i64: 512, 512>}, {pipeline_mode = #tpu.pipeline_mode<synchronous>, transform_indices = @transform_7, window_bounds = array<i64: 1, 512>}, {pipeline_mode = #tpu.pipeline_mode<synchronous>, transform_indices = @transform_8, window_bounds = array<i64: 1, 512>}, {pipeline_mode = #tpu.pipeline_mode<synchronous>, transform_indices = @transform_9, window_bounds = array<i64: 1, 512>}, {pipeline_mode = #tpu.pipeline_mode<synchronous>, transform_indices = @transform_10, window_bounds = array<i64: 1, 512>}, {transform_indices = @transform_11, window_bounds = array<i64: 1, 8, 512>}]} {
    %c0 = arith.constant 0 : index
    %c0_0 = arith.constant 0 : index
    %c0_1 = arith.constant 0 : index
    %0 = vector.load %arg1[%c0, %c0_0, %c0_1] : memref<1x8x512xf32, #tpu.memory_space<vmem>>, vector<1x8x512xf32>
    %1 = vector.shape_cast %0 : vector<1x8x512xf32> to vector<8x512xf32>
    %c0_2 = arith.constant 0 : index
    %c0_3 = arith.constant 0 : index
    %2 = vector.load %arg4[%c0_2, %c0_3] : memref<512x512xf32, #tpu.memory_space<vmem>>, vector<512x512xf32>
    %cst = arith.constant dense<0.000000e+00> : vector<8x512xf32>
    %3 = tpu.matmul %1, %2, %cst {dimension_numbers = #tpu.dot_dimension_numbers<[1], [0], [0], [1], [0, 0, 1, 1], [], []>} : vector<8x512xf32>, vector<512x512xf32>, vector<8x512xf32> -> vector<8x512xf32>
    %c0_4 = arith.constant 0 : index
    %c0_5 = arith.constant 0 : index
    %4 = vector.load %arg8[%c0_4, %c0_5] : memref<1x512xf32, #tpu.memory_space<vmem>>, vector<1x512xf32>
    %5 = vector.broadcast %4 : vector<1x512xf32> to vector<8x512xf32>
    %6 = arith.addf %3, %5 : vector<8x512xf32>
    %c0_6 = arith.constant 0 : index
    %c0_7 = arith.constant 0 : index
    %c0_8 = arith.constant 0 : index
    %7 = vector.load %arg2[%c0_6, %c0_7, %c0_8] : memref<1x8x512xf32, #tpu.memory_space<vmem>>, vector<1x8x512xf32>
    %8 = vector.shape_cast %7 : vector<1x8x512xf32> to vector<8x512xf32>
    %c0_9 = arith.constant 0 : index
    %c0_10 = arith.constant 0 : index
    %9 = vector.load %arg5[%c0_9, %c0_10] : memref<512x512xf32, #tpu.memory_space<vmem>>, vector<512x512xf32>
    %cst_11 = arith.constant dense<0.000000e+00> : vector<8x512xf32>
    %10 = tpu.matmul %8, %9, %cst_11 {dimension_numbers = #tpu.dot_dimension_numbers<[1], [0], [0], [1], [0, 0, 1, 1], [], []>} : vector<8x512xf32>, vector<512x512xf32>, vector<8x512xf32> -> vector<8x512xf32>
    %c0_12 = arith.constant 0 : index
    %c0_13 = arith.constant 0 : index
    %11 = vector.load %arg9[%c0_12, %c0_13] : memref<1x512xf32, #tpu.memory_space<vmem>>, vector<1x512xf32>
    %12 = vector.broadcast %11 : vector<1x512xf32> to vector<8x512xf32>
    %13 = arith.addf %10, %12 : vector<8x512xf32>
    %c0_14 = arith.constant 0 : index
    %c0_15 = arith.constant 0 : index
    %c0_16 = arith.constant 0 : index
    %14 = vector.load %arg3[%c0_14, %c0_15, %c0_16] : memref<1x8x512xf32, #tpu.memory_space<vmem>>, vector<1x8x512xf32>
    %15 = vector.shape_cast %14 : vector<1x8x512xf32> to vector<8x512xf32>
    %c0_17 = arith.constant 0 : index
    %c0_18 = arith.constant 0 : index
    %16 = vector.load %arg6[%c0_17, %c0_18] : memref<512x512xf32, #tpu.memory_space<vmem>>, vector<512x512xf32>
    %cst_19 = arith.constant dense<0.000000e+00> : vector<8x512xf32>
    %17 = tpu.matmul %15, %16, %cst_19 {dimension_numbers = #tpu.dot_dimension_numbers<[1], [0], [0], [1], [0, 0, 1, 1], [], []>} : vector<8x512xf32>, vector<512x512xf32>, vector<8x512xf32> -> vector<8x512xf32>
    %c0_20 = arith.constant 0 : index
    %c0_21 = arith.constant 0 : index
    %18 = vector.load %arg10[%c0_20, %c0_21] : memref<1x512xf32, #tpu.memory_space<vmem>>, vector<1x512xf32>
    %19 = vector.broadcast %18 : vector<1x512xf32> to vector<8x512xf32>
    %20 = arith.addf %17, %19 : vector<8x512xf32>
    %cst_22 = arith.constant 1.250000e-01 : f32
    %21 = vector.broadcast %cst_22 : f32 to vector<8x512xf32>
    %22 = arith.mulf %6, %21 : vector<8x512xf32>
    %23 = vector.extract_strided_slice %22 {offsets = [0, 0], sizes = [8, 64], strides = [1, 1]} : vector<8x512xf32> to vector<8x64xf32>
    %24 = vector.extract_strided_slice %13 {offsets = [0, 0], sizes = [8, 64], strides = [1, 1]} : vector<8x512xf32> to vector<8x64xf32>
    %25 = vector.extract_strided_slice %20 {offsets = [0, 0], sizes = [8, 64], strides = [1, 1]} : vector<8x512xf32> to vector<8x64xf32>
    %cst_23 = arith.constant dense<0.000000e+00> : vector<8x8xf32>
    %26 = tpu.matmul %23, %24, %cst_23 {dimension_numbers = #tpu.dot_dimension_numbers<[1], [1], [0], [0], [0, 0, 1, 0], [], []>} : vector<8x64xf32>, vector<8x64xf32>, vector<8x8xf32> -> vector<8x8xf32>
    %cst_24 = arith.constant dense<0xFF800000> : vector<8xf32>
    %27 = vector.multi_reduction <maximumf>, %26, %cst_24 [1] : vector<8x8xf32> to vector<8xf32>
    %28 = vector.shape_cast %27 : vector<8xf32> to vector<8x1xf32>
    %29 = vector.broadcast %28 : vector<8x1xf32> to vector<8x8xf32>
    %30 = arith.subf %26, %29 : vector<8x8xf32>
    %31 = math.exp %30 : vector<8x8xf32>
    %cst_25 = arith.constant dense<0.000000e+00> : vector<8xf32>
    %32 = vector.multi_reduction <add>, %31, %cst_25 [1] : vector<8x8xf32> to vector<8xf32>
    %33 = vector.shape_cast %32 : vector<8xf32> to vector<8x1xf32>
    %34 = tpu.reciprocal %33 : vector<8x1xf32> -> vector<8x1xf32>
    %35 = vector.broadcast %34 : vector<8x1xf32> to vector<8x8xf32>
    %36 = arith.mulf %31, %35 : vector<8x8xf32>
    %cst_26 = arith.constant dense<0.000000e+00> : vector<8x64xf32>
    %37 = tpu.matmul %36, %25, %cst_26 {dimension_numbers = #tpu.dot_dimension_numbers<[1], [0], [0], [1], [0, 0, 1, 1], [], []>} : vector<8x8xf32>, vector<8x64xf32>, vector<8x64xf32> -> vector<8x64xf32>
    %38 = vector.extract_strided_slice %22 {offsets = [0, 64], sizes = [8, 64], strides = [1, 1]} : vector<8x512xf32> to vector<8x64xf32>
    %39 = vector.extract_strided_slice %13 {offsets = [0, 64], sizes = [8, 64], strides = [1, 1]} : vector<8x512xf32> to vector<8x64xf32>
    %40 = vector.extract_strided_slice %20 {offsets = [0, 64], sizes = [8, 64], strides = [1, 1]} : vector<8x512xf32> to vector<8x64xf32>
    %cst_27 = arith.constant dense<0.000000e+00> : vector<8x8xf32>
    %41 = tpu.matmul %38, %39, %cst_27 {dimension_numbers = #tpu.dot_dimension_numbers<[1], [1], [0], [0], [0, 0, 1, 0], [], []>} : vector<8x64xf32>, vector<8x64xf32>, vector<8x8xf32> -> vector<8x8xf32>
    %cst_28 = arith.constant dense<0xFF800000> : vector<8xf32>
    %42 = vector.multi_reduction <maximumf>, %41, %cst_28 [1] : vector<8x8xf32> to vector<8xf32>
    %43 = vector.shape_cast %42 : vector<8xf32> to vector<8x1xf32>
    %44 = vector.broadcast %43 : vector<8x1xf32> to vector<8x8xf32>
    %45 = arith.subf %41, %44 : vector<8x8xf32>
    %46 = math.exp %45 : vector<8x8xf32>
    %cst_29 = arith.constant dense<0.000000e+00> : vector<8xf32>
    %47 = vector.multi_reduction <add>, %46, %cst_29 [1] : vector<8x8xf32> to vector<8xf32>
    %48 = vector.shape_cast %47 : vector<8xf32> to vector<8x1xf32>
    %49 = tpu.reciprocal %48 : vector<8x1xf32> -> vector<8x1xf32>
    %50 = vector.broadcast %49 : vector<8x1xf32> to vector<8x8xf32>
    %51 = arith.mulf %46, %50 : vector<8x8xf32>
    %cst_30 = arith.constant dense<0.000000e+00> : vector<8x64xf32>
    %52 = tpu.matmul %51, %40, %cst_30 {dimension_numbers = #tpu.dot_dimension_numbers<[1], [0], [0], [1], [0, 0, 1, 1], [], []>} : vector<8x8xf32>, vector<8x64xf32>, vector<8x64xf32> -> vector<8x64xf32>
    %53 = vector.extract_strided_slice %22 {offsets = [0, 128], sizes = [8, 64], strides = [1, 1]} : vector<8x512xf32> to vector<8x64xf32>
    %54 = vector.extract_strided_slice %13 {offsets = [0, 128], sizes = [8, 64], strides = [1, 1]} : vector<8x512xf32> to vector<8x64xf32>
    %55 = vector.extract_strided_slice %20 {offsets = [0, 128], sizes = [8, 64], strides = [1, 1]} : vector<8x512xf32> to vector<8x64xf32>
    %cst_31 = arith.constant dense<0.000000e+00> : vector<8x8xf32>
    %56 = tpu.matmul %53, %54, %cst_31 {dimension_numbers = #tpu.dot_dimension_numbers<[1], [1], [0], [0], [0, 0, 1, 0], [], []>} : vector<8x64xf32>, vector<8x64xf32>, vector<8x8xf32> -> vector<8x8xf32>
    %cst_32 = arith.constant dense<0xFF800000> : vector<8xf32>
    %57 = vector.multi_reduction <maximumf>, %56, %cst_32 [1] : vector<8x8xf32> to vector<8xf32>
    %58 = vector.shape_cast %57 : vector<8xf32> to vector<8x1xf32>
    %59 = vector.broadcast %58 : vector<8x1xf32> to vector<8x8xf32>
    %60 = arith.subf %56, %59 : vector<8x8xf32>
    %61 = math.exp %60 : vector<8x8xf32>
    %cst_33 = arith.constant dense<0.000000e+00> : vector<8xf32>
    %62 = vector.multi_reduction <add>, %61, %cst_33 [1] : vector<8x8xf32> to vector<8xf32>
    %63 = vector.shape_cast %62 : vector<8xf32> to vector<8x1xf32>
    %64 = tpu.reciprocal %63 : vector<8x1xf32> -> vector<8x1xf32>
    %65 = vector.broadcast %64 : vector<8x1xf32> to vector<8x8xf32>
    %66 = arith.mulf %61, %65 : vector<8x8xf32>
    %cst_34 = arith.constant dense<0.000000e+00> : vector<8x64xf32>
    %67 = tpu.matmul %66, %55, %cst_34 {dimension_numbers = #tpu.dot_dimension_numbers<[1], [0], [0], [1], [0, 0, 1, 1], [], []>} : vector<8x8xf32>, vector<8x64xf32>, vector<8x64xf32> -> vector<8x64xf32>
    %68 = vector.extract_strided_slice %22 {offsets = [0, 192], sizes = [8, 64], strides = [1, 1]} : vector<8x512xf32> to vector<8x64xf32>
    %69 = vector.extract_strided_slice %13 {offsets = [0, 192], sizes = [8, 64], strides = [1, 1]} : vector<8x512xf32> to vector<8x64xf32>
    %70 = vector.extract_strided_slice %20 {offsets = [0, 192], sizes = [8, 64], strides = [1, 1]} : vector<8x512xf32> to vector<8x64xf32>
    %cst_35 = arith.constant dense<0.000000e+00> : vector<8x8xf32>
    %71 = tpu.matmul %68, %69, %cst_35 {dimension_numbers = #tpu.dot_dimension_numbers<[1], [1], [0], [0], [0, 0, 1, 0], [], []>} : vector<8x64xf32>, vector<8x64xf32>, vector<8x8xf32> -> vector<8x8xf32>
    %cst_36 = arith.constant dense<0xFF800000> : vector<8xf32>
    %72 = vector.multi_reduction <maximumf>, %71, %cst_36 [1] : vector<8x8xf32> to vector<8xf32>
    %73 = vector.shape_cast %72 : vector<8xf32> to vector<8x1xf32>
    %74 = vector.broadcast %73 : vector<8x1xf32> to vector<8x8xf32>
    %75 = arith.subf %71, %74 : vector<8x8xf32>
    %76 = math.exp %75 : vector<8x8xf32>
    %cst_37 = arith.constant dense<0.000000e+00> : vector<8xf32>
    %77 = vector.multi_reduction <add>, %76, %cst_37 [1] : vector<8x8xf32> to vector<8xf32>
    %78 = vector.shape_cast %77 : vector<8xf32> to vector<8x1xf32>
    %79 = tpu.reciprocal %78 : vector<8x1xf32> -> vector<8x1xf32>
    %80 = vector.broadcast %79 : vector<8x1xf32> to vector<8x8xf32>
    %81 = arith.mulf %76, %80 : vector<8x8xf32>
    %cst_38 = arith.constant dense<0.000000e+00> : vector<8x64xf32>
    %82 = tpu.matmul %81, %70, %cst_38 {dimension_numbers = #tpu.dot_dimension_numbers<[1], [0], [0], [1], [0, 0, 1, 1], [], []>} : vector<8x8xf32>, vector<8x64xf32>, vector<8x64xf32> -> vector<8x64xf32>
    %83 = vector.extract_strided_slice %22 {offsets = [0, 256], sizes = [8, 64], strides = [1, 1]} : vector<8x512xf32> to vector<8x64xf32>
    %84 = vector.extract_strided_slice %13 {offsets = [0, 256], sizes = [8, 64], strides = [1, 1]} : vector<8x512xf32> to vector<8x64xf32>
    %85 = vector.extract_strided_slice %20 {offsets = [0, 256], sizes = [8, 64], strides = [1, 1]} : vector<8x512xf32> to vector<8x64xf32>
    %cst_39 = arith.constant dense<0.000000e+00> : vector<8x8xf32>
    %86 = tpu.matmul %83, %84, %cst_39 {dimension_numbers = #tpu.dot_dimension_numbers<[1], [1], [0], [0], [0, 0, 1, 0], [], []>} : vector<8x64xf32>, vector<8x64xf32>, vector<8x8xf32> -> vector<8x8xf32>
    %cst_40 = arith.constant dense<0xFF800000> : vector<8xf32>
    %87 = vector.multi_reduction <maximumf>, %86, %cst_40 [1] : vector<8x8xf32> to vector<8xf32>
    %88 = vector.shape_cast %87 : vector<8xf32> to vector<8x1xf32>
    %89 = vector.broadcast %88 : vector<8x1xf32> to vector<8x8xf32>
    %90 = arith.subf %86, %89 : vector<8x8xf32>
    %91 = math.exp %90 : vector<8x8xf32>
    %cst_41 = arith.constant dense<0.000000e+00> : vector<8xf32>
    %92 = vector.multi_reduction <add>, %91, %cst_41 [1] : vector<8x8xf32> to vector<8xf32>
    %93 = vector.shape_cast %92 : vector<8xf32> to vector<8x1xf32>
    %94 = tpu.reciprocal %93 : vector<8x1xf32> -> vector<8x1xf32>
    %95 = vector.broadcast %94 : vector<8x1xf32> to vector<8x8xf32>
    %96 = arith.mulf %91, %95 : vector<8x8xf32>
    %cst_42 = arith.constant dense<0.000000e+00> : vector<8x64xf32>
    %97 = tpu.matmul %96, %85, %cst_42 {dimension_numbers = #tpu.dot_dimension_numbers<[1], [0], [0], [1], [0, 0, 1, 1], [], []>} : vector<8x8xf32>, vector<8x64xf32>, vector<8x64xf32> -> vector<8x64xf32>
    %98 = vector.extract_strided_slice %22 {offsets = [0, 320], sizes = [8, 64], strides = [1, 1]} : vector<8x512xf32> to vector<8x64xf32>
    %99 = vector.extract_strided_slice %13 {offsets = [0, 320], sizes = [8, 64], strides = [1, 1]} : vector<8x512xf32> to vector<8x64xf32>
    %100 = vector.extract_strided_slice %20 {offsets = [0, 320], sizes = [8, 64], strides = [1, 1]} : vector<8x512xf32> to vector<8x64xf32>
    %cst_43 = arith.constant dense<0.000000e+00> : vector<8x8xf32>
    %101 = tpu.matmul %98, %99, %cst_43 {dimension_numbers = #tpu.dot_dimension_numbers<[1], [1], [0], [0], [0, 0, 1, 0], [], []>} : vector<8x64xf32>, vector<8x64xf32>, vector<8x8xf32> -> vector<8x8xf32>
    %cst_44 = arith.constant dense<0xFF800000> : vector<8xf32>
    %102 = vector.multi_reduction <maximumf>, %101, %cst_44 [1] : vector<8x8xf32> to vector<8xf32>
    %103 = vector.shape_cast %102 : vector<8xf32> to vector<8x1xf32>
    %104 = vector.broadcast %103 : vector<8x1xf32> to vector<8x8xf32>
    %105 = arith.subf %101, %104 : vector<8x8xf32>
    %106 = math.exp %105 : vector<8x8xf32>
    %cst_45 = arith.constant dense<0.000000e+00> : vector<8xf32>
    %107 = vector.multi_reduction <add>, %106, %cst_45 [1] : vector<8x8xf32> to vector<8xf32>
    %108 = vector.shape_cast %107 : vector<8xf32> to vector<8x1xf32>
    %109 = tpu.reciprocal %108 : vector<8x1xf32> -> vector<8x1xf32>
    %110 = vector.broadcast %109 : vector<8x1xf32> to vector<8x8xf32>
    %111 = arith.mulf %106, %110 : vector<8x8xf32>
    %cst_46 = arith.constant dense<0.000000e+00> : vector<8x64xf32>
    %112 = tpu.matmul %111, %100, %cst_46 {dimension_numbers = #tpu.dot_dimension_numbers<[1], [0], [0], [1], [0, 0, 1, 1], [], []>} : vector<8x8xf32>, vector<8x64xf32>, vector<8x64xf32> -> vector<8x64xf32>
    %113 = vector.extract_strided_slice %22 {offsets = [0, 384], sizes = [8, 64], strides = [1, 1]} : vector<8x512xf32> to vector<8x64xf32>
    %114 = vector.extract_strided_slice %13 {offsets = [0, 384], sizes = [8, 64], strides = [1, 1]} : vector<8x512xf32> to vector<8x64xf32>
    %115 = vector.extract_strided_slice %20 {offsets = [0, 384], sizes = [8, 64], strides = [1, 1]} : vector<8x512xf32> to vector<8x64xf32>
    %cst_47 = arith.constant dense<0.000000e+00> : vector<8x8xf32>
    %116 = tpu.matmul %113, %114, %cst_47 {dimension_numbers = #tpu.dot_dimension_numbers<[1], [1], [0], [0], [0, 0, 1, 0], [], []>} : vector<8x64xf32>, vector<8x64xf32>, vector<8x8xf32> -> vector<8x8xf32>
    %cst_48 = arith.constant dense<0xFF800000> : vector<8xf32>
    %117 = vector.multi_reduction <maximumf>, %116, %cst_48 [1] : vector<8x8xf32> to vector<8xf32>
    %118 = vector.shape_cast %117 : vector<8xf32> to vector<8x1xf32>
    %119 = vector.broadcast %118 : vector<8x1xf32> to vector<8x8xf32>
    %120 = arith.subf %116, %119 : vector<8x8xf32>
    %121 = math.exp %120 : vector<8x8xf32>
    %cst_49 = arith.constant dense<0.000000e+00> : vector<8xf32>
    %122 = vector.multi_reduction <add>, %121, %cst_49 [1] : vector<8x8xf32> to vector<8xf32>
    %123 = vector.shape_cast %122 : vector<8xf32> to vector<8x1xf32>
    %124 = tpu.reciprocal %123 : vector<8x1xf32> -> vector<8x1xf32>
    %125 = vector.broadcast %124 : vector<8x1xf32> to vector<8x8xf32>
    %126 = arith.mulf %121, %125 : vector<8x8xf32>
    %cst_50 = arith.constant dense<0.000000e+00> : vector<8x64xf32>
    %127 = tpu.matmul %126, %115, %cst_50 {dimension_numbers = #tpu.dot_dimension_numbers<[1], [0], [0], [1], [0, 0, 1, 1], [], []>} : vector<8x8xf32>, vector<8x64xf32>, vector<8x64xf32> -> vector<8x64xf32>
    %128 = vector.extract_strided_slice %22 {offsets = [0, 448], sizes = [8, 64], strides = [1, 1]} : vector<8x512xf32> to vector<8x64xf32>
    %129 = vector.extract_strided_slice %13 {offsets = [0, 448], sizes = [8, 64], strides = [1, 1]} : vector<8x512xf32> to vector<8x64xf32>
    %130 = vector.extract_strided_slice %20 {offsets = [0, 448], sizes = [8, 64], strides = [1, 1]} : vector<8x512xf32> to vector<8x64xf32>
    %cst_51 = arith.constant dense<0.000000e+00> : vector<8x8xf32>
    %131 = tpu.matmul %128, %129, %cst_51 {dimension_numbers = #tpu.dot_dimension_numbers<[1], [1], [0], [0], [0, 0, 1, 0], [], []>} : vector<8x64xf32>, vector<8x64xf32>, vector<8x8xf32> -> vector<8x8xf32>
    %cst_52 = arith.constant dense<0xFF800000> : vector<8xf32>
    %132 = vector.multi_reduction <maximumf>, %131, %cst_52 [1] : vector<8x8xf32> to vector<8xf32>
    %133 = vector.shape_cast %132 : vector<8xf32> to vector<8x1xf32>
    %134 = vector.broadcast %133 : vector<8x1xf32> to vector<8x8xf32>
    %135 = arith.subf %131, %134 : vector<8x8xf32>
    %136 = math.exp %135 : vector<8x8xf32>
    %cst_53 = arith.constant dense<0.000000e+00> : vector<8xf32>
    %137 = vector.multi_reduction <add>, %136, %cst_53 [1] : vector<8x8xf32> to vector<8xf32>
    %138 = vector.shape_cast %137 : vector<8xf32> to vector<8x1xf32>
    %139 = tpu.reciprocal %138 : vector<8x1xf32> -> vector<8x1xf32>
    %140 = vector.broadcast %139 : vector<8x1xf32> to vector<8x8xf32>
    %141 = arith.mulf %136, %140 : vector<8x8xf32>
    %cst_54 = arith.constant dense<0.000000e+00> : vector<8x64xf32>
    %142 = tpu.matmul %141, %130, %cst_54 {dimension_numbers = #tpu.dot_dimension_numbers<[1], [0], [0], [1], [0, 0, 1, 1], [], []>} : vector<8x8xf32>, vector<8x64xf32>, vector<8x64xf32> -> vector<8x64xf32>
    %143 = tpu.concatenate %37, %52, %67, %82, %97, %112, %127, %142 in 1 : vector<8x64xf32>, vector<8x64xf32>, vector<8x64xf32>, vector<8x64xf32>, vector<8x64xf32>, vector<8x64xf32>, vector<8x64xf32>, vector<8x64xf32> -> vector<8x512xf32>
    %c0_55 = arith.constant 0 : index
    %c0_56 = arith.constant 0 : index
    %144 = vector.load %arg7[%c0_55, %c0_56] : memref<512x512xf32, #tpu.memory_space<vmem>>, vector<512x512xf32>
    %cst_57 = arith.constant dense<0.000000e+00> : vector<8x512xf32>
    %145 = tpu.matmul %143, %144, %cst_57 {dimension_numbers = #tpu.dot_dimension_numbers<[1], [0], [0], [1], [0, 0, 1, 1], [], []>} : vector<8x512xf32>, vector<512x512xf32>, vector<8x512xf32> -> vector<8x512xf32>
    %c0_58 = arith.constant 0 : index
    %c0_59 = arith.constant 0 : index
    %146 = vector.load %arg11[%c0_58, %c0_59] : memref<1x512xf32, #tpu.memory_space<vmem>>, vector<1x512xf32>
    %147 = vector.broadcast %146 : vector<1x512xf32> to vector<8x512xf32>
    %148 = arith.addf %145, %147 : vector<8x512xf32>
    %c0_60 = arith.constant 0 : index
    %c0_61 = arith.constant 0 : index
    %c0_62 = arith.constant 0 : index
    %149 = vector.load %arg12[%c0_60, %c0_61, %c0_62] : memref<1x8x512xf32, #tpu.memory_space<vmem>>, vector<1x8x512xf32>
    %150 = vector.shape_cast %149 : vector<1x8x512xf32> to vector<8x512xf32>
    %151 = vector.shape_cast %148 : vector<8x512xf32> to vector<1x8x512xf32>
    tpu.vector_store %arg12[%c0_60, %c0_61, %c0_62], %151 {strides = array<i32>} : memref<1x8x512xf32, #tpu.memory_space<vmem>>, vector<1x8x512xf32>,
    return
  }
  func.func @transform_0(%arg0: i32) -> (i32, i32, i32) {
    %c0_i32 = arith.constant 0 : i32
    %c0_i32_0 = arith.constant 0 : i32
    %c0_i32_1 = arith.constant 0 : i32
    return %arg0, %c0_i32, %c0_i32_0 : i32, i32, i32
  }
  func.func @transform_1(%arg0: i32) -> (i32, i32, i32) {
    %c0_i32 = arith.constant 0 : i32
    %c0_i32_0 = arith.constant 0 : i32
    %c0_i32_1 = arith.constant 0 : i32
    return %arg0, %c0_i32, %c0_i32_0 : i32, i32, i32
  }
  func.func @transform_2(%arg0: i32) -> (i32, i32, i32) {
    %c0_i32 = arith.constant 0 : i32
    %c0_i32_0 = arith.constant 0 : i32
    %c0_i32_1 = arith.constant 0 : i32
    return %arg0, %c0_i32, %c0_i32_0 : i32, i32, i32
  }
  func.func @transform_3(%arg0: i32) -> (i32, i32) {
    %c0_i32 = arith.constant 0 : i32
    %c0_i32_0 = arith.constant 0 : i32
    %c0_i32_1 = arith.constant 0 : i32
    return %c0_i32, %c0_i32_0 : i32, i32
  }
  func.func @transform_4(%arg0: i32) -> (i32, i32) {
    %c0_i32 = arith.constant 0 : i32
    %c0_i32_0 = arith.constant 0 : i32
    %c0_i32_1 = arith.constant 0 : i32
    return %c0_i32, %c0_i32_0 : i32, i32
  }
  func.func @transform_5(%arg0: i32) -> (i32, i32) {
    %c0_i32 = arith.constant 0 : i32
    %c0_i32_0 = arith.constant 0 : i32
    %c0_i32_1 = arith.constant 0 : i32
    return %c0_i32, %c0_i32_0 : i32, i32
  }
  func.func @transform_6(%arg0: i32) -> (i32, i32) {
    %c0_i32 = arith.constant 0 : i32
    %c0_i32_0 = arith.constant 0 : i32
    %c0_i32_1 = arith.constant 0 : i32
    return %c0_i32, %c0_i32_0 : i32, i32
  }
  func.func @transform_7(%arg0: i32) -> (i32, i32) {
    %c0_i32 = arith.constant 0 : i32
    %c0_i32_0 = arith.constant 0 : i32
    %c0_i32_1 = arith.constant 0 : i32
    return %c0_i32, %c0_i32_0 : i32, i32
  }
  func.func @transform_8(%arg0: i32) -> (i32, i32) {
    %c0_i32 = arith.constant 0 : i32
    %c0_i32_0 = arith.constant 0 : i32
    %c0_i32_1 = arith.constant 0 : i32
    return %c0_i32, %c0_i32_0 : i32, i32
  }
  func.func @transform_9(%arg0: i32) -> (i32, i32) {
    %c0_i32 = arith.constant 0 : i32
    %c0_i32_0 = arith.constant 0 : i32
    %c0_i32_1 = arith.constant 0 : i32
    return %c0_i32, %c0_i32_0 : i32, i32
  }
  func.func @transform_10(%arg0: i32) -> (i32, i32) {
    %c0_i32 = arith.constant 0 : i32
    %c0_i32_0 = arith.constant 0 : i32
    %c0_i32_1 = arith.constant 0 : i32
    return %c0_i32, %c0_i32_0 : i32, i32
  }
  func.func @transform_11(%arg0: i32) -> (i32, i32, i32) {
    %c0_i32 = arith.constant 0 : i32
    %c0_i32_0 = arith.constant 0 : i32
    %c0_i32_1 = arith.constant 0 : i32
    return %arg0, %c0_i32, %c0_i32_0 : i32, i32, i32
  }
}

</mosaic_0001>

<bundles_post_ra>
// kernel: tpu_custom_call.1
= control target key start
LH: loop header
LB: loop body
LE: loop exit
PB: predicated region body
PF: predicated region fallthrough
CT: control target
= control target key end

     0   :  { %s4977_s0 = inlined_call_operand.hbm [shape: f32[2,8,512], index: 0, kind: input, shape index: {}]   ;;  %s4978_s1 = inlined_call_operand.hbm [shape: f32[2,8,512], index: 1, kind: input, shape index: {}]   ;;  %s4979_s2 = inlined_call_operand.hbm [shape: f32[2,8,512], index: 2, kind: input, shape index: {}]   ;;  %s4980_s3 = inlined_call_operand.hbm [shape: f32[512,512], index: 3, kind: input, shape index: {}]   ;;  %s4981_s4 = inlined_call_operand.hbm [shape: f32[512,512], index: 4, kind: input, shape index: {}]   ;;  %s4982_s5 = inlined_call_operand.hbm [shape: f32[512,512], index: 5, kind: input, shape index: {}]   ;;  %s4983_s6 = inlined_call_operand.hbm [shape: f32[512,512], index: 6, kind: input, shape index: {}]   ;;  %s4984_s7 = inlined_call_operand.vmem [shape: f32[1,512], index: 7, kind: input, shape index: {}]   ;;  %s4985_s8 = inlined_call_operand.hbm [shape: f32[1,512], index: 8, kind: input, shape index: {}]   ;;  %s4986_s9 = inlined_call_operand.vmem [shape: f32[1,512], index: 9, kind: input, shape index: {}]   ;;  %s4987_s10 = inlined_call_operand.hbm [shape: f32[1,512], index: 10, kind: input, shape index: {}]   ;;  %s4988_s11 = inlined_call_operand.hbm [shape: f32[2,8,512], index: 11, kind: output, shape index: {}]  }
   0x1   :  { %5003 = sst [smem:[#allocation30_spill]] %s4978_s1 }
   0x2   :  { %5004 = sst [smem:[#allocation31_spill]] %s4980_s3 }
   0x3   :  { %5005 = sst [smem:[#allocation32_spill]] %s4981_s4 }
   0x4   :  { %5006 = sst [smem:[#allocation33_spill]] %s4982_s5 }
   0x5   :  { %5007 = sst [smem:[#allocation34_spill]] %s4983_s6 }
   0x6   :  { %5008 = sst [smem:[#allocation35_spill]] %s4985_s8 }
   0x7   :  { %5009 = sst [smem:[#allocation36_spill]] %s4988_s11 }
   0x8   :  { %16 = vsyncpa [#allocation3], 0 }
   0x9   :  { %18 = vsyncpa [#allocation3 + $0x1], 0 }
   0xa   :  { %19 = vsyncpa [#allocation6], 0 }
   0xb   :  { %21 = vsyncpa [#allocation6 + $0x1], 0 }
   0xc   :  { %22 = vsyncpa [#allocation9], 0 }
   0xd   :  { %23 = vsyncpa [#allocation12], 0 }
   0xe   :  { %24 = vsyncpa [#allocation15], 0 }
   0xf   :  { %25 = vsyncpa [#allocation4], 0 }
  0x10   :  { %27 = vsyncpa [#allocation4 + $0x1], 0  ;;  %s4415_s17 = smov 0   ;;  %s4417_s18 = smov 0  }
  0x11   :  { %s4419_s19 = smov 0   ;;  %s4421_s20 = smov 0  }
  0x12 LB: > { %5010 = sst [smem:[#allocation24_spill]] %s4332_s17  ;;  %s4439_s24 = sadd.s32 4294967295, %s4344_s20   ;;  %s4344_s20 = sphi %s4421_s20, %s5043_s20   ;;  %s4340_s19 = sphi %s4419_s19, %s5047_s19   ;;  %s4336_s18 = sphi %s4417_s18, %s5046_s18   ;;  %s4332_s17 = sphi %s4415_s17, %s5045_s17  }
  0x13   : > { %5011 = sst [smem:[#allocation25_spill]] %s4344_s20  ;;  %p3759_p0 = scmp.ge.s32.totalorder %s4344_s20, 1 }
  0x14   : > { %s5012_s3 = sld [smem:[#allocation31_spill]]  ;;  %p5002_p1 = scmp.eq.s32.totalorder %s4439_s24, 0 }
  0x15   : > { %p310_p2 = scmp.lt.s32.totalorder %s4344_s20, 3  ;;  %s4346_s26 = smov [#allocation8]  }
  0x16   : > { %s323_s27 = sshll.u32 %s4346_s26, 4  ;;  %s5014_s5 = sld [smem:[#allocation33_spill]]  ;;  %s324_s27 = int_to_ptr.vmem [resolvable:$true] %s323_s27 }
  0x17   : > { %p4444_p3 = pnand %p3759_p0, %p310_p2  ;;  %s5016_s8 = sld [smem:[#allocation35_spill]] }
  0x18   : > { %s4347_s16 = smov [#allocation11]   ;;  %s4989_s22 = smov 512  }
  0x19   : > { %p3852_p4 = pneg %p4444_p3  ;;  %s351_s21 = sshll.u32 %s4347_s16, 4  ;;  %s352_s21 = int_to_ptr.vmem [resolvable:$true] %s351_s21 }
  0x1a   : > { %s321_s23 = sshll.u32 %s5012_s3, 4  ;;  %s4991_s26 = smov 32   ;;  %s322_s23 = int_to_ptr.hbm [resolvable:$true] %s321_s23 }
  0x1b   : > { %p4456_p6 = pnand %p3852_p4, %p5002_p1  ;;  %s4350_s28 = smov [#allocation14]  }
  0x1c   : > { %s349_s30 = sshll.u32 %s5014_s5, 4  ;;  %s383_s29 = sshll.u32 %s4350_s28, 4  ;;  %s350_s30 = int_to_ptr.hbm [resolvable:$true] %s349_s30  ;;  %s384_s29 = int_to_ptr.vmem [resolvable:$true] %s383_s29 }
  0x1d   : > { %s381_s15 = sshll.u32 %s5016_s8, 4  ;;  %s3758_s13 = sadd.s32 4294967294, %s4344_s20   ;;  %s382_s15 = int_to_ptr.hbm [resolvable:$true] %s381_s15 }
  0x1e   : > { %3855 = dma.hbm_to_vmem [thread:$0]  (!%p4456_p6), %s322_s23, 32768, %s324_s27, [#allocation9], %s4989_s22, %s4989_s22, %s4991_s26  }
  0x1f   : > { %3861 = dma.hbm_to_vmem [thread:$0]  (!%p4456_p6), %s350_s30, 32768, %s352_s21, [#allocation12], %s4989_s22, %s4989_s22, %s4991_s26  }
  0x20   : > { %3867 = dma.hbm_to_vmem [thread:$0]  (!%p4456_p6), %s382_s15, 64, %s384_s29, [#allocation15]  }
  0x21   : > { %s4477_s14 = sadd.s32 1, %s4344_s20   ;;  %s40_s23 = sadd.s32 1, %s4340_s19 }
  0x22   : > { %5017 = sst [smem:[#allocation26_spill]] %s4477_s14  ;;  %s37_s27 = ssub.s32 %s4344_s20, %s4477_s14 }
  0x23   : > { %p47_p7 = scmp.ne.s32.totalorder %s4340_s19, %s4336_s18  ;;  %p38_p8 = scmp.eq.s32.totalorder %s37_s27, 0 }
  0x24   : > { %p48_p9 = scmp.eq.s32.totalorder %s4344_s20, 0  ;;  %p53_p10 = scmp.ne.s32.totalorder %s4336_s18, %s4332_s17 }
  0x25   : > { %p297_p11 = scmp.eq.s32.totalorder %s4439_s24, 1  ;;  %p303_p2 = scmp.eq.s32.totalorder %s3758_s13, 1 }
  0x26   : > { %s4489_s30 = scalar_select %p38_p8, %s4340_s19, %s40_s23  }
  0x27   : > { %p49_p12 = por %p48_p9, %p47_p7  ;;  %p4493_p13 = por %p5002_p1, %p53_p10 }
  0x28   : > { %5018 = sst [smem:[#allocation27_spill]] %s4489_s30  ;;  %p4497_p0 = por %p297_p11, %p47_p7 }
  0x29   : > { %p3891_p4 = scmp.lt.s32.totalorder %s4344_s20, 2  ;;  %s4993_s21 = sand.u32 1, %s4340_s19  }
  0x2a   : > { %s5020_s16 = scalar_select %p4497_p0, 1, 0 }
  0x2b   : > { %p4503_p5 = por %p303_p2, %p53_p10  ;;  %s4509_s29 = sshll.u32 %s4993_s21, 5 }
  0x2c   : > { %5021 = sst [smem:[#allocation28_spill]] %s5020_s16  ;;  %s4512_s23 = sshll.u32 %s4344_s20, 5 }
  0x2d   : > { %s5022_s28 = scalar_select %p4503_p5, 1, 0 }
  0x2e   : > { %p4514_p8 = pnand %p3891_p4, %p49_p12  ;;  %s429_s13 = sand.u32 1, %s4344_s20  }
  0x2f   : > { %5023 = sst [smem:[#allocation29_spill]] %s5022_s28  ;;  %s433_s5 = scalar_lea.vmem [#allocation5], %s4509_s29 }
  0x30   : > { %s5025_s1 = sld [smem:[#allocation30_spill]]  ;;  %s442_s8 = sshll.u32 %s433_s5, 4  ;;  %s443_s8 = int_to_ptr.vmem [resolvable:$true] %s442_s8 }
  0x31   : > { %s5026_s4 = sld [smem:[#allocation32_spill]]  ;;  %s4527_s17 = scalar_lea.sflag [#allocation6], %s429_s13 }
  0x32   : > { %p4086_p9 = pneg %p4514_p8 }
  0x36   : > { %s438_s3 = scalar_lea.hbm %s5025_s1, %s4512_s23  ;;  %s4089_s22 = scalar_lea.hbm %s5025_s1, 64 }
  0x37   : > { %s440_s30 = sshll.u32 %s438_s3, 4  ;;  %s335_s28 = sshll.u32 %s5026_s4, 4  ;;  %s441_s30 = int_to_ptr.hbm [resolvable:$true] %s440_s30  ;;  %s336_s28 = int_to_ptr.hbm [resolvable:$true] %s335_s28 }
  0x38   : > { %s4082_s16 = sshra.s32 %s441_s30, 4  ;;  %s4083_s16 = int_to_ptr.hbm [resolvable:$true] %s4082_s16 }
  0x39   : > { %s4084_s11 = scalar_lea.hbm %s4083_s16, 32  ;;  %p4090_p12 = scmp.lt.s32.totalorder %s4083_s16, %s5025_s1 }
  0x3a   : > { %p4085_p7 = scmp.ne.s32.totalorder %s4083_s16, %s4084_s11  ;;  %p4091_p2 = scmp.lt.s32.totalorder %s4089_s22, %s4084_s11 }
  0x3c   : > { %p4087_p10 = pnand %p4086_p9, %p4085_p7  ;;  %p4092_p4 = por %p4091_p2, %p4090_p12 }
  0x3e   : > { %p4088_p11 = pneg %p4087_p10 }
  0x40   : > { %p4093_p1 = pnand %p4092_p4, %p4088_p11 }
  0x42   : > { %4096 = shalt.err (!%p4093_p1)
}
  0x43   : > { %3877 = dma.hbm_to_vmem [thread:$0]  (!%p4514_p8), %s441_s30, 512, %s443_s8, %s4527_s17  }
  0x44   : > { %s4351_s14 = smov [#allocation10]   ;;  %s5027_s6 = sld [smem:[#allocation34_spill]] }
  0x45   : > { %s337_s21 = sshll.u32 %s4351_s14, 4  ;;  %s5028_s11 = smov 32   ;;  %s338_s21 = int_to_ptr.vmem [resolvable:$true] %s337_s21 }
  0x46   : > { %s5029_s16 = smov 512   ;;  %s396_s8 = sshll.u32 %s4987_s10, 4  ;;  %s397_s8 = int_to_ptr.hbm [resolvable:$true] %s396_s8 }
  0x47   : > { %3858 = dma.hbm_to_vmem [thread:$0]  (!%p4456_p6), %s336_s28, 32768, %s338_s21, [#allocation9], %s5029_s16, %s5029_s16, %s5028_s11  }
  0x48   : > { %s4352_s30 = smov [#allocation13]   ;;  %s4353_s14 = smov [#allocation16]  }
  0x49   : > { %s365_s26 = sshll.u32 %s4352_s30, 4  ;;  %s398_s13 = sshll.u32 %s4353_s14, 4  ;;  %s366_s26 = int_to_ptr.vmem [resolvable:$true] %s365_s26  ;;  %s399_s13 = int_to_ptr.vmem [resolvable:$true] %s398_s13 }
  0x4a   : > { %s363_s20 = sshll.u32 %s5027_s6, 4  ;;  %s418_s5 = scalar_lea.hbm %s4977_s0, %s4512_s23  ;;  %s364_s20 = int_to_ptr.hbm [resolvable:$true] %s363_s20 }
  0x4b   : > { %3864 = dma.hbm_to_vmem [thread:$0]  (!%p4456_p6), %s364_s20, 32768, %s366_s26, [#allocation12], %s5029_s16, %s5029_s16, %s5028_s11  }
  0x4c   : > { %3870 = dma.hbm_to_vmem [thread:$0]  (!%p4456_p6), %s397_s8, 64, %s399_s13, [#allocation15]  }
  0x4d   : > { %s413_s3 = scalar_lea.vmem [#allocation2], %s4509_s29  ;;  %s420_s30 = sshll.u32 %s418_s5, 4  ;;  %s421_s30 = int_to_ptr.hbm [resolvable:$true] %s420_s30 }
  0x4e   : > { %s422_s22 = sshll.u32 %s413_s3, 4  ;;  %s5030_s1 = sand.u32 1, %s4340_s19   ;;  %s423_s22 = int_to_ptr.vmem [resolvable:$true] %s422_s22 }
  0x4f   : > { %s410_s4 = scalar_lea.sflag [#allocation3], %s5030_s1  ;;  %s4202_s6 = sshra.s32 %s421_s30, 4  ;;  %s4203_s6 = int_to_ptr.hbm [resolvable:$true] %s4202_s6 }
  0x50   : > { %s4204_s20 = scalar_lea.hbm %s4203_s6, 32  ;;  %s4209_s16 = scalar_lea.hbm %s4977_s0, 64 }
  0x51   : > { %p4205_p1 = scmp.ne.s32.totalorder %s4203_s6, %s4204_s20  ;;  %p4210_p6 = scmp.lt.s32.totalorder %s4203_s6, %s4977_s0 }
  0x52   : > { %p4211_p11 = scmp.lt.s32.totalorder %s4209_s16, %s4204_s20 }
  0x53   : > { %p4207_p7 = pnand %p4205_p1, %p4086_p9 }
  0x54   : > { %p4212_p12 = por %p4211_p11, %p4210_p6 }
  0x55   : > { %p4208_p10 = pneg %p4207_p7 }
  0x57   : > { %p4213_p2 = pnand %p4212_p12, %p4208_p10 }
  0x59   : > { %4216 = shalt.err (!%p4213_p2)
}
  0x5a   : > { %3874 = dma.hbm_to_vmem [thread:$0]  (!%p4514_p8), %s421_s30, 512, %s423_s22, %s410_s4  }
  0x5b   : > { %s458_s13 = scalar_lea.hbm %s4979_s2, %s4512_s23  ;;  %s453_s28 = scalar_lea.vmem [#allocation7], %s4509_s29 }
  0x5c   : > { %s462_s21 = sshll.u32 %s453_s28, 4  ;;  %s460_s5 = sshll.u32 %s458_s13, 4  ;;  %s463_s21 = int_to_ptr.vmem [resolvable:$true] %s462_s21  ;;  %s461_s5 = int_to_ptr.hbm [resolvable:$true] %s460_s5 }
  0x5d   : > { %s4232_s6 = sshra.s32 %s461_s5, 4  ;;  %s4239_s4 = scalar_lea.hbm %s4979_s2, 64  ;;  %s4233_s6 = int_to_ptr.hbm [resolvable:$true] %s4232_s6 }
  0x5e   : > { %s4234_s3 = scalar_lea.hbm %s4233_s6, 32  ;;  %p4240_p10 = scmp.lt.s32.totalorder %s4233_s6, %s4979_s2 }
  0x5f   : > { %p4235_p4 = scmp.ne.s32.totalorder %s4233_s6, %s4234_s3  ;;  %p4241_p6 = scmp.lt.s32.totalorder %s4239_s4, %s4234_s3 }
  0x61   : > { %p4237_p1 = pnand %p4235_p4, %p4086_p9  ;;  %p4242_p11 = por %p4241_p6, %p4240_p10 }
  0x63   : > { %p4238_p7 = pneg %p4237_p1 }
  0x65   : > { %p4243_p12 = pnand %p4242_p11, %p4238_p7 }
  0x67   : > { %4246 = shalt.err (!%p4243_p12)
}
  0x68   : > { %3880 = dma.hbm_to_vmem [thread:$0]  (!%p4514_p8), %s461_s5, 512, %s463_s21, %s4527_s17  }
  0x69   : > { %471 = sbr.rel (%p4444_p3) target bundleno = 1532 (0x5fc), region = 64  ;;  %s4599_s29 = sand.u32 (!%p4444_p3), 1, %s4336_s18  }
  0x6a   : > { %s4602_s23 = sshll.u32 (!%p4444_p3), %s4599_s29, 5  ;;  %s474_s11 = scalar_lea.sflag (!%p4444_p3), [#allocation3], %s4599_s29 }
  0x6b   : > { %s4606_s16 = scalar_lea.vmem (!%p4444_p3), [#allocation2], %s4602_s23 }
  0x6e   : > { %4307 = dma.done.wait (%p4493_p13), %s474_s11, 512  }
  0x6f   : > { %4309 = vsyncadd (%p4493_p13), %s474_s11, 4294966784  ;;  %s483_s17 = sand.u32 1, %s4439_s24   ;;  %s4614_s27 = scalar_lea.vmem [#allocation5], %s4602_s23 }
  0x70   : > { %s484_s25 = scalar_lea.sflag [#allocation6], %s483_s17 }
  0x71   : > { %4311 = dma.done.wait (%p4493_p13), %s484_s25, 1024  }
  0x72   : > { %4313 = vsyncadd (%p4493_p13), %s484_s25, 4294966272  ;;  %s4621_s8 = scalar_lea.vmem [#allocation7], %s4602_s23  ;;  %p5031_p3 = scmp.eq.s32.totalorder %s4439_s24, 0 }
  0x74   : > { %4315 = dma.done.wait (%p5031_p3), [#allocation9], 65536   ;;  %p5032_p8 = pmov %p5031_p3 }
  0x75   : > { %p5033_p9 = pmov %p5031_p3 }
  0x76   : > { %4317 = vsyncadd (%p5032_p8), [#allocation9], 4294901760 }
  0x77   : > { %4319 = dma.done.wait (%p5033_p9), [#allocation12], 65536   ;;  %p5034_p2 = pmov %p5031_p3 }
  0x79   : > { %4321 = vsyncadd (%p5034_p2), [#allocation12], 4294901760  ;;  %p5035_p4 = pmov %p5034_p2 }
  0x7a   : > { %p5036_p13 = pmov %p5034_p2 }
  0x7b   : > { %4323 = dma.done.wait (%p5035_p4), [#allocation15], 128  }
  0x7c   : > { %4325 = vsyncadd (%p5036_p13), [#allocation15], 4294967168  ;;  %v641_v0 = vld [vmem:[#allocation8 + $0x1e0] sm:$0xff]  ;;  %v642_v61 = vld [vmem:[#allocation8 + $0x1e8] sm:$0xff]  ;;  %s4354_s1 = smov 64   ;;  %vm2351_vm0 = vcmask 523264  }
  0x7d   : > { %v769_v1 = vld [vmem:[#allocation8 + $0x5e0] sm:$0xff]  ;;  %847 = vmatpush.msra.mxu0 %v641_v0  ;;  %v770_v62 = vld [vmem:[#allocation8 + $0x5e8] sm:$0xff]  ;;  %vm2378_vm1 = vcmask 64512   ;;  %s4937_s28 = scalar_lea.vmem [#allocation17], %s4602_s23  ;;  %s3819_s21 = sshll.u32 %s4439_s24, 5 }
  0x7e   : > { %v637_v2 = vld [vmem:[#allocation8 + $0x1c0] sm:$0xff]  ;;  %887 = vmatpush.msra.mxu2 %v769_v1  ;;  %v638_v1 = vld [vmem:[#allocation8 + $0x1c8] sm:$0xff]  ;;  %s5037_s3 = sld [smem:[#allocation36_spill]]  ;;  %s3585_s4 = sshll.u32 %s4937_s28, 4  ;;  %s3586_s4 = int_to_ptr.vmem [resolvable:$true] %s3585_s4 }
  0x7f   : > { %v765_v3 = vld [vmem:[#allocation8 + $0x5c0] sm:$0xff]  ;;  %848 = vmatpush.msra.mxu0 %v637_v2  ;;  %v766_v2 = vld [vmem:[#allocation8 + $0x5c8] sm:$0xff]  ;;  %s3572_s30 = scalar_lea.sflag [#allocation4], %s4599_s29 }
  0x80   : > { %v833_v4 = vld [vmem:[#allocation8 + $0x7e0] sm:$0xff]  ;;  %888 = vmatpush.msra.mxu2 %v765_v3  ;;  %v834_v3 = vld [vmem:[#allocation8 + $0x7e8] sm:$0xff] }
  0x81   : > { %v633_v5 = vld [vmem:[#allocation8 + $0x1a0] sm:$0xff]  ;;  %907 = vmatpush.msra.mxu3 %v833_v4 }
  0x82   : > { %v705_v6 = vld [vmem:[#allocation8 + $0x3e0] sm:$0xff]  ;;  %849 = vmatpush.msra.mxu0 %v633_v5  ;;  %v634_v5 = vld [vmem:[#allocation8 + $0x1a8] sm:$0xff] }
  0x83   : > { %v761_v7 = vld [vmem:[#allocation8 + $0x5a0] sm:$0xff]  ;;  %867 = vmatpush.msra.mxu1 %v705_v6  ;;  %v706_v6 = vld [vmem:[#allocation8 + $0x3e8] sm:$0xff] }
  0x84   : > { %v829_v8 = vld [vmem:[#allocation8 + $0x7c0] sm:$0xff]  ;;  %889 = vmatpush.msra.mxu2 %v761_v7  ;;  %v762_v7 = vld [vmem:[#allocation8 + $0x5a8] sm:$0xff]  ;;  %s3583_s12 = scalar_lea.hbm %s5037_s3, %s3819_s21  ;;  %s4282_s17 = scalar_lea.hbm %s5037_s3, 64 }
  0x85   : > { %v701_v9 = vld [vmem:[#allocation8 + $0x3c0] sm:$0xff]  ;;  %908 = vmatpush.msra.mxu3 %v829_v8  ;;  %v830_v8 = vld [vmem:[#allocation8 + $0x7c8] sm:$0xff]  ;;  %s3587_s22 = sshll.u32 %s3583_s12, 4  ;;  %s3588_s22 = int_to_ptr.hbm [resolvable:$true] %s3587_s22 }
  0x86   : > { %v629_v10 = vld [vmem:[#allocation8 + $0x180] sm:$0xff]  ;;  %868 = vmatpush.msra.mxu1 %v701_v9  ;;  %v630_v9 = vld [vmem:[#allocation8 + $0x188] sm:$0xff]  ;;  %s4276_s23 = sshra.s32 %s3588_s22, 4  ;;  %s4277_s23 = int_to_ptr.hbm [resolvable:$true] %s4276_s23 }
  0x87   : > { %v757_v11 = vld [vmem:[#allocation8 + $0x580] sm:$0xff]  ;;  %850 = vmatpush.msra.mxu0 %v629_v10  ;;  %v702_v10 = vld [vmem:[#allocation8 + $0x3c8] sm:$0xff]  ;;  %s4278_s24 = scalar_lea.hbm %s4277_s23, 32  ;;  %p4283_p6 = scmp.lt.s32.totalorder %s4277_s23, %s5037_s3 }
  0x88   : > { %v825_v12 = vld [vmem:[#allocation8 + $0x7a0] sm:$0xff]  ;;  %890 = vmatpush.msra.mxu2 %v757_v11  ;;  %v758_v11 = vld [vmem:[#allocation8 + $0x588] sm:$0xff]  ;;  %p4279_p1 = scmp.ne.s32.totalorder %s4277_s23, %s4278_s24  ;;  %p4284_p11 = scmp.lt.s32.totalorder %s4282_s17, %s4278_s24 }
  0x89   : > { %v697_v13 = vld [vmem:[#allocation8 + $0x3a0] sm:$0xff]  ;;  %909 = vmatpush.msra.mxu3 %v825_v12  ;;  %v826_v12 = vld [vmem:[#allocation8 + $0x7a8] sm:$0xff] }
  0x8a   : > { %v821_v14 = vld [vmem:[#allocation8 + $0x780] sm:$0xff]  ;;  %869 = vmatpush.msra.mxu1 %v697_v13  ;;  %v626_v13 = vld [vmem:[#allocation8 + $0x168] sm:$0xff]  ;;  %p4280_p7 = pnand %p4279_p1, %p4497_p0  ;;  %p4285_p12 = por %p4284_p11, %p4283_p6 }
  0x8b   : > { %v625_v15 = vld [vmem:[#allocation8 + $0x160] sm:$0xff]  ;;  %910 = vmatpush.msra.mxu3 %v821_v14  ;;  %v698_v14 = vld [vmem:[#allocation8 + $0x3a8] sm:$0xff] }
  0x8c   : > { %v753_v16 = vld [vmem:[#allocation8 + $0x560] sm:$0xff]  ;;  %851 = vmatpush.msra.mxu0 %v625_v15  ;;  %v754_v15 = vld [vmem:[#allocation8 + $0x568] sm:$0xff]  ;;  %p4281_p10 = pneg %p4280_p7 }
  0x8d   : > { %v693_v17 = vld [vmem:[#allocation8 + $0x380] sm:$0xff]  ;;  %891 = vmatpush.msra.mxu2 %v753_v16  ;;  %v822_v16 = vld [vmem:[#allocation8 + $0x788] sm:$0xff] }
  0x8e   : > { %v817_v18 = vld [vmem:[#allocation8 + $0x760] sm:$0xff]  ;;  %870 = vmatpush.msra.mxu1 %v693_v17  ;;  %v622_v17 = vld [vmem:[#allocation8 + $0x148] sm:$0xff]  ;;  %p4286_p3 = pnand %p4285_p12, %p4281_p10 }
  0x8f   : > { %v621_v19 = vld [vmem:[#allocation8 + $0x140] sm:$0xff]  ;;  %911 = vmatpush.msra.mxu3 %v817_v18  ;;  %v694_v18 = vld [vmem:[#allocation8 + $0x388] sm:$0xff] }
  0x90   : > { %v749_v20 = vld [vmem:[#allocation8 + $0x540] sm:$0xff]  ;;  %852 = vmatpush.msra.mxu0 %v621_v19  ;;  %v750_v19 = vld [vmem:[#allocation8 + $0x548] sm:$0xff] }
  0x91   : > { %v689_v21 = vld [vmem:[#allocation8 + $0x360] sm:$0xff]  ;;  %892 = vmatpush.msra.mxu2 %v749_v20  ;;  %v818_v20 = vld [vmem:[#allocation8 + $0x768] sm:$0xff] }
  0x92   : > { %v813_v22 = vld [vmem:[#allocation8 + $0x740] sm:$0xff]  ;;  %871 = vmatpush.msra.mxu1 %v689_v21  ;;  %v618_v21 = vld [vmem:[#allocation8 + $0x128] sm:$0xff] }
  0x93   : > { %v617_v23 = vld [vmem:[#allocation8 + $0x120] sm:$0xff]  ;;  %912 = vmatpush.msra.mxu3 %v813_v22  ;;  %v690_v22 = vld [vmem:[#allocation8 + $0x368] sm:$0xff] }
  0x94   : > { %v745_v24 = vld [vmem:[#allocation8 + $0x520] sm:$0xff]  ;;  %853 = vmatpush.msra.mxu0 %v617_v23  ;;  %v746_v23 = vld [vmem:[#allocation8 + $0x528] sm:$0xff] }
  0x95   : > { %v685_v25 = vld [vmem:[#allocation8 + $0x340] sm:$0xff]  ;;  %893 = vmatpush.msra.mxu2 %v745_v24  ;;  %v814_v24 = vld [vmem:[#allocation8 + $0x748] sm:$0xff] }
  0x96   : > { %v809_v26 = vld [vmem:[#allocation8 + $0x720] sm:$0xff]  ;;  %872 = vmatpush.msra.mxu1 %v685_v25  ;;  %v614_v25 = vld [vmem:[#allocation8 + $0x108] sm:$0xff] }
  0x97   : > { %v613_v27 = vld [vmem:[#allocation8 + $0x100] sm:$0xff]  ;;  %913 = vmatpush.msra.mxu3 %v809_v26  ;;  %v686_v26 = vld [vmem:[#allocation8 + $0x348] sm:$0xff] }
  0x98   : > { %v741_v28 = vld [vmem:[#allocation8 + $0x500] sm:$0xff]  ;;  %854 = vmatpush.msra.mxu0 %v613_v27  ;;  %v742_v27 = vld [vmem:[#allocation8 + $0x508] sm:$0xff] }
  0x99   : > { %v681_v29 = vld [vmem:[#allocation8 + $0x320] sm:$0xff]  ;;  %894 = vmatpush.msra.mxu2 %v741_v28  ;;  %v810_v28 = vld [vmem:[#allocation8 + $0x728] sm:$0xff] }
  0x9a   : > { %v805_v30 = vld [vmem:[#allocation8 + $0x700] sm:$0xff]  ;;  %873 = vmatpush.msra.mxu1 %v681_v29  ;;  %v610_v29 = vld [vmem:[#allocation8 + $0xe8] sm:$0xff] }
  0x9b   : > { %v609_v31 = vld [vmem:[#allocation8 + $0xe0] sm:$0xff]  ;;  %914 = vmatpush.msra.mxu3 %v805_v30  ;;  %v682_v30 = vld [vmem:[#allocation8 + $0x328] sm:$0xff] }
  0x9c   : > { %v737_v32 = vld [vmem:[#allocation8 + $0x4e0] sm:$0xff]  ;;  %855 = vmatpush.msra.mxu0 %v609_v31  ;;  %v738_v31 = vld [vmem:[#allocation8 + $0x4e8] sm:$0xff] }
  0x9d   : > { %v677_v33 = vld [vmem:[#allocation8 + $0x300] sm:$0xff]  ;;  %895 = vmatpush.msra.mxu2 %v737_v32  ;;  %v806_v32 = vld [vmem:[#allocation8 + $0x708] sm:$0xff] }
  0x9e   : > { %v801_v34 = vld [vmem:[#allocation8 + $0x6e0] sm:$0xff]  ;;  %874 = vmatpush.msra.mxu1 %v677_v33  ;;  %v606_v33 = vld [vmem:[#allocation8 + $0xc8] sm:$0xff] }
  0x9f   : > { %v605_v35 = vld [vmem:[#allocation8 + $0xc0] sm:$0xff]  ;;  %915 = vmatpush.msra.mxu3 %v801_v34  ;;  %v678_v34 = vld [vmem:[#allocation8 + $0x308] sm:$0xff] }
  0xa0   : > { %v733_v36 = vld [vmem:[#allocation8 + $0x4c0] sm:$0xff]  ;;  %856 = vmatpush.msra.mxu0 %v605_v35  ;;  %v734_v35 = vld [vmem:[#allocation8 + $0x4c8] sm:$0xff] }
  0xa1   : > { %v673_v37 = vld [vmem:[#allocation8 + $0x2e0] sm:$0xff]  ;;  %896 = vmatpush.msra.mxu2 %v733_v36  ;;  %v802_v36 = vld [vmem:[#allocation8 + $0x6e8] sm:$0xff] }
  0xa2   : > { %v797_v38 = vld [vmem:[#allocation8 + $0x6c0] sm:$0xff]  ;;  %875 = vmatpush.msra.mxu1 %v673_v37  ;;  %v602_v37 = vld [vmem:[#allocation8 + $0xa8] sm:$0xff] }
  0xa3   : > { %v601_v39 = vld [vmem:[#allocation8 + $0xa0] sm:$0xff]  ;;  %916 = vmatpush.msra.mxu3 %v797_v38  ;;  %v674_v38 = vld [vmem:[#allocation8 + $0x2e8] sm:$0xff] }
  0xa4   : > { %v729_v40 = vld [vmem:[#allocation8 + $0x4a0] sm:$0xff]  ;;  %857 = vmatpush.msra.mxu0 %v601_v39  ;;  %v730_v39 = vld [vmem:[#allocation8 + $0x4a8] sm:$0xff] }
  0xa5   : > { %v669_v41 = vld [vmem:[#allocation8 + $0x2c0] sm:$0xff]  ;;  %897 = vmatpush.msra.mxu2 %v729_v40  ;;  %v798_v40 = vld [vmem:[#allocation8 + $0x6c8] sm:$0xff] }
  0xa6   : > { %v793_v42 = vld [vmem:[#allocation8 + $0x6a0] sm:$0xff]  ;;  %876 = vmatpush.msra.mxu1 %v669_v41  ;;  %v598_v41 = vld [vmem:[#allocation8 + $0x88] sm:$0xff] }
  0xa7   : > { %v597_v43 = vld [vmem:[#allocation8 + $0x80] sm:$0xff]  ;;  %917 = vmatpush.msra.mxu3 %v793_v42  ;;  %v670_v42 = vld [vmem:[#allocation8 + $0x2c8] sm:$0xff] }
  0xa8   : > { %v725_v44 = vld [vmem:[#allocation8 + $0x480] sm:$0xff]  ;;  %858 = vmatpush.msra.mxu0 %v597_v43  ;;  %v726_v43 = vld [vmem:[#allocation8 + $0x488] sm:$0xff] }
  0xa9   : > { %v665_v45 = vld [vmem:[#allocation8 + $0x2a0] sm:$0xff]  ;;  %898 = vmatpush.msra.mxu2 %v725_v44  ;;  %v794_v44 = vld [vmem:[#allocation8 + $0x6a8] sm:$0xff] }
  0xaa   : > { %v789_v46 = vld [vmem:[#allocation8 + $0x680] sm:$0xff]  ;;  %877 = vmatpush.msra.mxu1 %v665_v45  ;;  %v594_v45 = vld [vmem:[#allocation8 + $0x68] sm:$0xff] }
  0xab   : > { %v593_v47 = vld [vmem:[#allocation8 + $0x60] sm:$0xff]  ;;  %918 = vmatpush.msra.mxu3 %v789_v46  ;;  %v666_v46 = vld [vmem:[#allocation8 + $0x2a8] sm:$0xff] }
  0xac   : > { %v721_v48 = vld [vmem:[#allocation8 + $0x460] sm:$0xff]  ;;  %859 = vmatpush.msra.mxu0 %v593_v47  ;;  %v722_v47 = vld [vmem:[#allocation8 + $0x468] sm:$0xff] }
  0xad   : > { %v661_v49 = vld [vmem:[#allocation8 + $0x280] sm:$0xff]  ;;  %899 = vmatpush.msra.mxu2 %v721_v48  ;;  %v790_v48 = vld [vmem:[#allocation8 + $0x688] sm:$0xff] }
  0xae   : > { %v785_v50 = vld [vmem:[#allocation8 + $0x660] sm:$0xff]  ;;  %878 = vmatpush.msra.mxu1 %v661_v49  ;;  %v590_v49 = vld [vmem:[#allocation8 + $0x48] sm:$0xff] }
  0xaf   : > { %v589_v51 = vld [vmem:[#allocation8 + $0x40] sm:$0xff]  ;;  %919 = vmatpush.msra.mxu3 %v785_v50  ;;  %v662_v50 = vld [vmem:[#allocation8 + $0x288] sm:$0xff] }
  0xb0   : > { %v717_v52 = vld [vmem:[#allocation8 + $0x440] sm:$0xff]  ;;  %860 = vmatpush.msra.mxu0 %v589_v51  ;;  %v718_v51 = vld [vmem:[#allocation8 + $0x448] sm:$0xff] }
  0xb1   : > { %v657_v53 = vld [vmem:[#allocation8 + $0x260] sm:$0xff]  ;;  %900 = vmatpush.msra.mxu2 %v717_v52  ;;  %v786_v52 = vld [vmem:[#allocation8 + $0x668] sm:$0xff] }
  0xb2   : > { %v781_v54 = vld [vmem:[#allocation8 + $0x640] sm:$0xff]  ;;  %879 = vmatpush.msra.mxu1 %v657_v53  ;;  %v586_v53 = vld [vmem:[#allocation8 + $0x28] sm:$0xff] }
  0xb3   : > { %v585_v55 = vld [vmem:[#allocation8 + $0x20] sm:$0xff]  ;;  %920 = vmatpush.msra.mxu3 %v781_v54  ;;  %v658_v54 = vld [vmem:[#allocation8 + $0x268] sm:$0xff] }
  0xb4   : > { %v713_v56 = vld [vmem:[#allocation8 + $0x420] sm:$0xff]  ;;  %861 = vmatpush.msra.mxu0 %v585_v55  ;;  %v714_v55 = vld [vmem:[#allocation8 + $0x428] sm:$0xff] }
  0xb5   : > { %v653_v57 = vld [vmem:[#allocation8 + $0x240] sm:$0xff]  ;;  %901 = vmatpush.msra.mxu2 %v713_v56  ;;  %v782_v56 = vld [vmem:[#allocation8 + $0x648] sm:$0xff] }
  0xb6   : > { %v777_v58 = vld [vmem:[#allocation8 + $0x620] sm:$0xff]  ;;  %880 = vmatpush.msra.mxu1 %v653_v57  ;;  %v582_v57 = vld [vmem:[#allocation8 + $0x8] sm:$0xff] }
  0xb7   : > { %v581_v59 = vld [vmem:[#allocation8] sm:$0xff]  ;;  %921 = vmatpush.msra.mxu3 %v777_v58  ;;  %v654_v58 = vld [vmem:[#allocation8 + $0x248] sm:$0xff] }
  0xb8   : > { %v709_v60 = vld [vmem:[#allocation8 + $0x400] sm:$0xff]  ;;  %862 = vmatpush.msra.mxu0 %v581_v59  ;;  %v710_v59 = vld [vmem:[#allocation8 + $0x408] sm:$0xff] }
  0xb9   : > { %v649_v63 = vld [vmem:[#allocation8 + $0x220] sm:$0xff]  ;;  %902 = vmatpush.msra.mxu2 %v709_v60  ;;  %v778_v60 = vld [vmem:[#allocation8 + $0x628] sm:$0xff] }
  0xba   : > { %v773_v0 = vld [vmem:[#allocation8 + $0x600] sm:$0xff]  ;;  %927 = vmatpush.msrb.mxu0 %v642_v61  ;;  %881 = vmatpush.msra.mxu1 %v649_v63  ;;  %v643_v63 = vld [vmem:[#allocation8 + $0x1f0] sm:$0xff] }
  0xbb   : > { %967 = vmatpush.msrb.mxu2 %v770_v62  ;;  %v645_v4 = vld [vmem:[#allocation8 + $0x200] sm:$0xff]  ;;  %922 = vmatpush.msra.mxu3 %v773_v0  ;;  %v4639_v62 = vld [vmem:[%s4606_s16 + $0x10] sm:$0xff] }
  0xbc   : > { %928 = vmatpush.msrb.mxu0 %v638_v1  ;;  %882 = vmatpush.msra.mxu1 %v645_v4  ;;  %v4636_v61 = vld [vmem:[%s4606_s16] sm:$0xff]  ;;  %v771_v0 = vld [vmem:[#allocation8 + $0x5f0] sm:$0xff]  ;;  %v650_v1 = vld [vmem:[#allocation8 + $0x228] sm:$0xff] }
  0xbd   : > { %968 = vmatpush.msrb.mxu2 %v766_v2  ;;  %987 = vmatpush.msrb.mxu3 %v834_v3  ;;  %v774_v2 = vld [vmem:[#allocation8 + $0x608] sm:$0xff]  ;;  %v4644_v3 = vld [vmem:[%s4606_s16 + $0x18] sm:$0xff]  ;;  %v639_v4 = vld [vmem:[#allocation8 + $0x1d0] sm:$0xff] }
  0xbe   : > { %929 = vmatpush.msrb.mxu0 %v634_v5  ;;  %947 = vmatpush.msrb.mxu1 %v706_v6  ;;  %v767_v5 = vld [vmem:[#allocation8 + $0x5d0] sm:$0xff] }
  0xbf   : > { %969 = vmatpush.msrb.mxu2 %v762_v7  ;;  %988 = vmatpush.msrb.mxu3 %v830_v8  ;;  %v835_v6 = vld [vmem:[#allocation8 + $0x7f0] sm:$0xff]  ;;  %v646_v7 = vld [vmem:[#allocation8 + $0x208] sm:$0xff] }
  0xc0   : > { %930 = vmatpush.msrb.mxu0 %v630_v9  ;;  %948 = vmatpush.msrb.mxu1 %v702_v10  ;;  %v635_v8 = vld [vmem:[#allocation8 + $0x1b0] sm:$0xff]  ;;  %v4648_v9 = vld [vmem:[%s4606_s16 + $0x8] sm:$0xff] }
  0xc1   : > { %970 = vmatpush.msrb.mxu2 %v758_v11  ;;  %989 = vmatpush.msrb.mxu3 %v826_v12  ;;  %v763_v10 = vld [vmem:[#allocation8 + $0x5b0] sm:$0xff] }
  0xc2   : > { %931 = vmatpush.msrb.mxu0 %v626_v13  ;;  %949 = vmatpush.msrb.mxu1 %v698_v14  ;;  %v707_v11 = vld [vmem:[#allocation8 + $0x3f0] sm:$0xff] }
  0xc3   : > { %971 = vmatpush.msrb.mxu2 %v754_v15  ;;  %990 = vmatpush.msrb.mxu3 %v822_v16  ;;  %v831_v12 = vld [vmem:[#allocation8 + $0x7d0] sm:$0xff] }
  0xc4   : > { %932 = vmatpush.msrb.mxu0 %v622_v17  ;;  %950 = vmatpush.msrb.mxu1 %v694_v18  ;;  %v631_v13 = vld [vmem:[#allocation8 + $0x190] sm:$0xff] }
  0xc5   : > { %972 = vmatpush.msrb.mxu2 %v750_v19  ;;  %991 = vmatpush.msrb.mxu3 %v818_v20  ;;  %v759_v14 = vld [vmem:[#allocation8 + $0x590] sm:$0xff] }
  0xc6   : > { %933 = vmatpush.msrb.mxu0 %v618_v21  ;;  %951 = vmatpush.msrb.mxu1 %v690_v22  ;;  %v703_v15 = vld [vmem:[#allocation8 + $0x3d0] sm:$0xff] }
  0xc7   : > { %973 = vmatpush.msrb.mxu2 %v746_v23  ;;  %992 = vmatpush.msrb.mxu3 %v814_v24  ;;  %v827_v16 = vld [vmem:[#allocation8 + $0x7b0] sm:$0xff] }
  0xc8   : > { %934 = vmatpush.msrb.mxu0 %v614_v25  ;;  %952 = vmatpush.msrb.mxu1 %v686_v26  ;;  %v627_v17 = vld [vmem:[#allocation8 + $0x170] sm:$0xff] }
  0xc9   : > { %974 = vmatpush.msrb.mxu2 %v742_v27  ;;  %993 = vmatpush.msrb.mxu3 %v810_v28  ;;  %v755_v18 = vld [vmem:[#allocation8 + $0x570] sm:$0xff] }
  0xca   : > { %935 = vmatpush.msrb.mxu0 %v610_v29  ;;  %953 = vmatpush.msrb.mxu1 %v682_v30  ;;  %v699_v19 = vld [vmem:[#allocation8 + $0x3b0] sm:$0xff] }
  0xcb   : > { %975 = vmatpush.msrb.mxu2 %v738_v31  ;;  %994 = vmatpush.msrb.mxu3 %v806_v32  ;;  %v823_v20 = vld [vmem:[#allocation8 + $0x790] sm:$0xff] }
  0xcc   : > { %936 = vmatpush.msrb.mxu0 %v606_v33  ;;  %954 = vmatpush.msrb.mxu1 %v678_v34  ;;  %v623_v21 = vld [vmem:[#allocation8 + $0x150] sm:$0xff] }
  0xcd   : > { %976 = vmatpush.msrb.mxu2 %v734_v35  ;;  %995 = vmatpush.msrb.mxu3 %v802_v36  ;;  %v751_v22 = vld [vmem:[#allocation8 + $0x550] sm:$0xff] }
  0xce   : > { %937 = vmatpush.msrb.mxu0 %v602_v37  ;;  %955 = vmatpush.msrb.mxu1 %v674_v38  ;;  %v695_v23 = vld [vmem:[#allocation8 + $0x390] sm:$0xff] }
  0xcf   : > { %977 = vmatpush.msrb.mxu2 %v730_v39  ;;  %996 = vmatpush.msrb.mxu3 %v798_v40  ;;  %v819_v24 = vld [vmem:[#allocation8 + $0x770] sm:$0xff] }
  0xd0   : > { %938 = vmatpush.msrb.mxu0 %v598_v41  ;;  %956 = vmatpush.msrb.mxu1 %v670_v42  ;;  %v619_v25 = vld [vmem:[#allocation8 + $0x130] sm:$0xff] }
  0xd1   : > { %978 = vmatpush.msrb.mxu2 %v726_v43  ;;  %997 = vmatpush.msrb.mxu3 %v794_v44  ;;  %v747_v26 = vld [vmem:[#allocation8 + $0x530] sm:$0xff] }
  0xd2   : > { %939 = vmatpush.msrb.mxu0 %v594_v45  ;;  %957 = vmatpush.msrb.mxu1 %v666_v46  ;;  %v691_v27 = vld [vmem:[#allocation8 + $0x370] sm:$0xff] }
  0xd3   : > { %979 = vmatpush.msrb.mxu2 %v722_v47  ;;  %998 = vmatpush.msrb.mxu3 %v790_v48  ;;  %v815_v28 = vld [vmem:[#allocation8 + $0x750] sm:$0xff] }
  0xd4   : > { %940 = vmatpush.msrb.mxu0 %v590_v49  ;;  %958 = vmatpush.msrb.mxu1 %v662_v50  ;;  %v615_v29 = vld [vmem:[#allocation8 + $0x110] sm:$0xff] }
  0xd5   : > { %980 = vmatpush.msrb.mxu2 %v718_v51  ;;  %999 = vmatpush.msrb.mxu3 %v786_v52  ;;  %v743_v30 = vld [vmem:[#allocation8 + $0x510] sm:$0xff] }
  0xd6   : > { %941 = vmatpush.msrb.mxu0 %v586_v53  ;;  %959 = vmatpush.msrb.mxu1 %v658_v54  ;;  %v687_v31 = vld [vmem:[#allocation8 + $0x350] sm:$0xff] }
  0xd7   : > { %981 = vmatpush.msrb.mxu2 %v714_v55  ;;  %1000 = vmatpush.msrb.mxu3 %v782_v56  ;;  %v811_v32 = vld [vmem:[#allocation8 + $0x730] sm:$0xff] }
  0xd8   : > { %942 = vmatpush.msrb.mxu0 %v582_v57  ;;  %960 = vmatpush.msrb.mxu1 %v654_v58  ;;  %v611_v33 = vld [vmem:[#allocation8 + $0xf0] sm:$0xff] }
  0xd9   : > { %982 = vmatpush.msrb.mxu2 %v710_v59  ;;  %1001 = vmatpush.msrb.mxu3 %v778_v60  ;;  %v739_v34 = vld [vmem:[#allocation8 + $0x4f0] sm:$0xff] }
  0xda   : > { %863 = vmatmul.f32.vlgmr.msra.gmra.mxu0 %v4636_v61  ;;  %903 = vmatmul.f32.vlgmr.msra.gmra.mxu2 %v4639_v62  ;;  %v683_v35 = vld [vmem:[#allocation8 + $0x330] sm:$0xff] }
  0xdb   : > { %1007 = vmatpush.msra.mxu0 %v643_v63  ;;  %1047 = vmatpush.msra.mxu2 %v771_v0  ;;  %v807_v36 = vld [vmem:[#allocation8 + $0x710] sm:$0xff] }
  0xdc   : > { %961 = vmatpush.msrb.mxu1 %v650_v1  ;;  %1002 = vmatpush.msrb.mxu3 %v774_v2  ;;  %v607_v37 = vld [vmem:[#allocation8 + $0xd0] sm:$0xff] }
  0xdd   : > { %923 = vmatmul.f32.vlgmr.msra.gmra.mxu3 %v4644_v3  ;;  %1008 = vmatpush.msra.mxu0 %v639_v4  ;;  %v735_v38 = vld [vmem:[#allocation8 + $0x4d0] sm:$0xff]  ;;  %v644_v4 = vld [vmem:[#allocation8 + $0x1f8] sm:$0xff] }
  0xde   : > { %1048 = vmatpush.msra.mxu2 %v767_v5  ;;  %1067 = vmatpush.msra.mxu3 %v835_v6  ;;  %v679_v39 = vld [vmem:[#allocation8 + $0x310] sm:$0xff]  ;;  %v772_v5 = vld [vmem:[#allocation8 + $0x5f8] sm:$0xff] }
  0xdf   : > { %962 = vmatpush.msrb.mxu1 %v646_v7  ;;  %1009 = vmatpush.msra.mxu0 %v635_v8  ;;  %v803_v40 = vld [vmem:[#allocation8 + $0x6f0] sm:$0xff]  ;;  %v640_v8 = vld [vmem:[#allocation8 + $0x1d8] sm:$0xff] }
  0xe0   : > { %883 = vmatmul.f32.vlgmr.msra.gmra.mxu1 %v4648_v9  ;;  %1049 = vmatpush.msra.mxu2 %v763_v10  ;;  %v603_v41 = vld [vmem:[#allocation8 + $0xb0] sm:$0xff]  ;;  %v768_v10 = vld [vmem:[#allocation8 + $0x5d8] sm:$0xff] }
  0xe1   : > { %1027 = vmatpush.msra.mxu1 %v707_v11  ;;  %1068 = vmatpush.msra.mxu3 %v831_v12  ;;  %v731_v42 = vld [vmem:[#allocation8 + $0x4b0] sm:$0xff]  ;;  %v836_v11 = vld [vmem:[#allocation8 + $0x7f8] sm:$0xff] }
  0xe2   : > { %1010 = vmatpush.msra.mxu0 %v631_v13  ;;  %1050 = vmatpush.msra.mxu2 %v759_v14  ;;  %v675_v43 = vld [vmem:[#allocation8 + $0x2f0] sm:$0xff]  ;;  %v636_v13 = vld [vmem:[#allocation8 + $0x1b8] sm:$0xff] }
  0xe3   : > { %1028 = vmatpush.msra.mxu1 %v703_v15  ;;  %1069 = vmatpush.msra.mxu3 %v827_v16  ;;  %v799_v44 = vld [vmem:[#allocation8 + $0x6d0] sm:$0xff]  ;;  %v764_v14 = vld [vmem:[#allocation8 + $0x5b8] sm:$0xff] }
  0xe4   : > { %1011 = vmatpush.msra.mxu0 %v627_v17  ;;  %1051 = vmatpush.msra.mxu2 %v755_v18  ;;  %v599_v45 = vld [vmem:[#allocation8 + $0x90] sm:$0xff]  ;;  %v708_v15 = vld [vmem:[#allocation8 + $0x3f8] sm:$0xff] }
  0xe5   : > { %1029 = vmatpush.msra.mxu1 %v699_v19  ;;  %1070 = vmatpush.msra.mxu3 %v823_v20  ;;  %v727_v46 = vld [vmem:[#allocation8 + $0x490] sm:$0xff]  ;;  %v832_v16 = vld [vmem:[#allocation8 + $0x7d8] sm:$0xff] }
  0xe6   : > { %1012 = vmatpush.msra.mxu0 %v623_v21  ;;  %1052 = vmatpush.msra.mxu2 %v751_v22  ;;  %v671_v47 = vld [vmem:[#allocation8 + $0x2d0] sm:$0xff]  ;;  %v632_v17 = vld [vmem:[#allocation8 + $0x198] sm:$0xff] }
  0xe7   : > { %1030 = vmatpush.msra.mxu1 %v695_v23  ;;  %1071 = vmatpush.msra.mxu3 %v819_v24  ;;  %v795_v48 = vld [vmem:[#allocation8 + $0x6b0] sm:$0xff]  ;;  %v760_v18 = vld [vmem:[#allocation8 + $0x598] sm:$0xff] }
  0xe8   : > { %1013 = vmatpush.msra.mxu0 %v619_v25  ;;  %1053 = vmatpush.msra.mxu2 %v747_v26  ;;  %v595_v49 = vld [vmem:[#allocation8 + $0x70] sm:$0xff]  ;;  %v704_v19 = vld [vmem:[#allocation8 + $0x3d8] sm:$0xff] }
  0xe9   : > { %1031 = vmatpush.msra.mxu1 %v691_v27  ;;  %1072 = vmatpush.msra.mxu3 %v815_v28  ;;  %v723_v50 = vld [vmem:[#allocation8 + $0x470] sm:$0xff]  ;;  %v828_v20 = vld [vmem:[#allocation8 + $0x7b8] sm:$0xff] }
  0xea   : > { %1014 = vmatpush.msra.mxu0 %v615_v29  ;;  %1054 = vmatpush.msra.mxu2 %v743_v30  ;;  %v667_v51 = vld [vmem:[#allocation8 + $0x2b0] sm:$0xff]  ;;  %v628_v21 = vld [vmem:[#allocation8 + $0x178] sm:$0xff] }
  0xeb   : > { %1032 = vmatpush.msra.mxu1 %v687_v31  ;;  %1073 = vmatpush.msra.mxu3 %v811_v32  ;;  %v791_v52 = vld [vmem:[#allocation8 + $0x690] sm:$0xff]  ;;  %v756_v22 = vld [vmem:[#allocation8 + $0x578] sm:$0xff] }
  0xec   : > { %1015 = vmatpush.msra.mxu0 %v611_v33  ;;  %1055 = vmatpush.msra.mxu2 %v739_v34  ;;  %v591_v53 = vld [vmem:[#allocation8 + $0x50] sm:$0xff]  ;;  %v700_v23 = vld [vmem:[#allocation8 + $0x3b8] sm:$0xff] }
  0xed   : > { %1033 = vmatpush.msra.mxu1 %v683_v35  ;;  %1074 = vmatpush.msra.mxu3 %v807_v36  ;;  %v719_v54 = vld [vmem:[#allocation8 + $0x450] sm:$0xff]  ;;  %v824_v24 = vld [vmem:[#allocation8 + $0x798] sm:$0xff] }
  0xee   : > { %1016 = vmatpush.msra.mxu0 %v607_v37  ;;  %1056 = vmatpush.msra.mxu2 %v735_v38  ;;  %v663_v55 = vld [vmem:[#allocation8 + $0x290] sm:$0xff]  ;;  %v624_v25 = vld [vmem:[#allocation8 + $0x158] sm:$0xff] }
  0xef   : > { %1034 = vmatpush.msra.mxu1 %v679_v39  ;;  %1075 = vmatpush.msra.mxu3 %v803_v40  ;;  %v787_v56 = vld [vmem:[#allocation8 + $0x670] sm:$0xff]  ;;  %v752_v26 = vld [vmem:[#allocation8 + $0x558] sm:$0xff] }
  0xf0   : > { %1017 = vmatpush.msra.mxu0 %v603_v41  ;;  %1057 = vmatpush.msra.mxu2 %v731_v42  ;;  %v587_v57 = vld [vmem:[#allocation8 + $0x30] sm:$0xff]  ;;  %v696_v27 = vld [vmem:[#allocation8 + $0x398] sm:$0xff] }
  0xf1   : > { %1035 = vmatpush.msra.mxu1 %v675_v43  ;;  %1076 = vmatpush.msra.mxu3 %v799_v44  ;;  %v715_v58 = vld [vmem:[#allocation8 + $0x430] sm:$0xff]  ;;  %v820_v28 = vld [vmem:[#allocation8 + $0x778] sm:$0xff] }
  0xf2   : > { %1018 = vmatpush.msra.mxu0 %v599_v45  ;;  %1058 = vmatpush.msra.mxu2 %v727_v46  ;;  %v659_v59 = vld [vmem:[#allocation8 + $0x270] sm:$0xff]  ;;  %v620_v29 = vld [vmem:[#allocation8 + $0x138] sm:$0xff] }
  0xf3   : > { %1036 = vmatpush.msra.mxu1 %v671_v47  ;;  %1077 = vmatpush.msra.mxu3 %v795_v48  ;;  %v783_v60 = vld [vmem:[#allocation8 + $0x650] sm:$0xff]  ;;  %v748_v30 = vld [vmem:[#allocation8 + $0x538] sm:$0xff] }
  0xf4   : > { %1019 = vmatpush.msra.mxu0 %v595_v49  ;;  %1059 = vmatpush.msra.mxu2 %v723_v50  ;;  %v583_v63 = vld [vmem:[#allocation8 + $0x10] sm:$0xff]  ;;  %v692_v31 = vld [vmem:[#allocation8 + $0x378] sm:$0xff] }
  0xf5   : > { %1037 = vmatpush.msra.mxu1 %v667_v51  ;;  %1078 = vmatpush.msra.mxu3 %v791_v52  ;;  %v711_v0 = vld [vmem:[#allocation8 + $0x410] sm:$0xff]  ;;  %v816_v32 = vld [vmem:[#allocation8 + $0x758] sm:$0xff] }
  0xf6   : > { %1020 = vmatpush.msra.mxu0 %v591_v53  ;;  %1060 = vmatpush.msra.mxu2 %v719_v54  ;;  %v655_v1 = vld [vmem:[#allocation8 + $0x250] sm:$0xff]  ;;  %v616_v33 = vld [vmem:[#allocation8 + $0x118] sm:$0xff] }
  0xf7   : > { %1038 = vmatpush.msra.mxu1 %v663_v55  ;;  %1079 = vmatpush.msra.mxu3 %v787_v56  ;;  %v779_v2 = vld [vmem:[#allocation8 + $0x630] sm:$0xff]  ;;  %v744_v34 = vld [vmem:[#allocation8 + $0x518] sm:$0xff] }
  0xf8   : > { %1021 = vmatpush.msra.mxu0 %v587_v57  ;;  %1061 = vmatpush.msra.mxu2 %v715_v58  ;;  %v651_v6 = vld [vmem:[#allocation8 + $0x230] sm:$0xff]  ;;  %v688_v35 = vld [vmem:[#allocation8 + $0x358] sm:$0xff] }
  0xf9   : > { %1039 = vmatpush.msra.mxu1 %v659_v59  ;;  %1080 = vmatpush.msra.mxu3 %v783_v60  ;;  %v775_v7 = vld [vmem:[#allocation8 + $0x610] sm:$0xff]  ;;  %v812_v36 = vld [vmem:[#allocation8 + $0x738] sm:$0xff] }
  0xfa   : > { %1022 = vmatpush.msra.mxu0 %v583_v63  ;;  %1062 = vmatpush.msra.mxu2 %v711_v0  ;;  %v647_v12 = vld [vmem:[#allocation8 + $0x210] sm:$0xff]  ;;  %v612_v37 = vld [vmem:[#allocation8 + $0xf8] sm:$0xff] }
  0xfb   : > { %1040 = vmatpush.msra.mxu1 %v655_v1  ;;  %1081 = vmatpush.msra.mxu3 %v779_v2  ;;  %v740_v38 = vld [vmem:[#allocation8 + $0x4f8] sm:$0xff] }
  0xfc   : > { %943 = vmatmul.f32.vlgmr.msrb.gmra.mxu0 %v4636_v61  ;;  %983 = vmatmul.f32.vlgmr.msrb.gmra.mxu2 %v4639_v62  ;;  %v684_v39 = vld [vmem:[#allocation8 + $0x338] sm:$0xff] }
  0xfd   : > { %1087 = vmatpush.msrb.mxu0 %v644_v4  ;;  %1127 = vmatpush.msrb.mxu2 %v772_v5  ;;  %v808_v40 = vld [vmem:[#allocation8 + $0x718] sm:$0xff] }
  0xfe   : > { %1041 = vmatpush.msra.mxu1 %v651_v6  ;;  %1082 = vmatpush.msra.mxu3 %v775_v7  ;;  %v608_v41 = vld [vmem:[#allocation8 + $0xd8] sm:$0xff] }
  0xff   : > { %1003 = vmatmul.f32.vlgmr.msrb.gmra.mxu3 %v4644_v3  ;;  %1088 = vmatpush.msrb.mxu0 %v640_v8  ;;  %v736_v42 = vld [vmem:[#allocation8 + $0x4d8] sm:$0xff]  ;;  %v1231_v8 = vld [vmem:[#allocation10 + $0x1e0] sm:$0xff] }
 0x100   : > { %1128 = vmatpush.msrb.mxu2 %v768_v10  ;;  %1147 = vmatpush.msrb.mxu3 %v836_v11  ;;  %v680_v43 = vld [vmem:[#allocation8 + $0x318] sm:$0xff]  ;;  %v1359_v10 = vld [vmem:[#allocation10 + $0x5e0] sm:$0xff] }
 0x101   : > { %1042 = vmatpush.msra.mxu1 %v647_v12  ;;  %1089 = vmatpush.msrb.mxu0 %v636_v13  ;;  %v804_v44 = vld [vmem:[#allocation8 + $0x6f8] sm:$0xff]  ;;  %v1227_v13 = vld [vmem:[#allocation10 + $0x1c0] sm:$0xff] }
 0x102   : > { %963 = vmatmul.f32.vlgmr.msrb.gmra.mxu1 %v4648_v9  ;;  %1129 = vmatpush.msrb.mxu2 %v764_v14  ;;  %v604_v45 = vld [vmem:[#allocation8 + $0xb8] sm:$0xff]  ;;  %v1355_v14 = vld [vmem:[#allocation10 + $0x5c0] sm:$0xff] }
 0x103   : > { %1107 = vmatpush.msrb.mxu1 %v708_v15  ;;  %1148 = vmatpush.msrb.mxu3 %v832_v16  ;;  %v732_v46 = vld [vmem:[#allocation8 + $0x4b8] sm:$0xff]  ;;  %v1423_v15 = vld [vmem:[#allocation10 + $0x7e0] sm:$0xff] }
 0x104   : > { %1090 = vmatpush.msrb.mxu0 %v632_v17  ;;  %1130 = vmatpush.msrb.mxu2 %v760_v18  ;;  %v676_v47 = vld [vmem:[#allocation8 + $0x2f8] sm:$0xff]  ;;  %v1223_v17 = vld [vmem:[#allocation10 + $0x1a0] sm:$0xff] }
 0x105   : > { %1108 = vmatpush.msrb.mxu1 %v704_v19  ;;  %1149 = vmatpush.msrb.mxu3 %v828_v20  ;;  %v800_v48 = vld [vmem:[#allocation8 + $0x6d8] sm:$0xff]  ;;  %v1351_v18 = vld [vmem:[#allocation10 + $0x5a0] sm:$0xff] }
 0x106   : > { %1091 = vmatpush.msrb.mxu0 %v628_v21  ;;  %1131 = vmatpush.msrb.mxu2 %v756_v22  ;;  %v600_v49 = vld [vmem:[#allocation8 + $0x98] sm:$0xff]  ;;  %v1295_v19 = vld [vmem:[#allocation10 + $0x3e0] sm:$0xff] }
 0x107   : > { %1109 = vmatpush.msrb.mxu1 %v700_v23  ;;  %1150 = vmatpush.msrb.mxu3 %v824_v24  ;;  %v728_v50 = vld [vmem:[#allocation8 + $0x498] sm:$0xff]  ;;  %v1419_v20 = vld [vmem:[#allocation10 + $0x7c0] sm:$0xff] }
 0x108   : > { %1092 = vmatpush.msrb.mxu0 %v624_v25  ;;  %1132 = vmatpush.msrb.mxu2 %v752_v26  ;;  %v672_v51 = vld [vmem:[#allocation8 + $0x2d8] sm:$0xff]  ;;  %v1219_v21 = vld [vmem:[#allocation10 + $0x180] sm:$0xff] }
 0x109   : > { %1110 = vmatpush.msrb.mxu1 %v696_v27  ;;  %1151 = vmatpush.msrb.mxu3 %v820_v28  ;;  %v796_v52 = vld [vmem:[#allocation8 + $0x6b8] sm:$0xff]  ;;  %v1347_v22 = vld [vmem:[#allocation10 + $0x580] sm:$0xff] }
 0x10a   : > { %1093 = vmatpush.msrb.mxu0 %v620_v29  ;;  %1133 = vmatpush.msrb.mxu2 %v748_v30  ;;  %v596_v53 = vld [vmem:[#allocation8 + $0x78] sm:$0xff]  ;;  %v1291_v23 = vld [vmem:[#allocation10 + $0x3c0] sm:$0xff] }
 0x10b   : > { %1111 = vmatpush.msrb.mxu1 %v692_v31  ;;  %1152 = vmatpush.msrb.mxu3 %v816_v32  ;;  %v724_v54 = vld [vmem:[#allocation8 + $0x478] sm:$0xff]  ;;  %v1415_v24 = vld [vmem:[#allocation10 + $0x7a0] sm:$0xff] }
 0x10c   : > { %1094 = vmatpush.msrb.mxu0 %v616_v33  ;;  %1134 = vmatpush.msrb.mxu2 %v744_v34  ;;  %v668_v55 = vld [vmem:[#allocation8 + $0x2b8] sm:$0xff]  ;;  %v1215_v25 = vld [vmem:[#allocation10 + $0x160] sm:$0xff] }
 0x10d   : > { %1112 = vmatpush.msrb.mxu1 %v688_v35  ;;  %1153 = vmatpush.msrb.mxu3 %v812_v36  ;;  %v792_v56 = vld [vmem:[#allocation8 + $0x698] sm:$0xff]  ;;  %v1343_v26 = vld [vmem:[#allocation10 + $0x560] sm:$0xff] }
 0x10e   : > { %1095 = vmatpush.msrb.mxu0 %v612_v37  ;;  %1135 = vmatpush.msrb.mxu2 %v740_v38  ;;  %v592_v57 = vld [vmem:[#allocation8 + $0x58] sm:$0xff]  ;;  %v1287_v27 = vld [vmem:[#allocation10 + $0x3a0] sm:$0xff] }
 0x10f   : > { %1113 = vmatpush.msrb.mxu1 %v684_v39  ;;  %1154 = vmatpush.msrb.mxu3 %v808_v40  ;;  %v720_v58 = vld [vmem:[#allocation8 + $0x458] sm:$0xff]  ;;  %v1411_v28 = vld [vmem:[#allocation10 + $0x780] sm:$0xff] }
 0x110   : > { %1096 = vmatpush.msrb.mxu0 %v608_v41  ;;  %1136 = vmatpush.msrb.mxu2 %v736_v42  ;;  %v664_v59 = vld [vmem:[#allocation8 + $0x298] sm:$0xff]  ;;  %v1211_v29 = vld [vmem:[#allocation10 + $0x140] sm:$0xff] }
 0x111   : > { %1114 = vmatpush.msrb.mxu1 %v680_v43  ;;  %1155 = vmatpush.msrb.mxu3 %v804_v44  ;;  %v788_v60 = vld [vmem:[#allocation8 + $0x678] sm:$0xff]  ;;  %v1339_v30 = vld [vmem:[#allocation10 + $0x540] sm:$0xff] }
 0x112   : > { %1097 = vmatpush.msrb.mxu0 %v604_v45  ;;  %1137 = vmatpush.msrb.mxu2 %v732_v46  ;;  %v588_v63 = vld [vmem:[#allocation8 + $0x38] sm:$0xff]  ;;  %v1283_v31 = vld [vmem:[#allocation10 + $0x380] sm:$0xff] }
 0x113   : > { %1115 = vmatpush.msrb.mxu1 %v676_v47  ;;  %1156 = vmatpush.msrb.mxu3 %v800_v48  ;;  %v716_v0 = vld [vmem:[#allocation8 + $0x438] sm:$0xff]  ;;  %v1407_v32 = vld [vmem:[#allocation10 + $0x760] sm:$0xff] }
 0x114   : > { %1098 = vmatpush.msrb.mxu0 %v600_v49  ;;  %1138 = vmatpush.msrb.mxu2 %v728_v50  ;;  %v660_v1 = vld [vmem:[#allocation8 + $0x278] sm:$0xff]  ;;  %v1207_v33 = vld [vmem:[#allocation10 + $0x120] sm:$0xff] }
 0x115   : > { %1116 = vmatpush.msrb.mxu1 %v672_v51  ;;  %1157 = vmatpush.msrb.mxu3 %v796_v52  ;;  %v784_v2 = vld [vmem:[#allocation8 + $0x658] sm:$0xff]  ;;  %v1335_v34 = vld [vmem:[#allocation10 + $0x520] sm:$0xff] }
 0x116   : > { %1099 = vmatpush.msrb.mxu0 %v596_v53  ;;  %1139 = vmatpush.msrb.mxu2 %v724_v54  ;;  %v584_v4 = vld [vmem:[#allocation8 + $0x18] sm:$0xff]  ;;  %v1279_v35 = vld [vmem:[#allocation10 + $0x360] sm:$0xff] }
 0x117   : > { %1117 = vmatpush.msrb.mxu1 %v668_v55  ;;  %1158 = vmatpush.msrb.mxu3 %v792_v56  ;;  %v712_v5 = vld [vmem:[#allocation8 + $0x418] sm:$0xff]  ;;  %v1403_v36 = vld [vmem:[#allocation10 + $0x740] sm:$0xff] }
 0x118   : > { %1100 = vmatpush.msrb.mxu0 %v592_v57  ;;  %1140 = vmatpush.msrb.mxu2 %v720_v58  ;;  %v656_v6 = vld [vmem:[#allocation8 + $0x258] sm:$0xff]  ;;  %v1203_v37 = vld [vmem:[#allocation10 + $0x100] sm:$0xff] }
 0x119   : > { %1118 = vmatpush.msrb.mxu1 %v664_v59  ;;  %1159 = vmatpush.msrb.mxu3 %v788_v60  ;;  %v780_v7 = vld [vmem:[#allocation8 + $0x638] sm:$0xff]  ;;  %v1331_v38 = vld [vmem:[#allocation10 + $0x500] sm:$0xff] }
 0x11a   : > { %1101 = vmatpush.msrb.mxu0 %v588_v63  ;;  %1141 = vmatpush.msrb.mxu2 %v716_v0  ;;  %v652_v11 = vld [vmem:[#allocation8 + $0x238] sm:$0xff]  ;;  %v1275_v39 = vld [vmem:[#allocation10 + $0x340] sm:$0xff] }
 0x11b   : > { %1119 = vmatpush.msrb.mxu1 %v660_v1  ;;  %1160 = vmatpush.msrb.mxu3 %v784_v2  ;;  %v776_v12 = vld [vmem:[#allocation8 + $0x618] sm:$0xff]  ;;  %v1399_v40 = vld [vmem:[#allocation10 + $0x720] sm:$0xff] }
 0x11c   : > { %1102 = vmatpush.msrb.mxu0 %v584_v4  ;;  %1142 = vmatpush.msrb.mxu2 %v712_v5  ;;  %v648_v16 = vld [vmem:[#allocation8 + $0x218] sm:$0xff]  ;;  %v1199_v41 = vld [vmem:[#allocation10 + $0xe0] sm:$0xff] }
 0x11d   : > { %1120 = vmatpush.msrb.mxu1 %v656_v6  ;;  %1161 = vmatpush.msrb.mxu3 %v780_v7  ;;  %v1327_v42 = vld [vmem:[#allocation10 + $0x4e0] sm:$0xff] }
 0x11e   : > { %1023 = vmatmul.f32.vlgmr.msra.gmra.mxu0 %v4636_v61  ;;  %1063 = vmatmul.f32.vlgmr.msra.gmra.mxu2 %v4639_v62  ;;  %v1271_v43 = vld [vmem:[#allocation10 + $0x320] sm:$0xff] }
 0x11f   : > { %1437 = vmatpush.msra.mxu0 %v1231_v8  ;;  %1477 = vmatpush.msra.mxu2 %v1359_v10  ;;  %v1395_v44 = vld [vmem:[#allocation10 + $0x700] sm:$0xff] }
 0x120   : > { %1121 = vmatpush.msrb.mxu1 %v652_v11  ;;  %1162 = vmatpush.msrb.mxu3 %v776_v12  ;;  %v1195_v45 = vld [vmem:[#allocation10 + $0xc0] sm:$0xff]  ;;  %v1232_v11 = vld [vmem:[#allocation10 + $0x1e8] sm:$0xff] }
 0x121   : > { %1083 = vmatmul.f32.vlgmr.msra.gmra.mxu3 %v4644_v3  ;;  %1438 = vmatpush.msra.mxu0 %v1227_v13  ;;  %v1323_v46 = vld [vmem:[#allocation10 + $0x4c0] sm:$0xff]  ;;  %v1360_v12 = vld [vmem:[#allocation10 + $0x5e8] sm:$0xff] }
 0x122   : > { %1478 = vmatpush.msra.mxu2 %v1355_v14  ;;  %1497 = vmatpush.msra.mxu3 %v1423_v15  ;;  %v1267_v47 = vld [vmem:[#allocation10 + $0x300] sm:$0xff]  ;;  %v4671_v15 = vld [vmem:[%s4614_s27 + $0x18] sm:$0xff] }
 0x123   : > { %1122 = vmatpush.msrb.mxu1 %v648_v16  ;;  %1439 = vmatpush.msra.mxu0 %v1223_v17  ;;  %v1391_v48 = vld [vmem:[#allocation10 + $0x6e0] sm:$0xff]  ;;  %v1228_v16 = vld [vmem:[#allocation10 + $0x1c8] sm:$0xff] }
 0x124   : > { %1043 = vmatmul.f32.vlgmr.msra.gmra.mxu1 %v4648_v9  ;;  %1479 = vmatpush.msra.mxu2 %v1351_v18  ;;  %v1191_v49 = vld [vmem:[#allocation10 + $0xa0] sm:$0xff]  ;;  %v1356_v17 = vld [vmem:[#allocation10 + $0x5c8] sm:$0xff] }
 0x125   : > { %1457 = vmatpush.msra.mxu1 %v1295_v19  ;;  %1498 = vmatpush.msra.mxu3 %v1419_v20  ;;  %v1319_v50 = vld [vmem:[#allocation10 + $0x4a0] sm:$0xff]  ;;  %v1424_v18 = vld [vmem:[#allocation10 + $0x7e8] sm:$0xff] }
 0x126   : > { %1440 = vmatpush.msra.mxu0 %v1219_v21  ;;  %1480 = vmatpush.msra.mxu2 %v1347_v22  ;;  %v1263_v51 = vld [vmem:[#allocation10 + $0x2e0] sm:$0xff]  ;;  %v1224_v20 = vld [vmem:[#allocation10 + $0x1a8] sm:$0xff] }
 0x127   : > { %1458 = vmatpush.msra.mxu1 %v1291_v23  ;;  %1499 = vmatpush.msra.mxu3 %v1415_v24  ;;  %v1387_v52 = vld [vmem:[#allocation10 + $0x6c0] sm:$0xff]  ;;  %v4676_v21 = vld [vmem:[%s4614_s27 + $0x8] sm:$0xff] }
 0x128   : > { %1441 = vmatpush.msra.mxu0 %v1215_v25  ;;  %1481 = vmatpush.msra.mxu2 %v1343_v26  ;;  %v1187_v53 = vld [vmem:[#allocation10 + $0x80] sm:$0xff]  ;;  %v1352_v22 = vld [vmem:[#allocation10 + $0x5a8] sm:$0xff] }
 0x129   : > { %1459 = vmatpush.msra.mxu1 %v1287_v27  ;;  %1500 = vmatpush.msra.mxu3 %v1411_v28  ;;  %v1315_v54 = vld [vmem:[#allocation10 + $0x480] sm:$0xff]  ;;  %v1296_v23 = vld [vmem:[#allocation10 + $0x3e8] sm:$0xff] }
 0x12a   : > { %1442 = vmatpush.msra.mxu0 %v1211_v29  ;;  %1482 = vmatpush.msra.mxu2 %v1339_v30  ;;  %v1259_v55 = vld [vmem:[#allocation10 + $0x2c0] sm:$0xff]  ;;  %v1420_v24 = vld [vmem:[#allocation10 + $0x7c8] sm:$0xff] }
 0x12b   : > { %1460 = vmatpush.msra.mxu1 %v1283_v31  ;;  %1501 = vmatpush.msra.mxu3 %v1407_v32  ;;  %v1383_v56 = vld [vmem:[#allocation10 + $0x6a0] sm:$0xff]  ;;  %v1220_v25 = vld [vmem:[#allocation10 + $0x188] sm:$0xff] }
 0x12c   : > { %1443 = vmatpush.msra.mxu0 %v1207_v33  ;;  %1483 = vmatpush.msra.mxu2 %v1335_v34  ;;  %v1183_v57 = vld [vmem:[#allocation10 + $0x60] sm:$0xff]  ;;  %v1348_v26 = vld [vmem:[#allocation10 + $0x588] sm:$0xff] }
 0x12d   : > { %1461 = vmatpush.msra.mxu1 %v1279_v35  ;;  %1502 = vmatpush.msra.mxu3 %v1403_v36  ;;  %v1255_v58 = vld [vmem:[#allocation10 + $0x2a0] sm:$0xff]  ;;  %v1292_v27 = vld [vmem:[#allocation10 + $0x3c8] sm:$0xff] }
 0x12e   : > { %1444 = vmatpush.msra.mxu0 %v1203_v37  ;;  %1484 = vmatpush.msra.mxu2 %v1331_v38  ;;  %v1311_v59 = vld [vmem:[#allocation10 + $0x460] sm:$0xff]  ;;  %v1416_v28 = vld [vmem:[#allocation10 + $0x7a8] sm:$0xff] }
 0x12f   : > { %1462 = vmatpush.msra.mxu1 %v1275_v39  ;;  %1503 = vmatpush.msra.mxu3 %v1399_v40  ;;  %v1379_v60 = vld [vmem:[#allocation10 + $0x680] sm:$0xff]  ;;  %v1216_v29 = vld [vmem:[#allocation10 + $0x168] sm:$0xff] }
 0x130   : > { %1445 = vmatpush.msra.mxu0 %v1199_v41  ;;  %1485 = vmatpush.msra.mxu2 %v1327_v42  ;;  %v1179_v63 = vld [vmem:[#allocation10 + $0x40] sm:$0xff]  ;;  %v1344_v30 = vld [vmem:[#allocation10 + $0x568] sm:$0xff] }
 0x131   : > { %1463 = vmatpush.msra.mxu1 %v1271_v43  ;;  %1504 = vmatpush.msra.mxu3 %v1395_v44  ;;  %v1251_v0 = vld [vmem:[#allocation10 + $0x280] sm:$0xff]  ;;  %v1288_v31 = vld [vmem:[#allocation10 + $0x3a8] sm:$0xff] }
 0x132   : > { %1446 = vmatpush.msra.mxu0 %v1195_v45  ;;  %1486 = vmatpush.msra.mxu2 %v1323_v46  ;;  %v1307_v1 = vld [vmem:[#allocation10 + $0x440] sm:$0xff]  ;;  %v1412_v32 = vld [vmem:[#allocation10 + $0x788] sm:$0xff] }
 0x133   : > { %1464 = vmatpush.msra.mxu1 %v1267_v47  ;;  %1505 = vmatpush.msra.mxu3 %v1391_v48  ;;  %v1375_v2 = vld [vmem:[#allocation10 + $0x660] sm:$0xff]  ;;  %v1212_v33 = vld [vmem:[#allocation10 + $0x148] sm:$0xff] }
 0x134   : > { %1447 = vmatpush.msra.mxu0 %v1191_v49  ;;  %1487 = vmatpush.msra.mxu2 %v1319_v50  ;;  %v1175_v4 = vld [vmem:[#allocation10 + $0x20] sm:$0xff]  ;;  %v1340_v34 = vld [vmem:[#allocation10 + $0x548] sm:$0xff] }
 0x135   : > { %1465 = vmatpush.msra.mxu1 %v1263_v51  ;;  %1506 = vmatpush.msra.mxu3 %v1387_v52  ;;  %v1247_v5 = vld [vmem:[#allocation10 + $0x260] sm:$0xff]  ;;  %v1284_v35 = vld [vmem:[#allocation10 + $0x388] sm:$0xff] }
 0x136   : > { %1448 = vmatpush.msra.mxu0 %v1187_v53  ;;  %1488 = vmatpush.msra.mxu2 %v1315_v54  ;;  %v1303_v6 = vld [vmem:[#allocation10 + $0x420] sm:$0xff]  ;;  %v1408_v36 = vld [vmem:[#allocation10 + $0x768] sm:$0xff] }
 0x137   : > { %1466 = vmatpush.msra.mxu1 %v1259_v55  ;;  %1507 = vmatpush.msra.mxu3 %v1383_v56  ;;  %v1171_v7 = vld [vmem:[#allocation10] sm:$0xff]  ;;  %v1208_v37 = vld [vmem:[#allocation10 + $0x128] sm:$0xff] }
 0x138   : > { %1143 = vmatmul.f32.vlgmr.msrb.gmra.mxu2 %v4639_v62  ;;  %1449 = vmatpush.msra.mxu0 %v1183_v57  ;;  %v1371_v62 = vld [vmem:[#allocation10 + $0x640] sm:$0xff]  ;;  %v1336_v38 = vld [vmem:[#allocation10 + $0x528] sm:$0xff] }
 0x139   : > { %1467 = vmatpush.msra.mxu1 %v1255_v58  ;;  %1489 = vmatpush.msra.mxu2 %v1311_v59  ;;  %v1243_v8 = vld [vmem:[#allocation10 + $0x240] sm:$0xff]  ;;  %v1280_v39 = vld [vmem:[#allocation10 + $0x368] sm:$0xff] }
 0x13a   : > { %1508 = vmatpush.msra.mxu3 %v1379_v60  ;;  %1103 = vmatmul.f32.vlgmr.msrb.gmra.mxu0 %v4636_v61  ;;  %v1299_v61 = vld [vmem:[#allocation10 + $0x400] sm:$0xff]  ;;  %v1404_v40 = vld [vmem:[#allocation10 + $0x748] sm:$0xff] }
 0x13b   : > { %1163 = vmatmul.f32.vlgmr.msrb.gmra.mxu3 %v4644_v3  ;;  %1450 = vmatpush.msra.mxu0 %v1179_v63  ;;  %v1367_v10 = vld [vmem:[#allocation10 + $0x620] sm:$0xff]  ;;  %v4664_v3 = vld [vmem:[%s4614_s27 + $0x10] sm:$0xff]  ;;  %v1204_v41 = vld [vmem:[#allocation10 + $0x108] sm:$0xff] }
 0x13c   : > { %1468 = vmatpush.msra.mxu1 %v1251_v0  ;;  %1490 = vmatpush.msra.mxu2 %v1307_v1  ;;  %v1239_v13 = vld [vmem:[#allocation10 + $0x220] sm:$0xff]  ;;  %v1332_v42 = vld [vmem:[#allocation10 + $0x508] sm:$0xff] }
 0x13d   : > { %1509 = vmatpush.msra.mxu3 %v1375_v2  ;;  %1123 = vmatmul.f32.vlgmr.msrb.gmra.mxu1 %v4648_v9  ;;  %v1363_v9 = vld [vmem:[#allocation10 + $0x600] sm:$0xff]  ;;  %v1276_v43 = vld [vmem:[#allocation10 + $0x348] sm:$0xff] }
 0x13e   : > { %1451 = vmatpush.msra.mxu0 %v1175_v4  ;;  %1469 = vmatpush.msra.mxu1 %v1247_v5  ;;  %v4667_v14 = vld [vmem:[%s4614_s27] sm:$0xff]  ;;  %v1400_v44 = vld [vmem:[#allocation10 + $0x728] sm:$0xff] }
 0x13f   : > { %1491 = vmatpush.msra.mxu2 %v1303_v6  ;;  %1510 = vmatpush.msra.mxu3 %v1371_v62  ;;  %v1235_v19 = vld [vmem:[#allocation10 + $0x200] sm:$0xff]  ;;  %v1200_v45 = vld [vmem:[#allocation10 + $0xe8] sm:$0xff] }
 0x140   : > { %1452 = vmatpush.msra.mxu0 %v1171_v7  ;;  %1470 = vmatpush.msra.mxu1 %v1243_v8  ;;  %v1328_v46 = vld [vmem:[#allocation10 + $0x4e8] sm:$0xff] }
 0x141   : > { %1492 = vmatpush.msra.mxu2 %v1299_v61  ;;  %1511 = vmatpush.msra.mxu3 %v1367_v10  ;;  %v1272_v47 = vld [vmem:[#allocation10 + $0x328] sm:$0xff] }
 0x142   : > { %1493 = vmatmul.f32.vlgmr.msra.gmra.mxu2 %v4664_v3  ;;  %1517 = vmatpush.msrb.mxu0 %v1232_v11  ;;  %v1396_v48 = vld [vmem:[#allocation10 + $0x708] sm:$0xff] }
 0x143   : > { %1557 = vmatpush.msrb.mxu2 %v1360_v12  ;;  %1471 = vmatpush.msra.mxu1 %v1239_v13  ;;  %v1196_v49 = vld [vmem:[#allocation10 + $0xc8] sm:$0xff] }
 0x144   : > { %1512 = vmatpush.msra.mxu3 %v1363_v9  ;;  %1453 = vmatmul.f32.vlgmr.msra.gmra.mxu0 %v4667_v14  ;;  %v1324_v50 = vld [vmem:[#allocation10 + $0x4c8] sm:$0xff] }
 0x145   : > { %1513 = vmatmul.f32.vlgmr.msra.gmra.mxu3 %v4671_v15  ;;  %1518 = vmatpush.msrb.mxu0 %v1228_v16  ;;  %v1268_v51 = vld [vmem:[#allocation10 + $0x308] sm:$0xff]  ;;  %v1233_v16 = vld [vmem:[#allocation10 + $0x1f0] sm:$0xff] }
 0x146   : > { %1558 = vmatpush.msrb.mxu2 %v1356_v17  ;;  %1577 = vmatpush.msrb.mxu3 %v1424_v18  ;;  %v1392_v52 = vld [vmem:[#allocation10 + $0x6e8] sm:$0xff]  ;;  %v1361_v17 = vld [vmem:[#allocation10 + $0x5f0] sm:$0xff] }
 0x147   : > { %1472 = vmatpush.msra.mxu1 %v1235_v19  ;;  %1519 = vmatpush.msrb.mxu0 %v1224_v20  ;;  %v1192_v53 = vld [vmem:[#allocation10 + $0xa8] sm:$0xff]  ;;  %v1229_v20 = vld [vmem:[#allocation10 + $0x1d0] sm:$0xff] }
 0x148   : > { %1473 = vmatmul.f32.vlgmr.msra.gmra.mxu1 %v4676_v21  ;;  %1559 = vmatpush.msrb.mxu2 %v1352_v22  ;;  %v1320_v54 = vld [vmem:[#allocation10 + $0x4a8] sm:$0xff]  ;;  %v1357_v22 = vld [vmem:[#allocation10 + $0x5d0] sm:$0xff] }
 0x149   : > { %1537 = vmatpush.msrb.mxu1 %v1296_v23  ;;  %1578 = vmatpush.msrb.mxu3 %v1420_v24  ;;  %v1264_v55 = vld [vmem:[#allocation10 + $0x2e8] sm:$0xff]  ;;  %v1425_v23 = vld [vmem:[#allocation10 + $0x7f0] sm:$0xff] }
 0x14a   : > { %1520 = vmatpush.msrb.mxu0 %v1220_v25  ;;  %1560 = vmatpush.msrb.mxu2 %v1348_v26  ;;  %v1388_v56 = vld [vmem:[#allocation10 + $0x6c8] sm:$0xff]  ;;  %v1225_v25 = vld [vmem:[#allocation10 + $0x1b0] sm:$0xff] }
 0x14b   : > { %1538 = vmatpush.msrb.mxu1 %v1292_v27  ;;  %1579 = vmatpush.msrb.mxu3 %v1416_v28  ;;  %v1188_v57 = vld [vmem:[#allocation10 + $0x88] sm:$0xff]  ;;  %v1353_v26 = vld [vmem:[#allocation10 + $0x5b0] sm:$0xff] }
 0x14c   : > { %1521 = vmatpush.msrb.mxu0 %v1216_v29  ;;  %1561 = vmatpush.msrb.mxu2 %v1344_v30  ;;  %v1316_v58 = vld [vmem:[#allocation10 + $0x488] sm:$0xff]  ;;  %v1297_v27 = vld [vmem:[#allocation10 + $0x3f0] sm:$0xff] }
 0x14d   : > { %1539 = vmatpush.msrb.mxu1 %v1288_v31  ;;  %1580 = vmatpush.msrb.mxu3 %v1412_v32  ;;  %v1260_v59 = vld [vmem:[#allocation10 + $0x2c8] sm:$0xff]  ;;  %v1421_v28 = vld [vmem:[#allocation10 + $0x7d0] sm:$0xff] }
 0x14e   : > { %1522 = vmatpush.msrb.mxu0 %v1212_v33  ;;  %1562 = vmatpush.msrb.mxu2 %v1340_v34  ;;  %v1384_v60 = vld [vmem:[#allocation10 + $0x6a8] sm:$0xff]  ;;  %v1221_v29 = vld [vmem:[#allocation10 + $0x190] sm:$0xff] }
 0x14f   : > { %1540 = vmatpush.msrb.mxu1 %v1284_v35  ;;  %1581 = vmatpush.msrb.mxu3 %v1408_v36  ;;  %v1184_v63 = vld [vmem:[#allocation10 + $0x68] sm:$0xff]  ;;  %v1349_v30 = vld [vmem:[#allocation10 + $0x590] sm:$0xff] }
 0x150   : > { %1523 = vmatpush.msrb.mxu0 %v1208_v37  ;;  %1563 = vmatpush.msrb.mxu2 %v1336_v38  ;;  %v1312_v0 = vld [vmem:[#allocation10 + $0x468] sm:$0xff]  ;;  %v1293_v31 = vld [vmem:[#allocation10 + $0x3d0] sm:$0xff] }
 0x151   : > { %1541 = vmatpush.msrb.mxu1 %v1280_v39  ;;  %1582 = vmatpush.msrb.mxu3 %v1404_v40  ;;  %v1256_v1 = vld [vmem:[#allocation10 + $0x2a8] sm:$0xff]  ;;  %v1417_v32 = vld [vmem:[#allocation10 + $0x7b0] sm:$0xff] }
 0x152   : > { %1524 = vmatpush.msrb.mxu0 %v1204_v41  ;;  %1564 = vmatpush.msrb.mxu2 %v1332_v42  ;;  %v1380_v2 = vld [vmem:[#allocation10 + $0x688] sm:$0xff]  ;;  %v1217_v33 = vld [vmem:[#allocation10 + $0x170] sm:$0xff] }
 0x153   : > { %1542 = vmatpush.msrb.mxu1 %v1276_v43  ;;  %1583 = vmatpush.msrb.mxu3 %v1400_v44  ;;  %v1180_v4 = vld [vmem:[#allocation10 + $0x48] sm:$0xff]  ;;  %v1345_v34 = vld [vmem:[#allocation10 + $0x570] sm:$0xff] }
 0x154   : > { %1525 = vmatpush.msrb.mxu0 %v1200_v45  ;;  %1565 = vmatpush.msrb.mxu2 %v1328_v46  ;;  %v1308_v5 = vld [vmem:[#allocation10 + $0x448] sm:$0xff]  ;;  %v1289_v35 = vld [vmem:[#allocation10 + $0x3b0] sm:$0xff] }
 0x155   : > { %1543 = vmatpush.msrb.mxu1 %v1272_v47  ;;  %1584 = vmatpush.msrb.mxu3 %v1396_v48  ;;  %v1252_v6 = vld [vmem:[#allocation10 + $0x288] sm:$0xff]  ;;  %v1413_v36 = vld [vmem:[#allocation10 + $0x790] sm:$0xff] }
 0x156   : > { %1526 = vmatpush.msrb.mxu0 %v1196_v49  ;;  %1566 = vmatpush.msrb.mxu2 %v1324_v50  ;;  %v1376_v62 = vld [vmem:[#allocation10 + $0x668] sm:$0xff]  ;;  %v1213_v37 = vld [vmem:[#allocation10 + $0x150] sm:$0xff] }
 0x157   : > { %1544 = vmatpush.msrb.mxu1 %v1268_v51  ;;  %1585 = vmatpush.msrb.mxu3 %v1392_v52  ;;  %v1176_v7 = vld [vmem:[#allocation10 + $0x28] sm:$0xff]  ;;  %v1341_v38 = vld [vmem:[#allocation10 + $0x550] sm:$0xff]  ;;  %v4683_v45 = vpop.f32.mrf.mxu0 }
 0x158   : > { %1527 = vmatpush.msrb.mxu0 %v1192_v53  ;;  %1567 = vmatpush.msrb.mxu2 %v1320_v54  ;;  %v1304_v8 = vld [vmem:[#allocation10 + $0x428] sm:$0xff]  ;;  %v1285_v39 = vld [vmem:[#allocation10 + $0x390] sm:$0xff] }
 0x159   : > { %1545 = vmatpush.msrb.mxu1 %v1264_v55  ;;  %1586 = vmatpush.msrb.mxu3 %v1388_v56  ;;  %v1248_v61 = vld [vmem:[#allocation10 + $0x268] sm:$0xff]  ;;  %v1409_v40 = vld [vmem:[#allocation10 + $0x770] sm:$0xff] }
 0x15a   : > { %1528 = vmatpush.msrb.mxu0 %v1188_v57  ;;  %1568 = vmatpush.msrb.mxu2 %v1316_v58  ;;  %v1372_v10 = vld [vmem:[#allocation10 + $0x648] sm:$0xff]  ;;  %v1209_v41 = vld [vmem:[#allocation10 + $0x130] sm:$0xff]  ;;  %v4688_v58 = vld [vmem:[%s4984_s7] sm:$0xf] }
 0x15b   : > { %1546 = vmatpush.msrb.mxu1 %v1260_v59  ;;  %1587 = vmatpush.msrb.mxu3 %v1384_v60  ;;  %v1172_v11 = vld [vmem:[#allocation10 + $0x8] sm:$0xff]  ;;  %v1337_v42 = vld [vmem:[#allocation10 + $0x530] sm:$0xff] }
 0x15c   : > { %1529 = vmatpush.msrb.mxu0 %v1184_v63  ;;  %1569 = vmatpush.msrb.mxu2 %v1312_v0  ;;  %v1300_v12 = vld [vmem:[#allocation10 + $0x408] sm:$0xff]  ;;  %v1281_v43 = vld [vmem:[#allocation10 + $0x370] sm:$0xff] }
 0x15d   : > { %1547 = vmatpush.msrb.mxu1 %v1256_v1  ;;  %1588 = vmatpush.msrb.mxu3 %v1380_v2  ;;  %v1244_v13 = vld [vmem:[#allocation10 + $0x248] sm:$0xff]  ;;  %v1405_v44 = vld [vmem:[#allocation10 + $0x750] sm:$0xff]  ;;  %v4690_v59 = vpop.f32.mrf.mxu1  ;;  %v4692_v60 = vpop.f32.mrf.mxu2 }
 0x15e   : > { %1530 = vmatpush.msrb.mxu0 %v1180_v4  ;;  %1570 = vmatpush.msrb.mxu2 %v1308_v5  ;;  %v1368_v9 = vld [vmem:[#allocation10 + $0x628] sm:$0xff]  ;;  %v1205_v46 = vld [vmem:[#allocation10 + $0x110] sm:$0xff]  ;;  %v840_v4 = vperm.slane %v4688_v58, 1 }
 0x15f   : > { %1548 = vmatpush.msrb.mxu1 %v1252_v6  ;;  %1589 = vmatpush.msrb.mxu3 %v1376_v62  ;;  %v1240_v18 = vld [vmem:[#allocation10 + $0x228] sm:$0xff]  ;;  %v1333_v47 = vld [vmem:[#allocation10 + $0x510] sm:$0xff] }
 0x160   : > { %1531 = vmatpush.msrb.mxu0 %v1176_v7  ;;  %1571 = vmatpush.msrb.mxu2 %v1304_v8  ;;  %v1364_v19 = vld [vmem:[#allocation10 + $0x608] sm:$0xff]  ;;  %v1277_v48 = vld [vmem:[#allocation10 + $0x350] sm:$0xff]  ;;  %v4695_v7 = vpop.f32.mrf.mxu3 }
 0x161   : > { %1549 = vmatpush.msrb.mxu1 %v1248_v61  ;;  %1590 = vmatpush.msrb.mxu3 %v1372_v10  ;;  %v1236_v24 = vld [vmem:[#allocation10 + $0x208] sm:$0xff]  ;;  %v1401_v49 = vld [vmem:[#allocation10 + $0x730] sm:$0xff] }
 0x162   : > { %1532 = vmatpush.msrb.mxu0 %v1172_v11  ;;  %1572 = vmatpush.msrb.mxu2 %v1300_v12  ;;  %v1201_v50 = vld [vmem:[#allocation10 + $0xf0] sm:$0xff] }
 0x163   : > { %1550 = vmatpush.msrb.mxu1 %v1244_v13  ;;  %1591 = vmatpush.msrb.mxu3 %v1368_v9  ;;  %v1329_v51 = vld [vmem:[#allocation10 + $0x4f0] sm:$0xff] }
 0x164   : > { %1573 = vmatmul.f32.vlgmr.msrb.gmra.mxu2 %v4664_v3  ;;  %1597 = vmatpush.msra.mxu0 %v1233_v16  ;;  %v1273_v52 = vld [vmem:[#allocation10 + $0x330] sm:$0xff] }
 0x165   : > { %1637 = vmatpush.msra.mxu2 %v1361_v17  ;;  %1551 = vmatpush.msrb.mxu1 %v1240_v18  ;;  %v1397_v53 = vld [vmem:[#allocation10 + $0x710] sm:$0xff] }
 0x166   : > { %1592 = vmatpush.msrb.mxu3 %v1364_v19  ;;  %1533 = vmatmul.f32.vlgmr.msrb.gmra.mxu0 %v4667_v14  ;;  %v1197_v54 = vld [vmem:[#allocation10 + $0xd0] sm:$0xff] }
 0x167   : > { %1593 = vmatmul.f32.vlgmr.msrb.gmra.mxu3 %v4671_v15  ;;  %1598 = vmatpush.msra.mxu0 %v1229_v20  ;;  %v1325_v55 = vld [vmem:[#allocation10 + $0x4d0] sm:$0xff] }
 0x168   : > { %1638 = vmatpush.msra.mxu2 %v1357_v22  ;;  %1657 = vmatpush.msra.mxu3 %v1425_v23  ;;  %v1269_v56 = vld [vmem:[#allocation10 + $0x310] sm:$0xff] }
 0x169   : > { %1552 = vmatpush.msrb.mxu1 %v1236_v24  ;;  %1599 = vmatpush.msra.mxu0 %v1225_v25  ;;  %v1393_v57 = vld [vmem:[#allocation10 + $0x6f0] sm:$0xff] }
 0x16a   : > { %1553 = vmatmul.f32.vlgmr.msrb.gmra.mxu1 %v4676_v21  ;;  %1639 = vmatpush.msra.mxu2 %v1353_v26  ;;  %v1193_v63 = vld [vmem:[#allocation10 + $0xb0] sm:$0xff] }
 0x16b   : > { %1617 = vmatpush.msra.mxu1 %v1297_v27  ;;  %1658 = vmatpush.msra.mxu3 %v1421_v28  ;;  %v1321_v0 = vld [vmem:[#allocation10 + $0x4b0] sm:$0xff] }
 0x16c   : > { %1600 = vmatpush.msra.mxu0 %v1221_v29  ;;  %1640 = vmatpush.msra.mxu2 %v1349_v30  ;;  %v1265_v1 = vld [vmem:[#allocation10 + $0x2f0] sm:$0xff] }
 0x16d   : > { %1618 = vmatpush.msra.mxu1 %v1293_v31  ;;  %1659 = vmatpush.msra.mxu3 %v1417_v32  ;;  %v1389_v2 = vld [vmem:[#allocation10 + $0x6d0] sm:$0xff] }
 0x16e   : > { %1601 = vmatpush.msra.mxu0 %v1217_v33  ;;  %1641 = vmatpush.msra.mxu2 %v1345_v34  ;;  %v1189_v5 = vld [vmem:[#allocation10 + $0x90] sm:$0xff]  ;;  %v1234_v34 = vld [vmem:[#allocation10 + $0x1f8] sm:$0xff] }
 0x16f   : > { %1619 = vmatpush.msra.mxu1 %v1289_v35  ;;  %1660 = vmatpush.msra.mxu3 %v1413_v36  ;;  %v1317_v6 = vld [vmem:[#allocation10 + $0x490] sm:$0xff]  ;;  %v1362_v35 = vld [vmem:[#allocation10 + $0x5f8] sm:$0xff] }
 0x170   : > { %1602 = vmatpush.msra.mxu0 %v1213_v37  ;;  %1642 = vmatpush.msra.mxu2 %v1341_v38  ;;  %v1261_v8 = vld [vmem:[#allocation10 + $0x2d0] sm:$0xff] }
 0x171   : > { %1620 = vmatpush.msra.mxu1 %v1285_v39  ;;  %1661 = vmatpush.msra.mxu3 %v1409_v40  ;;  %v1385_v61 = vld [vmem:[#allocation10 + $0x6b0] sm:$0xff]  ;;  %v1230_v39 = vld [vmem:[#allocation10 + $0x1d8] sm:$0xff] }
 0x172   : > { %1603 = vmatpush.msra.mxu0 %v1209_v41  ;;  %1643 = vmatpush.msra.mxu2 %v1337_v42  ;;  %v1185_v10 = vld [vmem:[#allocation10 + $0x70] sm:$0xff]  ;;  %v1358_v40 = vld [vmem:[#allocation10 + $0x5d8] sm:$0xff] }
 0x173   : > { %1621 = vmatpush.msra.mxu1 %v1281_v43  ;;  %1662 = vmatpush.msra.mxu3 %v1405_v44  ;;  %v1313_v11 = vld [vmem:[#allocation10 + $0x470] sm:$0xff]  ;;  %v1426_v41 = vld [vmem:[#allocation10 + $0x7f8] sm:$0xff] }
 0x174   : > { %1604 = vmatpush.msra.mxu0 %v1205_v46  ;;  %1644 = vmatpush.msra.mxu2 %v1333_v47  ;;  %v1257_v12 = vld [vmem:[#allocation10 + $0x2b0] sm:$0xff]  ;;  %v1226_v43 = vld [vmem:[#allocation10 + $0x1b8] sm:$0xff] }
 0x175   : > { %1622 = vmatpush.msra.mxu1 %v1277_v48  ;;  %1663 = vmatpush.msra.mxu3 %v1401_v49  ;;  %v1381_v13 = vld [vmem:[#allocation10 + $0x690] sm:$0xff]  ;;  %v1354_v44 = vld [vmem:[#allocation10 + $0x5b8] sm:$0xff] }
 0x176   : > { %1605 = vmatpush.msra.mxu0 %v1201_v50  ;;  %1645 = vmatpush.msra.mxu2 %v1329_v51  ;;  %v1181_v16 = vld [vmem:[#allocation10 + $0x50] sm:$0xff]  ;;  %v1298_v46 = vld [vmem:[#allocation10 + $0x3f8] sm:$0xff] }
 0x177   : > { %1623 = vmatpush.msra.mxu1 %v1273_v52  ;;  %1664 = vmatpush.msra.mxu3 %v1397_v53  ;;  %v1309_v17 = vld [vmem:[#allocation10 + $0x450] sm:$0xff]  ;;  %v1422_v47 = vld [vmem:[#allocation10 + $0x7d8] sm:$0xff] }
 0x178   : > { %1606 = vmatpush.msra.mxu0 %v1197_v54  ;;  %1646 = vmatpush.msra.mxu2 %v1325_v55  ;;  %v1253_v18 = vld [vmem:[#allocation10 + $0x290] sm:$0xff]  ;;  %v1222_v48 = vld [vmem:[#allocation10 + $0x198] sm:$0xff] }
 0x179   : > { %1624 = vmatpush.msra.mxu1 %v1269_v56  ;;  %1665 = vmatpush.msra.mxu3 %v1393_v57  ;;  %v944_v62 = vpop.f32.mrf.mxu0  ;;  %v1377_v19 = vld [vmem:[#allocation10 + $0x670] sm:$0xff]  ;;  %v1350_v49 = vld [vmem:[#allocation10 + $0x598] sm:$0xff] }
 0x17a   : > { %1607 = vmatpush.msra.mxu0 %v1193_v63  ;;  %1647 = vmatpush.msra.mxu2 %v1321_v0  ;;  %v945_v9 = vadd.f32 %v944_v62, %v840_v4  ;;  %v1177_v20 = vld [vmem:[#allocation10 + $0x30] sm:$0xff]  ;;  %v1294_v50 = vld [vmem:[#allocation10 + $0x3d8] sm:$0xff] }
 0x17b   : > { %1625 = vmatpush.msra.mxu1 %v1265_v1  ;;  %1666 = vmatpush.msra.mxu3 %v1389_v2  ;;  %v1305_v22 = vld [vmem:[#allocation10 + $0x430] sm:$0xff]  ;;  %v1418_v51 = vld [vmem:[#allocation10 + $0x7b8] sm:$0xff] }
 0x17c   : > { %1608 = vmatpush.msra.mxu0 %v1189_v5  ;;  %1648 = vmatpush.msra.mxu2 %v1317_v6  ;;  %v1249_v25 = vld [vmem:[#allocation10 + $0x270] sm:$0xff]  ;;  %v1218_v52 = vld [vmem:[#allocation10 + $0x178] sm:$0xff] }
 0x17d   : > { %1626 = vmatpush.msra.mxu1 %v1261_v8  ;;  %1667 = vmatpush.msra.mxu3 %v1385_v61  ;;  %v1373_v26 = vld [vmem:[#allocation10 + $0x650] sm:$0xff]  ;;  %v1346_v53 = vld [vmem:[#allocation10 + $0x578] sm:$0xff] }
 0x17e   : > { %1609 = vmatpush.msra.mxu0 %v1185_v10  ;;  %1649 = vmatpush.msra.mxu2 %v1313_v11  ;;  %v1173_v28 = vld [vmem:[#allocation10 + $0x10] sm:$0xff]  ;;  %v1290_v54 = vld [vmem:[#allocation10 + $0x3b8] sm:$0xff] }
 0x17f   : > { %1627 = vmatpush.msra.mxu1 %v1257_v12  ;;  %1668 = vmatpush.msra.mxu3 %v1381_v13  ;;  %v964_v23 = vpop.f32.mrf.mxu1  ;;  %v984_v24 = vpop.f32.mrf.mxu2  ;;  %v1301_v29 = vld [vmem:[#allocation10 + $0x410] sm:$0xff]  ;;  %v1414_v55 = vld [vmem:[#allocation10 + $0x798] sm:$0xff] }
 0x180   : > { %1610 = vmatpush.msra.mxu0 %v1181_v16  ;;  %1650 = vmatpush.msra.mxu2 %v1309_v17  ;;  %v965_v27 = vadd.f32 %v964_v23, %v945_v9  ;;  %v1245_v30 = vld [vmem:[#allocation10 + $0x250] sm:$0xff]  ;;  %v1214_v56 = vld [vmem:[#allocation10 + $0x158] sm:$0xff] }
 0x181   : > { %1628 = vmatpush.msra.mxu1 %v1253_v18  ;;  %1669 = vmatpush.msra.mxu3 %v1377_v19  ;;  %v1369_v31 = vld [vmem:[#allocation10 + $0x630] sm:$0xff]  ;;  %v1342_v57 = vld [vmem:[#allocation10 + $0x558] sm:$0xff] }
 0x182   : > { %1611 = vmatpush.msra.mxu0 %v1177_v20  ;;  %1651 = vmatpush.msra.mxu2 %v1305_v22  ;;  %v985_v32 = vadd.f32 %v984_v24, %v965_v27  ;;  %v1004_v33 = vpop.f32.mrf.mxu3  ;;  %v1241_v36 = vld [vmem:[#allocation10 + $0x230] sm:$0xff]  ;;  %v1286_v63 = vld [vmem:[#allocation10 + $0x398] sm:$0xff]  ;;  %v841_v24 = vperm.slane %v4688_v58, 2 }
 0x183   : > { %1629 = vmatpush.msra.mxu1 %v1249_v25  ;;  %1670 = vmatpush.msra.mxu3 %v1373_v26  ;;  %v1365_v38 = vld [vmem:[#allocation10 + $0x610] sm:$0xff]  ;;  %v1410_v0 = vld [vmem:[#allocation10 + $0x778] sm:$0xff] }
 0x184   : > { %1612 = vmatpush.msra.mxu0 %v1173_v28  ;;  %1652 = vmatpush.msra.mxu2 %v1301_v29  ;;  %v4697_v37 = vadd.f32 %v1004_v33, %v985_v32  ;;  %v1237_v42 = vld [vmem:[#allocation10 + $0x210] sm:$0xff]  ;;  %v1210_v1 = vld [vmem:[#allocation10 + $0x138] sm:$0xff] }
 0x185   : > { %1630 = vmatpush.msra.mxu1 %v1245_v30  ;;  %1671 = vmatpush.msra.mxu3 %v1369_v31  ;;  %v1338_v2 = vld [vmem:[#allocation10 + $0x538] sm:$0xff] }
 0x186   : > { %1653 = vmatmul.f32.vlgmr.msra.gmra.mxu2 %v4664_v3  ;;  %1677 = vmatpush.msrb.mxu0 %v1234_v34  ;;  %v1282_v4 = vld [vmem:[#allocation10 + $0x378] sm:$0xff] }
 0x187   : > { %1717 = vmatpush.msrb.mxu2 %v1362_v35  ;;  %1631 = vmatpush.msra.mxu1 %v1241_v36  ;;  %v1406_v5 = vld [vmem:[#allocation10 + $0x758] sm:$0xff] }
 0x188   : > { %1672 = vmatpush.msra.mxu3 %v1365_v38  ;;  %1613 = vmatmul.f32.vlgmr.msra.gmra.mxu0 %v4667_v14  ;;  %v1206_v6 = vld [vmem:[#allocation10 + $0x118] sm:$0xff] }
 0x189   : > { %1673 = vmatmul.f32.vlgmr.msra.gmra.mxu3 %v4671_v15  ;;  %1678 = vmatpush.msrb.mxu0 %v1230_v39  ;;  %v1334_v62 = vld [vmem:[#allocation10 + $0x518] sm:$0xff] }
 0x18a   : > { %1718 = vmatpush.msrb.mxu2 %v1358_v40  ;;  %1737 = vmatpush.msrb.mxu3 %v1426_v41  ;;  %v1278_v8 = vld [vmem:[#allocation10 + $0x358] sm:$0xff] }
 0x18b   : > { %1632 = vmatpush.msra.mxu1 %v1237_v42  ;;  %1679 = vmatpush.msrb.mxu0 %v1226_v43  ;;  %v1402_v61 = vld [vmem:[#allocation10 + $0x738] sm:$0xff] }
 0x18c   : > { %1633 = vmatmul.f32.vlgmr.msra.gmra.mxu1 %v4676_v21  ;;  %1719 = vmatpush.msrb.mxu2 %v1354_v44  ;;  %v1202_v10 = vld [vmem:[#allocation10 + $0xf8] sm:$0xff] }
 0x18d   : > { %1697 = vmatpush.msrb.mxu1 %v1298_v46  ;;  %1738 = vmatpush.msrb.mxu3 %v1422_v47  ;;  %v1330_v11 = vld [vmem:[#allocation10 + $0x4f8] sm:$0xff] }
 0x18e   : > { %1680 = vmatpush.msrb.mxu0 %v1222_v48  ;;  %1720 = vmatpush.msrb.mxu2 %v1350_v49  ;;  %v1274_v12 = vld [vmem:[#allocation10 + $0x338] sm:$0xff] }
 0x18f   : > { %1698 = vmatpush.msrb.mxu1 %v1294_v50  ;;  %1739 = vmatpush.msrb.mxu3 %v1418_v51  ;;  %v1398_v13 = vld [vmem:[#allocation10 + $0x718] sm:$0xff] }
 0x190   : > { %1681 = vmatpush.msrb.mxu0 %v1218_v52  ;;  %1721 = vmatpush.msrb.mxu2 %v1346_v53  ;;  %v1198_v9 = vld [vmem:[#allocation10 + $0xd8] sm:$0xff] }
 0x191   : > { %1699 = vmatpush.msrb.mxu1 %v1290_v54  ;;  %1740 = vmatpush.msrb.mxu3 %v1414_v55  ;;  %v1326_v16 = vld [vmem:[#allocation10 + $0x4d8] sm:$0xff]  ;;  %v1821_v54 = vld [vmem:[#allocation11 + $0x1e0] sm:$0xff] }
 0x192   : > { %1682 = vmatpush.msrb.mxu0 %v1214_v56  ;;  %1722 = vmatpush.msrb.mxu2 %v1342_v57  ;;  %v1270_v17 = vld [vmem:[#allocation10 + $0x318] sm:$0xff] }
 0x193   : > { %1700 = vmatpush.msrb.mxu1 %v1286_v63  ;;  %1741 = vmatpush.msrb.mxu3 %v1410_v0  ;;  %v1394_v18 = vld [vmem:[#allocation10 + $0x6f8] sm:$0xff]  ;;  %v1817_v63 = vld [vmem:[#allocation11 + $0x1c0] sm:$0xff] }
 0x194   : > { %1683 = vmatpush.msrb.mxu0 %v1210_v1  ;;  %1723 = vmatpush.msrb.mxu2 %v1338_v2  ;;  %v1194_v19 = vld [vmem:[#allocation10 + $0xb8] sm:$0xff]  ;;  %v1813_v1 = vld [vmem:[#allocation11 + $0x1a0] sm:$0xff] }
 0x195   : > { %1701 = vmatpush.msrb.mxu1 %v1282_v4  ;;  %1742 = vmatpush.msrb.mxu3 %v1406_v5  ;;  %v1322_v20 = vld [vmem:[#allocation10 + $0x4b8] sm:$0xff]  ;;  %v1949_v2 = vld [vmem:[#allocation11 + $0x5e0] sm:$0xff] }
 0x196   : > { %1684 = vmatpush.msrb.mxu0 %v1206_v6  ;;  %1724 = vmatpush.msrb.mxu2 %v1334_v62  ;;  %v1266_v22 = vld [vmem:[#allocation10 + $0x2f8] sm:$0xff]  ;;  %v1809_v4 = vld [vmem:[#allocation11 + $0x180] sm:$0xff] }
 0x197   : > { %1702 = vmatpush.msrb.mxu1 %v1278_v8  ;;  %1743 = vmatpush.msrb.mxu3 %v1402_v61  ;;  %v1390_v23 = vld [vmem:[#allocation10 + $0x6d8] sm:$0xff]  ;;  %v1945_v5 = vld [vmem:[#allocation11 + $0x5c0] sm:$0xff] }
 0x198   : > { %1685 = vmatpush.msrb.mxu0 %v1202_v10  ;;  %1725 = vmatpush.msrb.mxu2 %v1330_v11  ;;  %v1190_v25 = vld [vmem:[#allocation10 + $0x98] sm:$0xff]  ;;  %v1941_v6 = vld [vmem:[#allocation11 + $0x5a0] sm:$0xff] }
 0x199   : > { %1703 = vmatpush.msrb.mxu1 %v1274_v12  ;;  %1744 = vmatpush.msrb.mxu3 %v1398_v13  ;;  %v1318_v26 = vld [vmem:[#allocation10 + $0x498] sm:$0xff]  ;;  %v1801_v62 = vld [vmem:[#allocation11 + $0x140] sm:$0xff] }
 0x19a   : > { %1686 = vmatpush.msrb.mxu0 %v1198_v9  ;;  %1726 = vmatpush.msrb.mxu2 %v1326_v16  ;;  %v1262_v28 = vld [vmem:[#allocation10 + $0x2d8] sm:$0xff]  ;;  %v1937_v8 = vld [vmem:[#allocation11 + $0x580] sm:$0xff] }
 0x19b   : > { %1704 = vmatpush.msrb.mxu1 %v1270_v17  ;;  %1745 = vmatpush.msrb.mxu3 %v1394_v18  ;;  %v1024_v27 = vpop.f32.mrf.mxu0  ;;  %v1386_v29 = vld [vmem:[#allocation10 + $0x6b8] sm:$0xff]  ;;  %v1793_v61 = vld [vmem:[#allocation11 + $0x100] sm:$0xff] }
 0x19c   : > { %1687 = vmatpush.msrb.mxu0 %v1194_v19  ;;  %1727 = vmatpush.msrb.mxu2 %v1322_v20  ;;  %v1186_v30 = vld [vmem:[#allocation10 + $0x78] sm:$0xff]  ;;  %v1025_v34 = vadd.f32 %v1024_v27, %v841_v24  ;;  %v1929_v10 = vld [vmem:[#allocation11 + $0x540] sm:$0xff]  ;;  %v839_v24 = vperm.slane %v4688_v58, 0 }
 0x19d   : > { %1705 = vmatpush.msrb.mxu1 %v1266_v22  ;;  %1746 = vmatpush.msrb.mxu3 %v1390_v23  ;;  %v1314_v31 = vld [vmem:[#allocation10 + $0x478] sm:$0xff]  ;;  %v1925_v11 = vld [vmem:[#allocation11 + $0x520] sm:$0xff] }
 0x19e   : > { %1688 = vmatpush.msrb.mxu0 %v1190_v25  ;;  %1728 = vmatpush.msrb.mxu2 %v1318_v26  ;;  %v1258_v32 = vld [vmem:[#allocation10 + $0x2b8] sm:$0xff]  ;;  %v1785_v13 = vld [vmem:[#allocation11 + $0xc0] sm:$0xff] }
 0x19f   : > { %v1382_v33 = vld [vmem:[#allocation10 + $0x698] sm:$0xff]  ;;  %1706 = vmatpush.msrb.mxu1 %v1262_v28  ;;  %1747 = vmatpush.msrb.mxu3 %v1386_v29  ;;  %v1921_v9 = vld [vmem:[#allocation11 + $0x500] sm:$0xff] }
 0x1a0   : > { %v1182_v35 = vld [vmem:[#allocation10 + $0x58] sm:$0xff]  ;;  %1689 = vmatpush.msrb.mxu0 %v1186_v30  ;;  %1729 = vmatpush.msrb.mxu2 %v1314_v31  ;;  %v1781_v16 = vld [vmem:[#allocation11 + $0xa0] sm:$0xff] }
 0x1a1   : > { %v1310_v36 = vld [vmem:[#allocation10 + $0x458] sm:$0xff]  ;;  %1707 = vmatpush.msrb.mxu1 %v1258_v32  ;;  %1748 = vmatpush.msrb.mxu3 %v1382_v33  ;;  %v1044_v42 = vpop.f32.mrf.mxu1  ;;  %v1064_v43 = vpop.f32.mrf.mxu2  ;;  %v1917_v17 = vld [vmem:[#allocation11 + $0x4e0] sm:$0xff]  ;;  %v865_v32 = vadd.f32 %v4683_v45, %v839_v24  ;;  %v1762_v24 = vld [vmem:[#allocation11 + $0x8] sm:$0xff] }
 0x1a2   : > { %v1254_v38 = vld [vmem:[#allocation10 + $0x298] sm:$0xff]  ;;  %1690 = vmatpush.msrb.mxu0 %v1182_v35  ;;  %1730 = vmatpush.msrb.mxu2 %v1310_v36  ;;  %v1045_v47 = vadd.f32 %v1044_v42, %v1025_v34  ;;  %v4716_v20 = vld [vmem:[#allocation14] sm:$0xf] }
 0x1a3   : > { %v1378_v39 = vld [vmem:[#allocation10 + $0x678] sm:$0xff]  ;;  %1708 = vmatpush.msrb.mxu1 %v1254_v38  ;;  %v1777_v22 = vld [vmem:[#allocation11 + $0x80] sm:$0xff]  ;;  %v1429_v27 = vperm.slane %v4716_v20, 0  ;;  %v885_v42 = vadd.f32 %v4690_v59, %v865_v32 }
 0x1a4   : > { %v1178_v40 = vld [vmem:[#allocation10 + $0x38] sm:$0xff]  ;;  %1749 = vmatpush.msrb.mxu3 %v1378_v39  ;;  %v1065_v52 = vadd.f32 %v1064_v43, %v1045_v47  ;;  %v1084_v53 = vpop.f32.mrf.mxu3  ;;  %v1913_v23 = vld [vmem:[#allocation11 + $0x4c0] sm:$0xff]  ;;  %v1822_v39 = vld [vmem:[#allocation11 + $0x1e8] sm:$0xff] }
 0x1a5   : > { %v1306_v41 = vld [vmem:[#allocation10 + $0x438] sm:$0xff]  ;;  %1691 = vmatpush.msrb.mxu0 %v1178_v40  ;;  %v1773_v25 = vld [vmem:[#allocation11 + $0x60] sm:$0xff] }
 0x1a6   : > { %v1250_v44 = vld [vmem:[#allocation10 + $0x278] sm:$0xff]  ;;  %1731 = vmatpush.msrb.mxu2 %v1306_v41  ;;  %v4704_v57 = vadd.f32 %v1084_v53, %v1065_v52  ;;  %v1909_v28 = vld [vmem:[#allocation11 + $0x4a0] sm:$0xff]  ;;  %v905_v52 = vadd.f32 %v4692_v60, %v885_v42  ;;  %v1810_v53 = vld [vmem:[#allocation11 + $0x188] sm:$0xff]  ;;  %v842_v42 = vperm.slane %v4688_v58, 3 }
 0x1a7   : > { %v1374_v46 = vld [vmem:[#allocation10 + $0x658] sm:$0xff]  ;;  %1709 = vmatpush.msrb.mxu1 %v1250_v44  ;;  %v1769_v29 = vld [vmem:[#allocation11 + $0x40] sm:$0xff]  ;;  %v1938_v60 = vld [vmem:[#allocation11 + $0x588] sm:$0xff] }
 0x1a8   : > { %v1174_v48 = vld [vmem:[#allocation10 + $0x18] sm:$0xff]  ;;  %1750 = vmatpush.msrb.mxu3 %v1374_v46  ;;  %v1905_v30 = vld [vmem:[#allocation11 + $0x480] sm:$0xff]  ;;  %v1818_v46 = vld [vmem:[#allocation11 + $0x1c8] sm:$0xff] }
 0x1a9   : > { %v1302_v49 = vld [vmem:[#allocation10 + $0x418] sm:$0xff]  ;;  %1692 = vmatpush.msrb.mxu0 %v1174_v48  ;;  %v1765_v33 = vld [vmem:[#allocation11 + $0x20] sm:$0xff]  ;;  %v1947_v58 = vld [vmem:[#allocation11 + $0x5d0] sm:$0xff] }
 0x1aa   : > { %v1246_v50 = vld [vmem:[#allocation10 + $0x258] sm:$0xff]  ;;  %1732 = vmatpush.msrb.mxu2 %v1302_v49  ;;  %1693 = vmatmul.f32.vlgmr.msrb.gmra.mxu0 %v4667_v14  ;;  %v1797_v14 = vld [vmem:[#allocation11 + $0x120] sm:$0xff] }
 0x1ab   : > { %v1370_v51 = vld [vmem:[#allocation10 + $0x638] sm:$0xff]  ;;  %1710 = vmatpush.msrb.mxu1 %v1246_v50  ;;  %1733 = vmatmul.f32.vlgmr.msrb.gmra.mxu2 %v4664_v3  ;;  %v1805_v3 = vld [vmem:[#allocation11 + $0x160] sm:$0xff]  ;;  %v1814_v50 = vld [vmem:[#allocation11 + $0x1a8] sm:$0xff] }
 0x1ac   : > { %v1242_v55 = vld [vmem:[#allocation10 + $0x238] sm:$0xff]  ;;  %1751 = vmatpush.msrb.mxu3 %v1370_v51  ;;  %2027 = vmatpush.msra.mxu0 %v1821_v54  ;;  %v1901_v35 = vld [vmem:[#allocation11 + $0x460] sm:$0xff]  ;;  %v1950_v51 = vld [vmem:[#allocation11 + $0x5e8] sm:$0xff] }
 0x1ad   : > { %v1366_v56 = vld [vmem:[#allocation10 + $0x618] sm:$0xff]  ;;  %1711 = vmatpush.msrb.mxu1 %v1242_v55  ;;  %2067 = vmatpush.msra.mxu2 %v1949_v2  ;;  %v1761_v36 = vld [vmem:[#allocation11] sm:$0xff]  ;;  %v1946_v54 = vld [vmem:[#allocation11 + $0x5c8] sm:$0xff] }
 0x1ae   : > { %v1238_v0 = vld [vmem:[#allocation10 + $0x218] sm:$0xff]  ;;  %1752 = vmatpush.msrb.mxu3 %v1366_v56  ;;  %2028 = vmatpush.msra.mxu0 %v1817_v63  ;;  %v1897_v38 = vld [vmem:[#allocation11 + $0x440] sm:$0xff]  ;;  %v1806_v55 = vld [vmem:[#allocation11 + $0x168] sm:$0xff]  ;;  %v925_v63 = vadd.f32 %v4695_v7, %v905_v52 }
 0x1af   : > { %1753 = vmatmul.f32.vlgmr.msrb.gmra.mxu3 %v4671_v15  ;;  %1712 = vmatpush.msrb.mxu1 %v1238_v0  ;;  %v1933_v15 = vld [vmem:[#allocation11 + $0x560] sm:$0xff]  ;;  %v1942_v56 = vld [vmem:[#allocation11 + $0x5a8] sm:$0xff] }
 0x1b0   : > { %1713 = vmatmul.f32.vlgmr.msrb.gmra.mxu1 %v4676_v21  ;;  %2029 = vmatpush.msra.mxu0 %v1813_v1  ;;  %v1789_v21 = vld [vmem:[#allocation11 + $0xe0] sm:$0xff]  ;;  %v1802_v0 = vld [vmem:[#allocation11 + $0x148] sm:$0xff] }
 0x1b1   : > { %2068 = vmatpush.msra.mxu2 %v1945_v5  ;;  %v4725_v44 = vld [vmem:[%s4621_s8] sm:$0xff]  ;;  %v1798_v1 = vld [vmem:[#allocation11 + $0x128] sm:$0xff] }
 0x1b2   : > { %2030 = vmatpush.msra.mxu0 %v1809_v4  ;;  %v1893_v45 = vld [vmem:[#allocation11 + $0x420] sm:$0xff]  ;;  %v1934_v2 = vld [vmem:[#allocation11 + $0x568] sm:$0xff]  ;;  %v4734_v4 = vmul.f32 0.125, %v925_v63 }
 0x1b3   : > { %2069 = vmatpush.msra.mxu2 %v1941_v6  ;;  %v1889_v47 = vld [vmem:[#allocation11 + $0x400] sm:$0xff]  ;;  %v1794_v5 = vld [vmem:[#allocation11 + $0x108] sm:$0xff] }
 0x1b4   : > { %2031 = vmatpush.msra.mxu0 %v1805_v3  ;;  %v1930_v3 = vld [vmem:[#allocation11 + $0x548] sm:$0xff]  ;;  %v1881_v32 = vld [vmem:[#allocation11 + $0x3c0] sm:$0xff] }
 0x1b5   : > { %2070 = vmatpush.msra.mxu2 %v1937_v8  ;;  %v1790_v6 = vld [vmem:[#allocation11 + $0xe8] sm:$0xff]  ;;  %v1997_v52 = vld [vmem:[#allocation11 + $0x760] sm:$0xff] }
 0x1b6   : > { %2032 = vmatpush.msra.mxu0 %v1801_v62  ;;  %v1926_v7 = vld [vmem:[#allocation11 + $0x528] sm:$0xff]  ;;  %v1993_v63 = vld [vmem:[#allocation11 + $0x740] sm:$0xff] }
 0x1b7   : > { %2071 = vmatpush.msra.mxu2 %v1933_v15  ;;  %v4710_v12 = vpop.f32.mrf.mxu0  ;;  %v1786_v62 = vld [vmem:[#allocation11 + $0xc8] sm:$0xff] }
 0x1b8   : > { %2033 = vmatpush.msra.mxu0 %v1797_v14  ;;  %v1922_v8 = vld [vmem:[#allocation11 + $0x508] sm:$0xff] }
 0x1b9   : > { %2072 = vmatpush.msra.mxu2 %v1929_v10  ;;  %v1782_v14 = vld [vmem:[#allocation11 + $0xa8] sm:$0xff] }
 0x1ba   : > { %2034 = vmatpush.msra.mxu0 %v1793_v61  ;;  %v4712_v18 = vpop.f32.mrf.mxu1  ;;  %v1918_v15 = vld [vmem:[#allocation11 + $0x4e8] sm:$0xff] }
 0x1bb   : > { %2073 = vmatpush.msra.mxu2 %v1925_v11  ;;  %v4714_v19 = vpop.f32.mrf.mxu2  ;;  %v1778_v61 = vld [vmem:[#allocation11 + $0x88] sm:$0xff] }
 0x1bc   : > { %2035 = vmatpush.msra.mxu0 %v1789_v21  ;;  %v1914_v10 = vld [vmem:[#allocation11 + $0x4c8] sm:$0xff] }
 0x1bd   : > { %2074 = vmatpush.msra.mxu2 %v1921_v9  ;;  %v1774_v21 = vld [vmem:[#allocation11 + $0x68] sm:$0xff] }
 0x1be   : > { %2036 = vmatpush.msra.mxu0 %v1785_v13  ;;  %v4719_v26 = vpop.f32.mrf.mxu3  ;;  %v1910_v11 = vld [vmem:[#allocation11 + $0x4a8] sm:$0xff] }
 0x1bf   : > { %2075 = vmatpush.msra.mxu2 %v1917_v17  ;;  %v1770_v13 = vld [vmem:[#allocation11 + $0x48] sm:$0xff] }
 0x1c0   : > { %2037 = vmatpush.msra.mxu0 %v1781_v16  ;;  %v1906_v9 = vld [vmem:[#allocation11 + $0x488] sm:$0xff]  ;;  %v1430_v16 = vperm.slane %v4716_v20, 1 }
 0x1c1   : > { %2076 = vmatpush.msra.mxu2 %v1913_v23  ;;  %v1454_v31 = vpop.f32.mrf.mxu0  ;;  %v1766_v17 = vld [vmem:[#allocation11 + $0x28] sm:$0xff] }
 0x1c2   : > { %2038 = vmatpush.msra.mxu0 %v1777_v22  ;;  %v1455_v34 = vadd.f32 %v1454_v31, %v1429_v27  ;;  %v2013_v22 = vld [vmem:[#allocation11 + $0x7e0] sm:$0xff]  ;;  %v1902_v23 = vld [vmem:[#allocation11 + $0x468] sm:$0xff] }
 0x1c3   : > { %2077 = vmatpush.msra.mxu2 %v1909_v28  ;;  %2087 = vmatpush.msra.mxu3 %v2013_v22  ;;  %v1885_v27 = vld [vmem:[#allocation11 + $0x3e0] sm:$0xff]  ;;  %v1783_v22 = vld [vmem:[#allocation11 + $0xb0] sm:$0xff] }
 0x1c4   : > { %2039 = vmatpush.msra.mxu0 %v1773_v25  ;;  %v2009_v28 = vld [vmem:[#allocation11 + $0x7c0] sm:$0xff]  ;;  %2047 = vmatpush.msra.mxu1 %v1885_v27  ;;  %v1779_v27 = vld [vmem:[#allocation11 + $0x90] sm:$0xff] }
 0x1c5   : > { %2078 = vmatpush.msra.mxu2 %v1905_v30  ;;  %v1474_v40 = vpop.f32.mrf.mxu1  ;;  %v1494_v41 = vpop.f32.mrf.mxu2  ;;  %v1823_v30 = vld [vmem:[#allocation11 + $0x1f0] sm:$0xff]  ;;  %2088 = vmatpush.msra.mxu3 %v2009_v28 }
 0x1c6   : > { %2040 = vmatpush.msra.mxu0 %v1769_v29  ;;  %v1475_v43 = vadd.f32 %v1474_v40, %v1455_v34  ;;  %v1898_v29 = vld [vmem:[#allocation11 + $0x448] sm:$0xff]  ;;  %2048 = vmatpush.msra.mxu1 %v1881_v32  ;;  %v2001_v40 = vld [vmem:[#allocation11 + $0x780] sm:$0xff]  ;;  %v1919_v28 = vld [vmem:[#allocation11 + $0x4f0] sm:$0xff] }
 0x1c7   : > { %2079 = vmatpush.msra.mxu2 %v1901_v35  ;;  %v1894_v34 = vld [vmem:[#allocation11 + $0x428] sm:$0xff]  ;;  %v1819_v35 = vld [vmem:[#allocation11 + $0x1d0] sm:$0xff] }
 0x1c8   : > { %2041 = vmatpush.msra.mxu0 %v1765_v33  ;;  %v1495_v48 = vadd.f32 %v1494_v41, %v1475_v43  ;;  %v1514_v49 = vpop.f32.mrf.mxu3  ;;  %v2005_v33 = vld [vmem:[#allocation11 + $0x7a0] sm:$0xff]  ;;  %v1890_v41 = vld [vmem:[#allocation11 + $0x408] sm:$0xff]  ;;  %v1815_v43 = vld [vmem:[#allocation11 + $0x1b0] sm:$0xff] }
 0x1c9   : > { %2080 = vmatpush.msra.mxu2 %v1897_v38  ;;  %2089 = vmatpush.msra.mxu3 %v2005_v33  ;;  %v1915_v32 = vld [vmem:[#allocation11 + $0x4d0] sm:$0xff]  ;;  %v1837_v33 = vld [vmem:[#allocation11 + $0x260] sm:$0xff] }
 0x1ca   : > { %2042 = vmatpush.msra.mxu0 %v1761_v36  ;;  %v4729_v59 = vadd.f32 %v1514_v49, %v1495_v48  ;;  %v1877_v36 = vld [vmem:[#allocation11 + $0x3a0] sm:$0xff]  ;;  %v1811_v49 = vld [vmem:[#allocation11 + $0x190] sm:$0xff] }
 0x1cb   : > { %2081 = vmatpush.msra.mxu2 %v1893_v45  ;;  %2043 = vmatmul.f32.vlgmr.msra.gmra.mxu0 %v4725_v44  ;;  %v1873_v48 = vld [vmem:[#allocation11 + $0x380] sm:$0xff] }
 0x1cc   : > { %2107 = vmatpush.msrb.mxu0 %v1822_v39  ;;  %2428 = vrot.lane.b32.xlu0 %v4729_v59, %s4354_s1 }
 0x1cd   : > { %2082 = vmatpush.msra.mxu2 %v1889_v47  ;;  %2049 = vmatpush.msra.mxu1 %v1877_v36  ;;  %v1951_v47 = vld [vmem:[#allocation11 + $0x5f0] sm:$0xff] }
 0x1ce   : > { %2108 = vmatpush.msrb.mxu0 %v1818_v46  ;;  %v4742_v46 = vld [vmem:[%s4621_s8 + $0x10] sm:$0xff]  ;;  %2090 = vmatpush.msra.mxu3 %v2001_v40  ;;  %v1957_v40 = vld [vmem:[#allocation11 + $0x620] sm:$0xff] }
 0x1cf   : > { %2147 = vmatpush.msrb.mxu2 %v1950_v51  ;;  %2050 = vmatpush.msra.mxu1 %v1873_v48  ;;  %v1911_v36 = vld [vmem:[#allocation11 + $0x4b0] sm:$0xff]  ;;  %v1824_v48 = vld [vmem:[#allocation11 + $0x1f8] sm:$0xff] }
 0x1d0   : > { %2109 = vmatpush.msrb.mxu0 %v1814_v50  ;;  %2083 = vmatmul.f32.vlgmr.msra.gmra.mxu2 %v4742_v46 }
 0x1d1   : > { %2148 = vmatpush.msrb.mxu2 %v1946_v54  ;;  %v1807_v54 = vld [vmem:[#allocation11 + $0x170] sm:$0xff]  ;;  %2091 = vmatpush.msra.mxu3 %v1997_v52 }
 0x1d2   : > { %2110 = vmatpush.msrb.mxu0 %v1810_v53  ;;  %v1105_v53 = vadd.f32 %v4710_v12, %v842_v42  ;;  %v1939_v12 = vld [vmem:[#allocation11 + $0x590] sm:$0xff]  ;;  %v1829_v42 = vld [vmem:[#allocation11 + $0x220] sm:$0xff] }
 0x1d3   : > { %2149 = vmatpush.msrb.mxu2 %v1942_v56  ;;  %v1869_v56 = vld [vmem:[#allocation11 + $0x360] sm:$0xff]  ;;  %2092 = vmatpush.msra.mxu3 %v1993_v63  ;;  %v1816_v63 = vld [vmem:[#allocation11 + $0x1b8] sm:$0xff] }
 0x1d4   : > { %2111 = vmatpush.msrb.mxu0 %v1806_v55  ;;  %2426 = vrot.lane.b32.xlu0 %v4734_v4, %s4354_s1 }
 0x1d5   : > { %2150 = vmatpush.msrb.mxu2 %v1938_v60  ;;  %v1803_v60 = vld [vmem:[#allocation11 + $0x150] sm:$0xff]  ;;  %2051 = vmatpush.msra.mxu1 %v1869_v56  ;;  %v2010_v56 = vld [vmem:[#allocation11 + $0x7c8] sm:$0xff] }
 0x1d6   : > { %2112 = vmatpush.msrb.mxu0 %v1802_v0  ;;  %v1943_v0 = vld [vmem:[#allocation11 + $0x5b0] sm:$0xff] }
 0x1d7   : > { %2151 = vmatpush.msrb.mxu2 %v1934_v2  ;;  %v1989_v2 = vld [vmem:[#allocation11 + $0x720] sm:$0xff] }
 0x1d8   : > { %2113 = vmatpush.msrb.mxu0 %v1798_v1  ;;  %v1865_v1 = vld [vmem:[#allocation11 + $0x340] sm:$0xff]  ;;  %2093 = vmatpush.msra.mxu3 %v1989_v2 }
 0x1d9   : > { %2152 = vmatpush.msrb.mxu2 %v1930_v3  ;;  %v1799_v3 = vld [vmem:[#allocation11 + $0x130] sm:$0xff]  ;;  %2052 = vmatpush.msra.mxu1 %v1865_v1  ;;  %v2006_v1 = vld [vmem:[#allocation11 + $0x7a8] sm:$0xff] }
 0x1da   : > { %2114 = vmatpush.msrb.mxu0 %v1794_v5  ;;  %v1125_v5 = vadd.f32 %v4712_v18, %v1105_v53 }
 0x1db   : > { %2153 = vmatpush.msrb.mxu2 %v1926_v7  ;;  %v1985_v7 = vld [vmem:[#allocation11 + $0x700] sm:$0xff] }
 0x1dc   : > { %2115 = vmatpush.msrb.mxu0 %v1790_v6  ;;  %v1861_v6 = vld [vmem:[#allocation11 + $0x320] sm:$0xff]  ;;  %v1145_v18 = vadd.f32 %v4714_v19, %v1125_v5  ;;  %2094 = vmatpush.msra.mxu3 %v1985_v7  ;;  %v1878_v7 = vld [vmem:[#allocation11 + $0x3a8] sm:$0xff] }
 0x1dd   : > { %2154 = vmatpush.msrb.mxu2 %v1922_v8  ;;  %v1795_v8 = vld [vmem:[#allocation11 + $0x110] sm:$0xff]  ;;  %2053 = vmatpush.msra.mxu1 %v1861_v6 }
 0x1de   : > { %2116 = vmatpush.msrb.mxu0 %v1786_v62  ;;  %v1935_v62 = vld [vmem:[#allocation11 + $0x570] sm:$0xff]  ;;  %v1165_v19 = vadd.f32 %v4719_v26, %v1145_v18  ;;  %v1965_v26 = vld [vmem:[#allocation11 + $0x660] sm:$0xff] }
 0x1df   : > { %2155 = vmatpush.msrb.mxu2 %v1918_v15  ;;  %v1981_v15 = vld [vmem:[#allocation11 + $0x6e0] sm:$0xff] }
 0x1e0   : > { %2117 = vmatpush.msrb.mxu0 %v1782_v14  ;;  %v1857_v14 = vld [vmem:[#allocation11 + $0x300] sm:$0xff]  ;;  %2095 = vmatpush.msra.mxu3 %v1981_v15 }
 0x1e1   : > { %2156 = vmatpush.msrb.mxu2 %v1914_v10  ;;  %v1791_v10 = vld [vmem:[#allocation11 + $0xf0] sm:$0xff]  ;;  %2054 = vmatpush.msra.mxu1 %v1857_v14 }
 0x1e2   : > { %2118 = vmatpush.msrb.mxu0 %v1778_v61  ;;  %v4752_v61 = vmul.f32 0.125, %v4697_v37  ;;  %v1849_v37 = vld [vmem:[#allocation11 + $0x2c0] sm:$0xff]  ;;  %v1891_v14 = vld [vmem:[#allocation11 + $0x410] sm:$0xff] }
 0x1e3   : > { %2157 = vmatpush.msrb.mxu2 %v1910_v11  ;;  %v1534_v25 = vpop.f32.mrf.mxu0  ;;  %v1853_v11 = vld [vmem:[#allocation11 + $0x2e0] sm:$0xff] }
 0x1e4   : > { %2119 = vmatpush.msrb.mxu0 %v1774_v21  ;;  %v1535_v31 = vadd.f32 %v1534_v25, %v1430_v16  ;;  %v1931_v21 = vld [vmem:[#allocation11 + $0x550] sm:$0xff]  ;;  %2055 = vmatpush.msra.mxu1 %v1853_v11  ;;  %v1969_v25 = vld [vmem:[#allocation11 + $0x680] sm:$0xff] }
 0x1e5   : > { %2158 = vmatpush.msrb.mxu2 %v1906_v9  ;;  %v1787_v9 = vld [vmem:[#allocation11 + $0xd0] sm:$0xff] }
 0x1e6   : > { %2120 = vmatpush.msrb.mxu0 %v1770_v13  ;;  %v1977_v13 = vld [vmem:[#allocation11 + $0x6c0] sm:$0xff]  ;;  %v1927_v16 = vld [vmem:[#allocation11 + $0x530] sm:$0xff]  ;;  %2056 = vmatpush.msra.mxu1 %v1849_v37  ;;  %v1870_v37 = vld [vmem:[#allocation11 + $0x368] sm:$0xff] }
 0x1e7   : > { %2159 = vmatpush.msrb.mxu2 %v1902_v23  ;;  %v1554_v38 = vpop.f32.mrf.mxu1  ;;  %v1574_v39 = vpop.f32.mrf.mxu2  ;;  %2096 = vmatpush.msra.mxu3 %v1977_v13  ;;  %v1923_v23 = vld [vmem:[#allocation11 + $0x510] sm:$0xff]  ;;  %v1952_v13 = vld [vmem:[#allocation11 + $0x5f8] sm:$0xff] }
 0x1e8   : > { %2121 = vmatpush.msrb.mxu0 %v1766_v17  ;;  %v1555_v45 = vadd.f32 %v1554_v38, %v1535_v31  ;;  %v1973_v17 = vld [vmem:[#allocation11 + $0x6a0] sm:$0xff]  ;;  %v1775_v31 = vld [vmem:[#allocation11 + $0x70] sm:$0xff] }
 0x1e9   : > { %2160 = vmatpush.msrb.mxu2 %v1898_v29  ;;  %2097 = vmatpush.msra.mxu3 %v1973_v17  ;;  %v1841_v29 = vld [vmem:[#allocation11 + $0x280] sm:$0xff]  ;;  %v1948_v17 = vld [vmem:[#allocation11 + $0x5d8] sm:$0xff] }
 0x1ea   : > { %2122 = vmatpush.msrb.mxu0 %v1762_v24  ;;  %v1575_v50 = vadd.f32 %v1574_v39, %v1555_v45  ;;  %v1594_v51 = vpop.f32.mrf.mxu3  ;;  %v1845_v24 = vld [vmem:[#allocation11 + $0x2a0] sm:$0xff]  ;;  %v1767_v39 = vld [vmem:[#allocation11 + $0x30] sm:$0xff]  ;;  %v1431_v45 = vperm.slane %v4716_v20, 2 }
 0x1eb   : > { %2123 = vmatmul.f32.vlgmr.msrb.gmra.mxu0 %v4725_v44  ;;  %2161 = vmatpush.msrb.mxu2 %v1894_v34  ;;  %v1771_v34 = vld [vmem:[#allocation11 + $0x50] sm:$0xff]  ;;  %v1833_v38 = vld [vmem:[#allocation11 + $0x240] sm:$0xff] }
 0x1ec   : > { %2187 = vmatpush.msra.mxu0 %v1823_v30  ;;  %v4746_v55 = vadd.f32 %v1594_v51, %v1575_v50  ;;  %v4758_v30 = vmul.f32 0.125, %v1165_v19  ;;  %2057 = vmatpush.msra.mxu1 %v1845_v24  ;;  %v1903_v50 = vld [vmem:[#allocation11 + $0x470] sm:$0xff]  ;;  %v1820_v51 = vld [vmem:[#allocation11 + $0x1d8] sm:$0xff]  ;;  %v1994_v19 = vld [vmem:[#allocation11 + $0x748] sm:$0xff] }
 0x1ed   : > { %2162 = vmatpush.msrb.mxu2 %v1890_v41  ;;  %2098 = vmatpush.msra.mxu3 %v1969_v25  ;;  %v1907_v41 = vld [vmem:[#allocation11 + $0x490] sm:$0xff]  ;;  %v1944_v24 = vld [vmem:[#allocation11 + $0x5b8] sm:$0xff]  ;;  %v1990_v25 = vld [vmem:[#allocation11 + $0x728] sm:$0xff] }
 0x1ee   : > { %2188 = vmatpush.msra.mxu0 %v1819_v35  ;;  %2580 = vrot.lane.b32.xlu1 %v4746_v55, %s4354_s1  ;;  %v1961_v35 = vld [vmem:[#allocation11 + $0x640] sm:$0xff] }
 0x1ef   : > { %2227 = vmatpush.msra.mxu2 %v1951_v47  ;;  %2058 = vmatpush.msra.mxu1 %v1841_v29  ;;  %v1953_v47 = vld [vmem:[#allocation11 + $0x600] sm:$0xff]  ;;  %v1940_v29 = vld [vmem:[#allocation11 + $0x598] sm:$0xff] }
 0x1f0   : > { %2189 = vmatpush.msra.mxu0 %v1815_v43  ;;  %2099 = vmatpush.msra.mxu3 %v1965_v26  ;;  %v1763_v43 = vld [vmem:[#allocation11 + $0x10] sm:$0xff]  ;;  %v1788_v26 = vld [vmem:[#allocation11 + $0xd8] sm:$0xff] }
 0x1f1   : > { %2228 = vmatpush.msra.mxu2 %v1947_v58  ;;  %2059 = vmatpush.msra.mxu1 %v1837_v33  ;;  %v1825_v58 = vld [vmem:[#allocation11 + $0x200] sm:$0xff]  ;;  %v1936_v33 = vld [vmem:[#allocation11 + $0x578] sm:$0xff] }
 0x1f2   : > { %2190 = vmatpush.msra.mxu0 %v1811_v49  ;;  %2100 = vmatpush.msra.mxu3 %v1961_v35  ;;  %v2014_v49 = vld [vmem:[#allocation11 + $0x7e8] sm:$0xff]  ;;  %v1784_v35 = vld [vmem:[#allocation11 + $0xb8] sm:$0xff] }
 0x1f3   : > { %2229 = vmatpush.msra.mxu2 %v1943_v0  ;;  %2060 = vmatpush.msra.mxu1 %v1833_v38  ;;  %v1899_v0 = vld [vmem:[#allocation11 + $0x450] sm:$0xff]  ;;  %v1932_v38 = vld [vmem:[#allocation11 + $0x558] sm:$0xff] }
 0x1f4   : > { %2191 = vmatpush.msra.mxu0 %v1807_v54  ;;  %2101 = vmatpush.msra.mxu3 %v1957_v40  ;;  %v1886_v54 = vld [vmem:[#allocation11 + $0x3e8] sm:$0xff]  ;;  %v1780_v40 = vld [vmem:[#allocation11 + $0x98] sm:$0xff] }
 0x1f5   : > { %2230 = vmatpush.msra.mxu2 %v1939_v12  ;;  %2061 = vmatpush.msra.mxu1 %v1829_v42  ;;  %v1812_v12 = vld [vmem:[#allocation11 + $0x198] sm:$0xff]  ;;  %v1850_v42 = vld [vmem:[#allocation11 + $0x2c8] sm:$0xff] }
 0x1f6   : > { %2192 = vmatpush.msra.mxu0 %v1803_v60  ;;  %2578 = vrot.lane.b32.xlu1 %v4752_v61, %s4354_s1  ;;  %v1882_v60 = vld [vmem:[#allocation11 + $0x3c8] sm:$0xff] }
 0x1f7   : > { %2231 = vmatpush.msra.mxu2 %v1935_v62  ;;  %2102 = vmatpush.msra.mxu3 %v1953_v47  ;;  %v2002_v62 = vld [vmem:[#allocation11 + $0x788] sm:$0xff]  ;;  %v1924_v47 = vld [vmem:[#allocation11 + $0x518] sm:$0xff] }
 0x1f8   : > { %2193 = vmatpush.msra.mxu0 %v1799_v3  ;;  %2062 = vmatpush.msra.mxu1 %v1825_v58  ;;  %v1895_v3 = vld [vmem:[#allocation11 + $0x430] sm:$0xff]  ;;  %v1768_v58 = vld [vmem:[#allocation11 + $0x38] sm:$0xff] }
 0x1f9   : > { %2232 = vmatpush.msra.mxu2 %v1931_v21  ;;  %2167 = vmatpush.msrb.mxu3 %v2014_v49  ;;  %v1804_v21 = vld [vmem:[#allocation11 + $0x158] sm:$0xff] }
 0x1fa   : > { %2194 = vmatpush.msra.mxu0 %v1795_v8  ;;  %2127 = vmatpush.msrb.mxu1 %v1886_v54  ;;  %v1808_v8 = vld [vmem:[#allocation11 + $0x178] sm:$0xff] }
 0x1fb   : > { %2233 = vmatpush.msra.mxu2 %v1927_v16  ;;  %2168 = vmatpush.msrb.mxu3 %v2010_v56  ;;  %v1800_v16 = vld [vmem:[#allocation11 + $0x138] sm:$0xff]  ;;  %v1838_v56 = vld [vmem:[#allocation11 + $0x268] sm:$0xff] }
 0x1fc   : > { %2195 = vmatpush.msra.mxu0 %v1791_v10  ;;  %2128 = vmatpush.msrb.mxu1 %v1882_v60  ;;  %v1874_v10 = vld [vmem:[#allocation11 + $0x388] sm:$0xff]  ;;  %v1772_v49 = vld [vmem:[#allocation11 + $0x58] sm:$0xff] }
 0x1fd   : > { %2234 = vmatpush.msra.mxu2 %v1923_v23  ;;  %2169 = vmatpush.msrb.mxu3 %v2006_v1  ;;  %v1866_v23 = vld [vmem:[#allocation11 + $0x348] sm:$0xff]  ;;  %v1916_v54 = vld [vmem:[#allocation11 + $0x4d8] sm:$0xff] }
 0x1fe   : > { %2196 = vmatpush.msra.mxu0 %v1787_v9  ;;  %2882 = vrot.lane.b32.xlu1 %v4758_v30, %s4354_s1  ;;  %v1998_v9 = vld [vmem:[#allocation11 + $0x768] sm:$0xff]  ;;  %v1912_v60 = vld [vmem:[#allocation11 + $0x4b8] sm:$0xff] }
 0x1ff   : > { %2235 = vmatpush.msra.mxu2 %v1919_v28  ;;  %2129 = vmatpush.msrb.mxu1 %v1878_v7  ;;  %v1862_v28 = vld [vmem:[#allocation11 + $0x328] sm:$0xff] }
 0x200   : > { %2197 = vmatpush.msra.mxu0 %v1783_v22  ;;  %2170 = vmatpush.msrb.mxu3 %v2002_v62  ;;  %v1796_v22 = vld [vmem:[#allocation11 + $0x118] sm:$0xff]  ;;  %v1834_v1 = vld [vmem:[#allocation11 + $0x248] sm:$0xff] }
 0x201   : > { %2236 = vmatpush.msra.mxu2 %v1915_v32  ;;  %2130 = vmatpush.msrb.mxu1 %v1874_v10  ;;  %v4770_v32 = vmul.f32 0.125, %v4704_v57  ;;  %v1928_v57 = vld [vmem:[#allocation11 + $0x538] sm:$0xff] }
 0x202   : > { %2198 = vmatpush.msra.mxu0 %v1779_v27  ;;  %2163 = vmatmul.f32.vlgmr.msrb.gmra.mxu2 %v4742_v46  ;;  %v1792_v27 = vld [vmem:[#allocation11 + $0xf8] sm:$0xff] }
 0x203   : > { %2237 = vmatpush.msra.mxu2 %v1911_v36  ;;  %2171 = vmatpush.msrb.mxu3 %v1998_v9  ;;  %v1982_v36 = vld [vmem:[#allocation11 + $0x6e8] sm:$0xff]  ;;  %v4781_v62 = vld [vmem:[%s4621_s8 + $0x18] sm:$0xff] }
 0x204   : > { %2199 = vmatpush.msra.mxu0 %v1775_v31  ;;  %2131 = vmatpush.msrb.mxu1 %v1870_v37  ;;  %v1986_v31 = vld [vmem:[#allocation11 + $0x708] sm:$0xff]  ;;  %v1896_v37 = vld [vmem:[#allocation11 + $0x438] sm:$0xff] }
 0x205   : > { %2238 = vmatpush.msra.mxu2 %v1907_v41  ;;  %v1614_v52 = vpop.f32.mrf.mxu0  ;;  %2172 = vmatpush.msrb.mxu3 %v1994_v19  ;;  %v1978_v41 = vld [vmem:[#allocation11 + $0x6c8] sm:$0xff]  ;;  %v2007_v19 = vld [vmem:[#allocation11 + $0x7b0] sm:$0xff] }
 0x206   : > { %2200 = vmatpush.msra.mxu0 %v1771_v34  ;;  %v1615_v53 = vadd.f32 %v1614_v52, %v1431_v45  ;;  %2132 = vmatpush.msrb.mxu1 %v1866_v23  ;;  %v1858_v34 = vld [vmem:[#allocation11 + $0x308] sm:$0xff]  ;;  %v1879_v23 = vld [vmem:[#allocation11 + $0x3b0] sm:$0xff] }
 0x207   : > { %2239 = vmatpush.msra.mxu2 %v1903_v50  ;;  %2173 = vmatpush.msrb.mxu3 %v1990_v25  ;;  %v1974_v45 = vld [vmem:[#allocation11 + $0x6a8] sm:$0xff]  ;;  %v2003_v25 = vld [vmem:[#allocation11 + $0x790] sm:$0xff] }
 0x208   : > { %2201 = vmatpush.msra.mxu0 %v1767_v39  ;;  %2133 = vmatpush.msrb.mxu1 %v1862_v28  ;;  %v1854_v39 = vld [vmem:[#allocation11 + $0x2e8] sm:$0xff]  ;;  %v1871_v28 = vld [vmem:[#allocation11 + $0x370] sm:$0xff] }
 0x209   : > { %v1634_v2 = vpop.f32.mrf.mxu1  ;;  %v1654_v5 = vpop.f32.mrf.mxu2  ;;  %2240 = vmatpush.msra.mxu2 %v1899_v0  ;;  %2174 = vmatpush.msrb.mxu3 %v1986_v31  ;;  %v1970_v50 = vld [vmem:[#allocation11 + $0x688] sm:$0xff]  ;;  %v1991_v31 = vld [vmem:[#allocation11 + $0x730] sm:$0xff] }
 0x20a   : > { %2202 = vmatpush.msra.mxu0 %v1763_v43  ;;  %v1635_v6 = vadd.f32 %v1634_v2, %v1615_v53  ;;  %2134 = vmatpush.msrb.mxu1 %v1858_v34  ;;  %v1776_v43 = vld [vmem:[#allocation11 + $0x78] sm:$0xff]  ;;  %v1842_v52 = vld [vmem:[#allocation11 + $0x288] sm:$0xff]  ;;  %v1432_v2 = vperm.slane %v4716_v20, 3  ;;  %v1983_v34 = vld [vmem:[#allocation11 + $0x6f0] sm:$0xff] }
 0x20b   : > { %2203 = vmatmul.f32.vlgmr.msra.gmra.mxu0 %v4725_v44  ;;  %2241 = vmatpush.msra.mxu2 %v1895_v3  ;;  %v1966_v53 = vld [vmem:[#allocation11 + $0x668] sm:$0xff]  ;;  %v1904_v20 = vld [vmem:[#allocation11 + $0x478] sm:$0xff] }
 0x20c   : > { %2267 = vmatpush.msrb.mxu0 %v1824_v48  ;;  %v1655_v15 = vadd.f32 %v1654_v5, %v1635_v6  ;;  %v1674_v18 = vpop.f32.mrf.mxu3  ;;  %2175 = vmatpush.msrb.mxu3 %v1982_v36  ;;  %v1846_v48 = vld [vmem:[#allocation11 + $0x2a8] sm:$0xff]  ;;  %v1908_v5 = vld [vmem:[#allocation11 + $0x498] sm:$0xff]  ;;  %v1979_v36 = vld [vmem:[#allocation11 + $0x6d0] sm:$0xff] }
 0x20d   : > { %2242 = vmatpush.msra.mxu2 %v1891_v14  ;;  %2135 = vmatpush.msrb.mxu1 %v1854_v39  ;;  %v1962_v0 = vld [vmem:[#allocation11 + $0x648] sm:$0xff] }
 0x20e   : > { %2268 = vmatpush.msrb.mxu0 %v1820_v51  ;;  %v4764_v11 = vadd.f32 %v1674_v18, %v1655_v15  ;;  %2176 = vmatpush.msrb.mxu3 %v1978_v41  ;;  %v1920_v51 = vld [vmem:[#allocation11 + $0x4f8] sm:$0xff]  ;;  %v1830_v3 = vld [vmem:[#allocation11 + $0x228] sm:$0xff]  ;;  %v1971_v41 = vld [vmem:[#allocation11 + $0x690] sm:$0xff] }
 0x20f   : > { %2307 = vmatpush.msrb.mxu2 %v1952_v13  ;;  %2136 = vmatpush.msrb.mxu1 %v1850_v42  ;;  %v1954_v6 = vld [vmem:[#allocation11 + $0x608] sm:$0xff]  ;;  %v1900_v18 = vld [vmem:[#allocation11 + $0x458] sm:$0xff]  ;;  %v2011_v13 = vld [vmem:[#allocation11 + $0x7d0] sm:$0xff] }
 0x210   : > { %2269 = vmatpush.msrb.mxu0 %v1816_v63  ;;  %2732 = vrot.lane.b32.xlu2 %v4764_v11, %s4354_s1  ;;  %v1764_v63 = vld [vmem:[#allocation11 + $0x18] sm:$0xff]  ;;  %v1826_v14 = vld [vmem:[#allocation11 + $0x208] sm:$0xff]  ;;  %v1967_v42 = vld [vmem:[#allocation11 + $0x670] sm:$0xff] }
 0x211   : > { %2308 = vmatpush.msrb.mxu2 %v1948_v17  ;;  %2177 = vmatpush.msrb.mxu3 %v1974_v45  ;;  %v1963_v45 = vld [vmem:[#allocation11 + $0x650] sm:$0xff] }
 0x212   : > { %2270 = vmatpush.msrb.mxu0 %v1812_v12  ;;  %2137 = vmatpush.msrb.mxu1 %v1846_v48  ;;  %v1958_v12 = vld [vmem:[#allocation11 + $0x628] sm:$0xff] }
 0x213   : > { %2309 = vmatpush.msrb.mxu2 %v1944_v24  ;;  %2178 = vmatpush.msrb.mxu3 %v1970_v50  ;;  %v1892_v24 = vld [vmem:[#allocation11 + $0x418] sm:$0xff]  ;;  %v1955_v50 = vld [vmem:[#allocation11 + $0x610] sm:$0xff] }
 0x214   : > { %2271 = vmatpush.msrb.mxu0 %v1808_v8  ;;  %2138 = vmatpush.msrb.mxu1 %v1842_v52  ;;  %v1827_v52 = vld [vmem:[#allocation11 + $0x210] sm:$0xff] }
 0x215   : > { %2310 = vmatpush.msrb.mxu2 %v1940_v29  ;;  %2179 = vmatpush.msrb.mxu3 %v1966_v53  ;;  %v1867_v29 = vld [vmem:[#allocation11 + $0x350] sm:$0xff]  ;;  %v2012_v53 = vld [vmem:[#allocation11 + $0x7d8] sm:$0xff] }
 0x216   : > { %2272 = vmatpush.msrb.mxu0 %v1804_v21  ;;  %2139 = vmatpush.msrb.mxu1 %v1838_v56  ;;  %v1880_v56 = vld [vmem:[#allocation11 + $0x3b8] sm:$0xff] }
 0x217   : > { %2311 = vmatpush.msrb.mxu2 %v1936_v33  ;;  %2180 = vmatpush.msrb.mxu3 %v1962_v0  ;;  %v1859_v33 = vld [vmem:[#allocation11 + $0x310] sm:$0xff]  ;;  %v1876_v0 = vld [vmem:[#allocation11 + $0x398] sm:$0xff] }
 0x218   : > { %2273 = vmatpush.msrb.mxu0 %v1800_v16  ;;  %2730 = vrot.lane.b32.xlu2 %v4770_v32, %s4354_s1  ;;  %v1883_v16 = vld [vmem:[#allocation11 + $0x3d0] sm:$0xff] }
 0x219   : > { %2312 = vmatpush.msrb.mxu2 %v1932_v38  ;;  %2140 = vmatpush.msrb.mxu1 %v1834_v1  ;;  %v1851_v38 = vld [vmem:[#allocation11 + $0x2d0] sm:$0xff]  ;;  %v1872_v1 = vld [vmem:[#allocation11 + $0x378] sm:$0xff] }
 0x21a   : > { %2274 = vmatpush.msrb.mxu0 %v1796_v22  ;;  %2181 = vmatpush.msrb.mxu3 %v1958_v12  ;;  %v1868_v12 = vld [vmem:[#allocation11 + $0x358] sm:$0xff] }
 0x21b   : > { %2313 = vmatpush.msrb.mxu2 %v1928_v57  ;;  %2141 = vmatpush.msrb.mxu1 %v1830_v3  ;;  %v1843_v57 = vld [vmem:[#allocation11 + $0x290] sm:$0xff]  ;;  %v1864_v3 = vld [vmem:[#allocation11 + $0x338] sm:$0xff] }
 0x21c   : > { %2275 = vmatpush.msrb.mxu0 %v1792_v27  ;;  %2182 = vmatpush.msrb.mxu3 %v1954_v6  ;;  %v1875_v27 = vld [vmem:[#allocation11 + $0x390] sm:$0xff]  ;;  %v1988_v6 = vld [vmem:[#allocation11 + $0x718] sm:$0xff] }
 0x21d   : > { %2314 = vmatpush.msrb.mxu2 %v1924_v47  ;;  %2103 = vmatmul.f32.vlgmr.msra.gmra.mxu3 %v4781_v62  ;;  %v1835_v47 = vld [vmem:[#allocation11 + $0x250] sm:$0xff] }
 0x21e   : > { %2276 = vmatpush.msrb.mxu0 %v1788_v26  ;;  %2243 = vmatmul.f32.vlgmr.msra.gmra.mxu2 %v4742_v46  ;;  %v1863_v26 = vld [vmem:[#allocation11 + $0x330] sm:$0xff] }
 0x21f   : > { %2315 = vmatpush.msrb.mxu2 %v1920_v51  ;;  %2142 = vmatpush.msrb.mxu1 %v1826_v14  ;;  %v2016_v51 = vld [vmem:[#allocation11 + $0x7f8] sm:$0xff] }
 0x220   : > { %2277 = vmatpush.msrb.mxu0 %v1784_v35  ;;  %v1855_v35 = vld [vmem:[#allocation11 + $0x2f0] sm:$0xff]  ;;  %v1852_v14 = vld [vmem:[#allocation11 + $0x2d8] sm:$0xff] }
 0x221   : > { %2316 = vmatpush.msrb.mxu2 %v1916_v54  ;;  %v1884_v54 = vld [vmem:[#allocation11 + $0x3d8] sm:$0xff] }
 0x222   : > { %2278 = vmatpush.msrb.mxu0 %v1780_v40  ;;  %v1847_v40 = vld [vmem:[#allocation11 + $0x2b0] sm:$0xff] }
 0x223   : > { %2317 = vmatpush.msrb.mxu2 %v1912_v60  ;;  %v2000_v60 = vld [vmem:[#allocation11 + $0x778] sm:$0xff] }
 0x224   : > { %2279 = vmatpush.msrb.mxu0 %v1776_v43  ;;  %v1839_v43 = vld [vmem:[#allocation11 + $0x270] sm:$0xff] }
 0x225   : > { %2318 = vmatpush.msrb.mxu2 %v1908_v5  ;;  %2183 = vmatmul.f32.vlgmr.msrb.gmra.mxu3 %v4781_v62  ;;  %v1992_v5 = vld [vmem:[#allocation11 + $0x738] sm:$0xff] }
 0x226   : > { %2280 = vmatpush.msrb.mxu0 %v1772_v49  ;;  %v1831_v49 = vld [vmem:[#allocation11 + $0x230] sm:$0xff] }
 0x227   : > { %v1694_v7 = vpop.f32.mrf.mxu0  ;;  %2319 = vmatpush.msrb.mxu2 %v1904_v20  ;;  %v1984_v20 = vld [vmem:[#allocation11 + $0x6f8] sm:$0xff] }
 0x228   : > { %2281 = vmatpush.msrb.mxu0 %v1768_v58  ;;  %v1695_v8 = vadd.f32 %v1694_v7, %v1432_v2  ;;  %v1888_v58 = vld [vmem:[#allocation11 + $0x3f8] sm:$0xff] }
 0x229   : > { %2320 = vmatpush.msrb.mxu2 %v1900_v18  ;;  %v1996_v2 = vld [vmem:[#allocation11 + $0x758] sm:$0xff] }
 0x22a   : > { %2282 = vmatpush.msrb.mxu0 %v1764_v63  ;;  %v2004_v63 = vld [vmem:[#allocation11 + $0x798] sm:$0xff] }
 0x22b   : > { %2283 = vmatmul.f32.vlgmr.msrb.gmra.mxu0 %v4725_v44  ;;  %v2015_v44 = vld [vmem:[#allocation11 + $0x7f0] sm:$0xff]  ;;  %2321 = vmatpush.msrb.mxu2 %v1896_v37  ;;  %v1860_v7 = vld [vmem:[#allocation11 + $0x318] sm:$0xff] }
 0x22c   : > { %3787 = vmatpush.xpose.msk.msra.mxu0 %vm2351_vm0, %v4729_v59  ;;  %v4785_v59 = vld [vmem:[%s4621_s8 + $0x8] sm:$0xff]  ;;  %2247 = vmatpush.msra.mxu3 %v2015_v44  ;;  %v1980_v44 = vld [vmem:[#allocation11 + $0x6d8] sm:$0xff] }
 0x22d   : > { %v1714_v15 = vpop.f32.mrf.mxu1  ;;  %2063 = vmatmul.f32.vlgmr.msra.gmra.mxu1 %v4785_v59  ;;  %2322 = vmatpush.msrb.mxu2 %v1892_v24  ;;  %v1848_v18 = vld [vmem:[#allocation11 + $0x2b8] sm:$0xff] }
 0x22e   : > { %v1715_v10 = vadd.f32 %v1714_v15, %v1695_v8  ;;  %v1734_v21 = vpop.f32.mrf.mxu2  ;;  %2248 = vmatpush.msra.mxu3 %v2011_v13  ;;  %2323 = vmatmul.f32.vlgmr.msrb.gmra.mxu2 %v4742_v46  ;;  %v1987_v46 = vld [vmem:[#allocation11 + $0x710] sm:$0xff]  ;;  %v1856_v8 = vld [vmem:[#allocation11 + $0x2f8] sm:$0xff] }
 0x22f   : > { %v1976_v15 = vld [vmem:[#allocation11 + $0x6b8] sm:$0xff] }
 0x230   : > { %3793 = vmatpush.xpose.msk.msrb.mxu0 %vm2351_vm0, %v4746_v55  ;;  %v1887_v55 = vld [vmem:[#allocation11 + $0x3f0] sm:$0xff]  ;;  %v1735_v9 = vadd.f32 %v1734_v21, %v1715_v10  ;;  %2249 = vmatpush.msra.mxu3 %v2007_v19  ;;  %v1972_v10 = vld [vmem:[#allocation11 + $0x698] sm:$0xff] }
 0x231   : > { %2207 = vmatpush.msra.mxu1 %v1887_v55  ;;  %v1844_v55 = vld [vmem:[#allocation11 + $0x298] sm:$0xff] }
 0x232   : > { %v1754_v17 = vpop.f32.mrf.mxu3  ;;  %2250 = vmatpush.msra.mxu3 %v2003_v25  ;;  %v1968_v13 = vld [vmem:[#allocation11 + $0x678] sm:$0xff] }
 0x233   : > { %3788 = vmatmul.msk.f32.vlgmr.msra.gmra.mxu0 %vm2351_vm0, %v4734_v4  ;;  %v1755_v22 = vadd.f32 %v1754_v17, %v1735_v9  ;;  %2208 = vmatpush.msra.mxu1 %v1883_v16  ;;  %v1999_v4 = vld [vmem:[#allocation11 + $0x770] sm:$0xff]  ;;  %v1840_v9 = vld [vmem:[#allocation11 + $0x278] sm:$0xff] }
 0x234   : > { %3799 = vmatpush.xpose.msk.msra.mxu0 %vm2351_vm0, %v4764_v11  ;;  %v1995_v11 = vld [vmem:[#allocation11 + $0x750] sm:$0xff]  ;;  %2251 = vmatpush.msra.mxu3 %v1999_v4  ;;  %v1964_v16 = vld [vmem:[#allocation11 + $0x658] sm:$0xff] }
 0x235   : > { %2884 = vrot.lane.b32.xlu0 %v1755_v22, %s4354_s1  ;;  %2209 = vmatpush.msra.mxu1 %v1879_v23  ;;  %v1836_v37 = vld [vmem:[#allocation11 + $0x258] sm:$0xff] }
 0x236   : > { %2143 = vmatmul.f32.vlgmr.msrb.gmra.mxu1 %v4785_v59  ;;  %2252 = vmatpush.msra.mxu3 %v1995_v11  ;;  %v1960_v17 = vld [vmem:[#allocation11 + $0x638] sm:$0xff]  ;;  %v2017_v11 = vld [vmem:[%s4986_s9] sm:$0xf] }
 0x237   : > { %2210 = vmatpush.msra.mxu1 %v1875_v27  ;;  %v1832_v19 = vld [vmem:[#allocation11 + $0x238] sm:$0xff] }
 0x238   : > { %2253 = vmatpush.msra.mxu3 %v1991_v31  ;;  %v1828_v23 = vld [vmem:[#allocation11 + $0x218] sm:$0xff] }
 0x239   : > { %2211 = vmatpush.msra.mxu1 %v1871_v28 }
 0x23a   : > { %2254 = vmatpush.msra.mxu3 %v1987_v46  ;;  %v2022_v46 = vperm.slane %v2017_v11, 3 }
 0x23b   : > { %3794 = vmatmul.msk.f32.vlgmr.msrb.gmra.mxu0 %vm2351_vm0, %v4752_v61  ;;  %2212 = vmatpush.msra.mxu1 %v1867_v29  ;;  %v1975_v61 = vld [vmem:[#allocation11 + $0x6b0] sm:$0xff]  ;;  %v2021_v29 = vperm.slane %v2017_v11, 2 }
 0x23c   : > { %3805 = vmatpush.xpose.msk.msrb.mxu0 %vm2351_vm0, %v1755_v22  ;;  %2255 = vmatpush.msra.mxu3 %v1983_v34  ;;  %v1956_v22 = vld [vmem:[#allocation11 + $0x618] sm:$0xff] }
 0x23d   : > { %2213 = vmatpush.msra.mxu1 %v1863_v26 }
 0x23e   : > { %v2429_v39 = vpop.permute.xlu0 %2428  ;;  %2256 = vmatpush.msra.mxu3 %v1979_v36 }
 0x23f   : > { %2214 = vmatpush.msra.mxu1 %v1859_v33  ;;  %3790 = vmatpush.xpose.msk.msra.mxu2 %vm2351_vm0, %v2429_v39  ;;  %v2020_v39 = vperm.slane %v2017_v11, 1 }
 0x240   : > { %2257 = vmatpush.msra.mxu3 %v1975_v61 }
 0x241   : > { %2215 = vmatpush.msra.mxu1 %v1855_v35 }
 0x242   : > { %2258 = vmatpush.msra.mxu3 %v1971_v41 }
 0x243   : > { %3800 = vmatmul.msk.f32.vlgmr.msra.gmra.mxu0 %vm2351_vm0, %v4770_v32  ;;  %2216 = vmatpush.msra.mxu1 %v1851_v38  ;;  %v1959_v32 = vld [vmem:[#allocation11 + $0x630] sm:$0xff] }
 0x244   : > { %2259 = vmatpush.msra.mxu3 %v1967_v42 }
 0x245   : > { %2217 = vmatpush.msra.mxu1 %v1847_v40 }
 0x246   : > { %v2427_v48 = vpop.permute.xlu0 %2426  ;;  %2260 = vmatpush.msra.mxu3 %v1963_v45 }
 0x247   : > { %2218 = vmatpush.msra.mxu1 %v1843_v57  ;;  %3791 = vmatmul.msk.f32.vlgmr.msra.gmra.mxu2 %vm2351_vm0, %v2427_v48 }
 0x248   : > { %2261 = vmatpush.msra.mxu3 %v1959_v32  ;;  %v2044_v27 = vpop.f32.mrf.mxu0 }
 0x249   : > { %2219 = vmatpush.msra.mxu1 %v1839_v43 }
 0x24a   : > { %2262 = vmatpush.msra.mxu3 %v1955_v50 }
 0x24b   : > { %3806 = vmatmul.msk.f32.vlgmr.msrb.gmra.mxu0 %vm2351_vm0, %v4758_v30  ;;  %2220 = vmatpush.msra.mxu1 %v1835_v47  ;;  %v2008_v30 = vld [vmem:[#allocation11 + $0x7b8] sm:$0xff] }
 0x24c   : > { %2327 = vmatpush.msrb.mxu3 %v2016_v51 }
 0x24d   : > { %2221 = vmatpush.msra.mxu1 %v1831_v49  ;;  %2263 = vmatmul.f32.vlgmr.msra.gmra.mxu3 %v4781_v62 }
 0x24e   : > { %2328 = vmatpush.msrb.mxu3 %v2012_v53 }
 0x24f   : > { %2222 = vmatpush.msra.mxu1 %v1827_v52 }
 0x250   : > { %2223 = vmatmul.f32.vlgmr.msra.gmra.mxu1 %v4785_v59  ;;  %2329 = vmatpush.msrb.mxu3 %v2008_v30 }
 0x251   : > { %2287 = vmatpush.msrb.mxu1 %v1888_v58 }
 0x252   : > { %2330 = vmatpush.msrb.mxu3 %v2004_v63 }
 0x253   : > { %2288 = vmatpush.msrb.mxu1 %v1884_v54  ;;  %v2084_v33 = vpop.f32.mrf.mxu2 }
 0x254   : > { %2331 = vmatpush.msrb.mxu3 %v2000_v60 }
 0x255   : > { %2289 = vmatpush.msrb.mxu1 %v1880_v56 }
 0x256   : > { %2332 = vmatpush.msrb.mxu3 %v1996_v2 }
 0x257   : > { %2290 = vmatpush.msrb.mxu1 %v1876_v0 }
 0x258   : > { %2333 = vmatpush.msrb.mxu3 %v1992_v5 }
 0x259   : > { %2291 = vmatpush.msrb.mxu1 %v1872_v1 }
 0x25a   : > { %2334 = vmatpush.msrb.mxu3 %v1988_v6 }
 0x25b   : > { %2292 = vmatpush.msrb.mxu1 %v1868_v12 }
 0x25c   : > { %2335 = vmatpush.msrb.mxu3 %v1984_v20 }
 0x25d   : > { %2293 = vmatpush.msrb.mxu1 %v1864_v3 }
 0x25e   : > { %2336 = vmatpush.msrb.mxu3 %v1980_v44 }
 0x25f   : > { %2294 = vmatpush.msrb.mxu1 %v1860_v7 }
 0x260   : > { %2337 = vmatpush.msrb.mxu3 %v1976_v15  ;;  %v2581_v21 = vpop.permute.xlu1 %2580 }
 0x261   : > { %2295 = vmatpush.msrb.mxu1 %v1856_v8  ;;  %3796 = vmatpush.xpose.msk.msrb.mxu2 %vm2351_vm0, %v2581_v21 }
 0x262   : > { %2338 = vmatpush.msrb.mxu3 %v1972_v10 }
 0x263   : > { %2296 = vmatpush.msrb.mxu1 %v1852_v14 }
 0x264   : > { %2339 = vmatpush.msrb.mxu3 %v1968_v13 }
 0x265   : > { %2297 = vmatpush.msrb.mxu1 %v1848_v18 }
 0x266   : > { %2340 = vmatpush.msrb.mxu3 %v1964_v16 }
 0x267   : > { %2298 = vmatpush.msrb.mxu1 %v1844_v55 }
 0x268   : > { %2341 = vmatpush.msrb.mxu3 %v1960_v17  ;;  %v2579_v24 = vpop.permute.xlu1 %2578  ;;  %v2124_v28 = vpop.f32.mrf.mxu0 }
 0x269   : > { %2299 = vmatpush.msrb.mxu1 %v1840_v9  ;;  %3797 = vmatmul.msk.f32.vlgmr.msrb.gmra.mxu2 %vm2351_vm0, %v2579_v24  ;;  %v2125_v43 = vadd.f32 %v2124_v28, %v2020_v39 }
 0x26a   : > { %2342 = vmatpush.msrb.mxu3 %v1956_v22  ;;  %v2733_v25 = vpop.permute.xlu2 %2732 }
 0x26b   : > { %2300 = vmatpush.msrb.mxu1 %v1836_v37  ;;  %2343 = vmatmul.f32.vlgmr.msrb.gmra.mxu3 %v4781_v62  ;;  %v2019_v62 = vperm.slane %v2017_v11, 0 }
 0x26c   : > { %3802 = vmatpush.xpose.msk.msra.mxu2 %vm2351_vm0, %v2733_v25 }
 0x26d   : > { %2301 = vmatpush.msrb.mxu1 %v1832_v19  ;;  %v2045_v38 = vadd.f32 %v2044_v27, %v2019_v62 }
 0x26f   : > { %2302 = vmatpush.msrb.mxu1 %v1828_v23 }
 0x270   : > { %2303 = vmatmul.f32.vlgmr.msrb.gmra.mxu1 %v4785_v59  ;;  %v2883_v59 = vpop.permute.xlu1 %2882 }
 0x272   : > { %v2731_v4 = vpop.permute.xlu2 %2730 }
 0x273   : > { %3803 = vmatmul.msk.f32.vlgmr.msra.gmra.mxu2 %vm2351_vm0, %v2731_v4 }
 0x285   : > { %v2164_v41 = vpop.f32.mrf.mxu2 }
 0x288   : > { %v2204_v31 = vpop.f32.mrf.mxu0 }
 0x289   : > { %v2205_v26 = vadd.f32 %v2204_v31, %v2021_v29 }
 0x2a0   : > { %v2104_v42 = vpop.f32.mrf.mxu3 }
 0x2a1   : > { %v2244_v49 = vpop.f32.mrf.mxu2 }
 0x2a7   : > { %v2885_v35 = vpop.permute.xlu0 %2884 }
 0x2a8   : > { %v2284_v34 = vpop.f32.mrf.mxu0  ;;  %3808 = vmatpush.xpose.msk.msrb.mxu2 %vm2351_vm0, %v2885_v35  ;;  %v2184_v50 = vpop.f32.mrf.mxu3 }
 0x2a9   : > { %v2285_v36 = vadd.f32 %v2284_v34, %v2022_v46 }
 0x2aa   : > { %v2064_v61 = vpop.f32.mrf.mxu1 }
 0x2ab   : > { %3809 = vmatmul.msk.f32.vlgmr.msrb.gmra.mxu2 %vm2351_vm0, %v2883_v59  ;;  %v2065_v40 = vadd.f32 %v2064_v61, %v2045_v38 }
 0x2ad   : > { %v2085_v57 = vadd.f32 %v2084_v33, %v2065_v40 }
 0x2af   : > { %v2105_v45 = vadd.f32 %v2104_v42, %v2085_v57 }
 0x2b0   : > { %v4820_v0 = vpop.f32.mrf.mxu0 }
 0x2b1   : > { %2421 = vmatpush.msra.mxu1 %v2105_v45  ;;  %v2324_v58 = vpop.f32.mrf.mxu2  ;;  %v2379_v18 = vsel %vm2378_vm1, %v4820_v0, -inf }
 0x2b3   : > { %v2144_v47 = vpop.f32.mrf.mxu1 }
 0x2b4   : > { %v2145_v32 = vadd.f32 %v2144_v47, %v2125_v43 }
 0x2b6   : > { %v2165_v48 = vadd.f32 %v2164_v41, %v2145_v32 }
 0x2b8   : > { %v2185_v51 = vadd.f32 %v2184_v50, %v2165_v48  ;;  %v4822_v60 = vpop.f32.mrf.mxu0 }
 0x2b9   : > { %v2531_v44 = vsel %vm2378_vm1, %v4822_v60, -inf }
 0x2ba   : > { %v3940_v52 = vpack.i.bf16 %v2185_v51, %v2105_v45  ;;  %2573 = vmatpush.msrb.mxu1 %v2185_v51 }
 0x2c0   : > { %v2680_v6 = vpop.f32.mrf.mxu0 }
 0x2c1   : > { %v2683_v7 = vsel %vm2378_vm1, %v2680_v6, -inf }
 0x2c8   : > { %v2832_v10 = vpop.f32.mrf.mxu0 }
 0x2c9   : > { %v2835_v55 = vsel %vm2378_vm1, %v2832_v10, -inf }
 0x2ca   : > { %v2451_v53 = vpop.f32.mrf.mxu2 }
 0x2cb   : > { %v2454_v54 = vsel %vm2378_vm1, %v2451_v53, -inf }
 0x2cc   : > { %2455 = vmax.xlane.f32.xlu2 %v2454_v54 }
 0x2cd   : > { %v2224_v30 = vpop.f32.mrf.mxu1 }
 0x2ce   : > { %v2225_v56 = vadd.f32 %v2224_v30, %v2205_v26 }
 0x2d0   : > { %v2245_v63 = vadd.f32 %v2244_v49, %v2225_v56  ;;  %v2264_v28 = vpop.f32.mrf.mxu3 }
 0x2d2   : > { %v4846_v62 = vadd.f32 %v2264_v28, %v2245_v63 }
 0x2ec   : > { %v2603_v5 = vpop.f32.mrf.mxu2 }
 0x2ed   : > { %v2304_v1 = vpop.f32.mrf.mxu1  ;;  %v2606_v3 = vsel %vm2378_vm1, %v2603_v5, -inf }
 0x2ee   : > { %v2305_v2 = vadd.f32 %v2304_v1, %v2285_v36  ;;  %2607 = vmax.xlane.f32.xlu0 %v2606_v3  ;;  %v2344_v33 = vpop.f32.mrf.mxu3 }
 0x2f0   : > { %v2325_v12 = vadd.f32 %v2324_v58, %v2305_v2 }
 0x2f2   : > { %v4848_v34 = vadd.f32 %v2344_v33, %v2325_v12 }
 0x2f4   : > { %v3945_v35 = vpack.i.bf16 %v4848_v34, %v4846_v62 }
 0x2f6   : > { %v2755_v20 = vpop.f32.mrf.mxu2  ;;  %2684 = vmax.xlane.f32.xlu0 %v2683_v7 }
 0x2f7   : > { %v2758_v8 = vsel %vm2378_vm1, %v2755_v20, -inf }
 0x2f8   : > { %2759 = vmax.xlane.f32.xlu1 %v2758_v8 }
 0x300   : > { %2532 = vmax.xlane.f32.xlu1 %v2531_v44 }
 0x32e   : > { %v2907_v14 = vpop.f32.mrf.mxu2 }
 0x32f   : > { %v2910_v15 = vsel %vm2378_vm1, %v2907_v14, -inf }
 0x330   : > { %2911 = vmax.xlane.f32.xlu2 %v2910_v15 }
 0x338   : > { %2380 = vmax.xlane.f32.xlu2 %v2379_v18 }
 0x33f   : > { %v2456_v21 = vpop.xlane.xlu2 %2455 }
 0x340   : > { %2836 = vmax.xlane.f32.xlu2 %v2835_v55  ;;  %v2457_v13 = vsub.f32 %v2451_v53, %v2456_v21 }
 0x342   : > { %v2458_v9 = vmul.f32 1.442695, %v2457_v13 }
 0x344   : > { %3960 = vpow2.f32 %v2458_v9 }
 0x34a   : > { %v4833_v16 = vpop.eup %3960 }
 0x34b   : > { %v2460_v37 = vsel %vm2378_vm1, %v4833_v16, 0.0 }
 0x34c   : > { %2461 = vadd.xlane.f32.xlu0 %v2460_v37 }
 0x360   : > { %3941 = vrot.lane.b32.xlu0 %v3940_v52, %s4354_s1 }
 0x361   : > { %v2608_v17 = vpop.xlane.xlu0 %2607 }
 0x362   : > { %v2609_v19 = vsub.f32 %v2603_v5, %v2608_v17 }
 0x364   : > { %v2610_v22 = vmul.f32 1.442695, %v2609_v19 }
 0x366   : > { %3962 = vpow2.f32 %v2610_v22 }
 0x369   : > { %v2685_v11 = vpop.xlane.xlu0 %2684 }
 0x36a   : > { %v2686_v26 = vsub.f32 %v2680_v6, %v2685_v11 }
 0x36b   : > { %v2760_v23 = vpop.xlane.xlu1 %2759 }
 0x36c   : > { %v4838_v24 = vpop.eup %3962  ;;  %v2761_v25 = vsub.f32 %v2755_v20, %v2760_v23  ;;  %v2687_v46 = vmul.f32 1.442695, %v2686_v26 }
 0x36d   : > { %v2612_v27 = vsel %vm2378_vm1, %v4838_v24, 0.0 }
 0x36e   : > { %v2762_v4 = vmul.f32 1.442695, %v2761_v25  ;;  %2613 = vadd.xlane.f32.xlu2 %v2612_v27 }
 0x370   : > { %3964 = vpow2.f32 %v2762_v4 }
 0x371   : > { %3966 = vpow2.f32 %v2687_v46 }
 0x373   : > { %v2533_v40 = vpop.xlane.xlu1 %2532 }
 0x374   : > { %v2534_v43 = vsub.f32 %v4822_v60, %v2533_v40 }
 0x376   : > { %v4842_v29 = vpop.eup %3964  ;;  %v2535_v32 = vmul.f32 1.442695, %v2534_v43 }
 0x377   : > { %v2764_v31 = vsel %vm2378_vm1, %v4842_v29, 0.0  ;;  %v4852_v36 = vpop.eup %3966 }
 0x378   : > { %2765 = vadd.xlane.f32.xlu1 %v2764_v31  ;;  %v2689_v59 = vsel %vm2378_vm1, %v4852_v36, 0.0 }
 0x386   : > { %3946 = vrot.lane.b32.xlu2 %v3945_v35, %s4354_s1 }
 0x38a   : > { %2690 = vadd.xlane.f32.xlu0 %v2689_v59 }
 0x3a3   : > { %v2912_v38 = vpop.xlane.xlu2 %2911 }
 0x3a4   : > { %v2913_v61 = vsub.f32 %v2907_v14, %v2912_v38 }
 0x3a6   : > { %v2914_v39 = vmul.f32 1.442695, %v2913_v61 }
 0x3a8   : > { %3968 = vpow2.f32 %v2914_v39 }
 0x3ab   : > { %v2381_v41 = vpop.xlane.xlu2 %2380 }
 0x3ac   : > { %v2382_v57 = vsub.f32 %v4820_v0, %v2381_v41 }
 0x3ae   : > { %v4858_v42 = vpop.eup %3968  ;;  %v2383_v45 = vmul.f32 1.442695, %v2382_v57 }
 0x3af   : > { %v2916_v47 = vsel %vm2378_vm1, %v4858_v42, 0.0 }
 0x3b0   : > { %3970 = vpow2.f32 %v2383_v45  ;;  %2917 = vadd.xlane.f32.xlu1 %v2916_v47 }
 0x3b1   : > { %3972 = vpow2.f32 %v2535_v32 }
 0x3b3   : > { %v2837_v48 = vpop.xlane.xlu2 %2836 }
 0x3b4   : > { %v2838_v50 = vsub.f32 %v2832_v10, %v2837_v48 }
 0x3b6   : > { %v4863_v49 = vpop.eup %3970  ;;  %v2839_v52 = vmul.f32 1.442695, %v2838_v50 }
 0x3b7   : > { %v2385_v51 = vsel %vm2378_vm1, %v4863_v49, 0.0  ;;  %v4867_v58 = vpop.eup %3972 }
 0x3b8   : > { %2386 = vadd.xlane.f32.xlu1 %v2385_v51  ;;  %3974 = vpow2.f32 %v2839_v52  ;;  %v2537_v53 = vsel %vm2378_vm1, %v4867_v58, 0.0 }
 0x3be   : > { %v4871_v54 = vpop.eup %3974 }
 0x3bf   : > { %v2462_v30 = vpop.xlane.xlu0 %2461  ;;  %v2841_v56 = vsel %vm2378_vm1, %v4871_v54, 0.0 }
 0x3c0   : > { %2538 = vadd.xlane.f32.xlu1 %v2537_v53  ;;  %3976 = vrcp.f32 %v2462_v30  ;;  %v2474_v2 = vand.u32 2147483648, %v2462_v30  ;;  %v2472_v12 = vand.u32 2147483647, %v2462_v30  ;;  %vm2468_vm3 = vweird.f32 %v2462_v30 }
 0x3c2   : > { %v2475_v6 = vor.u32 1.1754944e-38, %v2474_v2  ;;  %vm2473_vm5 = vcmp.eq.f32.partialorder %v2472_v12, 8.507059e+37 }
 0x3c6   : > { %v3977_v63 = vpop.eup %3976 }
 0x3c7   : > { %v2464_v0 = vmul.f32 %v3977_v63, %v2462_v30  ;;  %vm2469_vm2 = vweird.f32 %v3977_v63 }
 0x3c8   : > { %2842 = vadd.xlane.f32.xlu1 %v2841_v56  ;;  %vm2470_vm4 = vmor %vm2468_vm3, %vm2469_vm2 }
 0x3c9   : > { %v2465_v60 = vsub.f32 1.0, %v2464_v0 }
 0x3cb   : > { %v2466_v1 = vmul.f32 %v3977_v63, %v2465_v60 }
 0x3cd   : > { %v2467_v5 = vadd.f32 %v3977_v63, %v2466_v1 }
 0x3cf   : > { %v2471_v3 = vsel %vm2470_vm4, %v3977_v63, %v2467_v5 }
 0x3d0   : > { %v2476_v7 = vsel %vm2473_vm5, %v2475_v6, %v2471_v3 }
 0x3d1   : > { %v2477_v14 = vmul.f32 %v4833_v16, %v2476_v7 }
 0x3d2   : > { %v3942_v20 = vpop.permute.xlu0 %3941 }
 0x3d3   : > { %v3944_v8 = vunpack.i.h.bf16 %v3942_v20  ;;  %v3943_v44 = vunpack.i.l.bf16 %v3942_v20 }
 0x3d5   : > { %2500 = vmatpush.msra.mxu3 %v3943_v44 }
 0x3d6   : > { %3792 = vmatmul.msk.f32.vlgmr.msra.gmra.mxu3 %vm2378_vm1, %v2477_v14 }
 0x3d7   : > { %2652 = vmatpush.msrb.mxu3 %v3944_v8 }
 0x3e1   : > { %v2614_v15 = vpop.xlane.xlu2 %2613 }
 0x3e2   : > { %3978 = vrcp.f32 %v2614_v15  ;;  %v2626_v37 = vand.u32 2147483648, %v2614_v15  ;;  %v2624_v19 = vand.u32 2147483647, %v2614_v15  ;;  %vm2620_vm7 = vweird.f32 %v2614_v15 }
 0x3e4   : > { %v2627_v16 = vor.u32 1.1754944e-38, %v2626_v37  ;;  %vm2625_vm9 = vcmp.eq.f32.partialorder %v2624_v19, 8.507059e+37 }
 0x3e8   : > { %v3979_v18 = vpop.eup %3978 }
 0x3e9   : > { %v2616_v10 = vmul.f32 %v3979_v18, %v2614_v15  ;;  %v3947_v55 = vpop.permute.xlu2 %3946  ;;  %vm2621_vm6 = vweird.f32 %v3979_v18 }
 0x3ea   : > { %v3948_v21 = vunpack.i.l.bf16 %v3947_v55  ;;  %vm2622_vm8 = vmor %vm2620_vm7, %vm2621_vm6  ;;  %v3949_v11 = vunpack.i.h.bf16 %v3947_v55 }
 0x3eb   : > { %v2617_v13 = vsub.f32 1.0, %v2616_v10  ;;  %v2766_v9 = vpop.xlane.xlu1 %2765 }
 0x3ec   : > { %3980 = vrcp.f32 %v2766_v9  ;;  %2804 = vmatpush.msra.mxu3 %v3948_v21  ;;  %v2778_v26 = vand.u32 2147483648, %v2766_v9  ;;  %v2776_v33 = vand.u32 2147483647, %v2766_v9  ;;  %vm2772_vm11 = vweird.f32 %v2766_v9 }
 0x3ed   : > { %v2618_v17 = vmul.f32 %v3979_v18, %v2617_v13 }
 0x3ee   : > { %v2779_v59 = vor.u32 1.1754944e-38, %v2778_v26  ;;  %vm2777_vm13 = vcmp.eq.f32.partialorder %v2776_v33, 8.507059e+37 }
 0x3ef   : > { %v2619_v22 = vadd.f32 %v3979_v18, %v2618_v17 }
 0x3f1   : > { %v2623_v23 = vsel %vm2622_vm8, %v3979_v18, %v2619_v22 }
 0x3f2   : > { %v3981_v25 = vpop.eup %3980  ;;  %v2628_v27 = vsel %vm2625_vm9, %v2627_v16, %v2623_v23 }
 0x3f3   : > { %v2768_v4 = vmul.f32 %v3981_v25, %v2766_v9  ;;  %v2629_v28 = vmul.f32 %v4838_v24, %v2628_v27  ;;  %vm2773_vm10 = vweird.f32 %v3981_v25 }
 0x3f4   : > { %vm2774_vm12 = vmor %vm2772_vm11, %vm2773_vm10 }
 0x3f5   : > { %v2769_v31 = vsub.f32 1.0, %v2768_v4  ;;  %3798 = vmatmul.msk.f32.vlgmr.msrb.gmra.mxu3 %vm2378_vm1, %v2629_v28 }
 0x3f6   : > { %2956 = vmatpush.msrb.mxu3 %v3949_v11 }
 0x3f7   : > { %v2770_v46 = vmul.f32 %v3981_v25, %v2769_v31 }
 0x3f9   : > { %v2771_v35 = vadd.f32 %v3981_v25, %v2770_v46 }
 0x3fb   : > { %v2775_v38 = vsel %vm2774_vm12, %v3981_v25, %v2771_v35 }
 0x3fc   : > { %v2780_v61 = vsel %vm2777_vm13, %v2779_v59, %v2775_v38 }
 0x3fd   : > { %v2781_v39 = vmul.f32 %v4842_v29, %v2780_v61  ;;  %v4881_v41 = vpop.xlane.xlu0 %2690 }
 0x3fe   : > { %vm2697_vm13 = vweird.f32 %v4881_v41  ;;  %v2701_v25 = vand.u32 2147483647, %v4881_v41 }
 0x3ff   : > { %3804 = vmatmul.msk.f32.vlgmr.msra.gmra.mxu3 %vm2378_vm1, %v2781_v39  ;;  %v3169_v39 = vld [vmem:[#allocation13 + $0x5e0] sm:$0xff] }
 0x400   : > { %3287 = vmatpush.msra.mxu2 %v3169_v39  ;;  %v3118_v39 = vld [vmem:[#allocation13 + $0x448] sm:$0xff] }
 0x423   : > { %v2918_v24 = vpop.xlane.xlu1 %2917 }
 0x424   : > { %3982 = vrcp.f32 %v2918_v24  ;;  %v2930_v47 = vand.u32 2147483648, %v2918_v24  ;;  %v2928_v48 = vand.u32 2147483647, %v2918_v24  ;;  %vm2924_vm15 = vweird.f32 %v2918_v24 }
 0x426   : > { %v2931_v51 = vor.u32 1.1754944e-38, %v2930_v47  ;;  %vm2929_vm3 = vcmp.eq.f32.partialorder %v2928_v48, 8.507059e+37  ;;  %v3153_v47 = vld [vmem:[#allocation13 + $0x560] sm:$0xff] }
 0x427   : > { %v3017_v48 = vld [vmem:[#allocation13 + $0x120] sm:$0xff] }
 0x42a   : > { %v3983_v40 = vpop.eup %3982 }
 0x42b   : > { %v2920_v57 = vmul.f32 %v3983_v40, %v2918_v24  ;;  %v2387_v43 = vpop.xlane.xlu1 %2386  ;;  %vm2925_vm14 = vweird.f32 %v3983_v40  ;;  %v3037_v24 = vld [vmem:[#allocation13 + $0x1c0] sm:$0xff] }
 0x42c   : > { %3984 = vrcp.f32 %v2387_v43  ;;  %vm2926_vm2 = vmor %vm2924_vm15, %vm2925_vm14  ;;  %v2399_v1 = vand.u32 2147483648, %v2387_v43  ;;  %v2397_v5 = vand.u32 2147483647, %v2387_v43  ;;  %vm2393_vm5 = vweird.f32 %v2387_v43 }
 0x42d   : > { %v2921_v45 = vsub.f32 1.0, %v2920_v57  ;;  %3986 = vrcp.f32 %v4881_v41  ;;  %vm2702_vm15 = vcmp.eq.f32.partialorder %v2701_v25, 8.507059e+37  ;;  %v3029_v57 = vld [vmem:[#allocation13 + $0x180] sm:$0xff]  ;;  %v3146_v25 = vld [vmem:[#allocation13 + $0x528] sm:$0xff] }
 0x42e   : > { %v2400_v7 = vor.u32 1.1754944e-38, %v2399_v1  ;;  %vm2398_vm7 = vcmp.eq.f32.partialorder %v2397_v5, 8.507059e+37  ;;  %v3133_v1 = vld [vmem:[#allocation13 + $0x4c0] sm:$0xff] }
 0x42f   : > { %v2922_v32 = vmul.f32 %v3983_v40, %v2921_v45  ;;  %v3025_v45 = vld [vmem:[#allocation13 + $0x160] sm:$0xff] }
 0x430   : > { %v2997_v5 = vld [vmem:[#allocation13 + $0x80] sm:$0xff] }
 0x431   : > { %v2923_v50 = vadd.f32 %v3983_v40, %v2922_v32  ;;  %v3149_v32 = vld [vmem:[#allocation13 + $0x540] sm:$0xff] }
 0x432   : > { %v3985_v29 = vpop.eup %3984 }
 0x433   : > { %v2927_v52 = vsel %vm2926_vm2, %v3983_v40, %v2923_v50  ;;  %v2389_v53 = vmul.f32 %v3985_v29, %v2387_v43  ;;  %v2539_v30 = vpop.xlane.xlu1 %2538  ;;  %v3987_v56 = vpop.eup %3986  ;;  %vm2394_vm4 = vweird.f32 %v3985_v29  ;;  %v3165_v40 = vld [vmem:[#allocation13 + $0x5c0] sm:$0xff] }
 0x434   : > { %v2932_v63 = vsel %vm2929_vm3, %v2931_v51, %v2927_v52  ;;  %3988 = vrcp.f32 %v2539_v30  ;;  %v2693_v2 = vmul.f32 %v3987_v56, %v4881_v41  ;;  %vm2395_vm6 = vmor %vm2393_vm5, %vm2394_vm4  ;;  %v2551_v10 = vand.u32 2147483648, %v2539_v30  ;;  %3288 = vmatpush.msra.mxu2 %v3165_v40  ;;  %v3157_v43 = vld [vmem:[#allocation13 + $0x580] sm:$0xff]  ;;  %v3114_v40 = vld [vmem:[#allocation13 + $0x428] sm:$0xff] }
 0x435   : > { %v2390_v0 = vsub.f32 1.0, %v2389_v53  ;;  %v2933_v60 = vmul.f32 %v4858_v42, %v2932_v63  ;;  %v2549_v13 = vand.u32 2147483647, %v2539_v30  ;;  %vm2545_vm9 = vweird.f32 %v2539_v30  ;;  %v3145_v50 = vld [vmem:[#allocation13 + $0x520] sm:$0xff] }
 0x436   : > { %v2694_v20 = vsub.f32 1.0, %v2693_v2  ;;  %vm2698_vm10 = vweird.f32 %v3987_v56  ;;  %v2552_v17 = vor.u32 1.1754944e-38, %v2551_v10  ;;  %v3009_v63 = vld [vmem:[#allocation13 + $0xe0] sm:$0xff]  ;;  %v3170_v10 = vld [vmem:[#allocation13 + $0x5e8] sm:$0xff] }
 0x437   : > { %v2391_v12 = vmul.f32 %v3985_v29, %v2390_v0  ;;  %3810 = vmatmul.msk.f32.vlgmr.msrb.gmra.mxu3 %vm2378_vm1, %v2933_v60  ;;  %vm2550_vm12 = vcmp.eq.f32.partialorder %v2549_v13, 8.507059e+37  ;;  %vm2699_vm14 = vmor %vm2697_vm13, %vm2698_vm10  ;;  %v3137_v0 = vld [vmem:[#allocation13 + $0x4e0] sm:$0xff]  ;;  %v3034_v13 = vld [vmem:[#allocation13 + $0x1a8] sm:$0xff] }
 0x438   : > { %v2695_v55 = vmul.f32 %v3987_v56, %v2694_v20  ;;  %v3005_v60 = vld [vmem:[#allocation13 + $0xc0] sm:$0xff] }
 0x439   : > { %v2392_v3 = vadd.f32 %v3985_v29, %v2391_v12  ;;  %v3001_v2 = vld [vmem:[#allocation13 + $0xa0] sm:$0xff] }
 0x43a   : > { %v3989_v6 = vpop.eup %3988  ;;  %v2696_v19 = vadd.f32 %v3987_v56, %v2695_v55  ;;  %v3129_v12 = vld [vmem:[#allocation13 + $0x4a0] sm:$0xff]  ;;  %v3038_v55 = vld [vmem:[#allocation13 + $0x1c8] sm:$0xff] }
 0x43b   : > { %v2396_v8 = vsel %vm2395_vm6, %v3985_v29, %v2392_v3  ;;  %v2541_v44 = vmul.f32 %v3989_v6, %v2539_v30  ;;  %v2843_v14 = vpop.xlane.xlu1 %2842  ;;  %vm2546_vm8 = vweird.f32 %v3989_v6  ;;  %v3013_v30 = vld [vmem:[#allocation13 + $0x100] sm:$0xff] }
 0x43c   : > { %v2401_v15 = vsel %vm2398_vm7, %v2400_v7, %v2396_v8  ;;  %3990 = vrcp.f32 %v2843_v14  ;;  %vm2547_vm11 = vmor %vm2545_vm9, %vm2546_vm8  ;;  %v2700_v4 = vsel %vm2699_vm14, %v3987_v56, %v2696_v19  ;;  %v2855_v46 = vand.u32 2147483648, %v2843_v14  ;;  %v3141_v56 = vld [vmem:[#allocation13 + $0x500] sm:$0xff]  ;;  %v3026_v19 = vld [vmem:[#allocation13 + $0x168] sm:$0xff] }
 0x43d   : > { %v2542_v42 = vsub.f32 1.0, %v2541_v44  ;;  %v2402_v18 = vmul.f32 %v4863_v49, %v2401_v15  ;;  %v2703_v49 = vand.u32 2147483648, %v4881_v41  ;;  %vm2849_vm3 = vweird.f32 %v2843_v14  ;;  %v3161_v41 = vld [vmem:[#allocation13 + $0x5a0] sm:$0xff] }
 0x43e   : > { %v2853_v35 = vand.u32 2147483647, %v2843_v14  ;;  %3289 = vmatpush.msra.mxu2 %v3161_v41  ;;  %v3125_v3 = vld [vmem:[#allocation13 + $0x480] sm:$0xff]  ;;  %v3110_v41 = vld [vmem:[#allocation13 + $0x408] sm:$0xff] }
 0x43f   : > { %v2543_v21 = vmul.f32 %v3989_v6, %v2542_v42  ;;  %3789 = vmatmul.msk.f32.vlgmr.msra.gmra.mxu1 %vm2378_vm1, %v2402_v18  ;;  %v2704_v11 = vor.u32 1.1754944e-38, %v2703_v49  ;;  %v3121_v7 = vld [vmem:[#allocation13 + $0x460] sm:$0xff]  ;;  %v3042_v18 = vld [vmem:[#allocation13 + $0x1e8] sm:$0xff] }
 0x440   : > { %2725 = vmatpush.msra.mxu1 %v4846_v62  ;;  %vm2854_vm5 = vcmp.eq.f32.partialorder %v2853_v35, 8.507059e+37  ;;  %3290 = vmatpush.msra.mxu2 %v3157_v43  ;;  %v2989_v20 = vld [vmem:[#allocation13 + $0x40] sm:$0xff]  ;;  %v3150_v49 = vld [vmem:[#allocation13 + $0x548] sm:$0xff] }
 0x441   : > { %v2544_v9 = vadd.f32 %v3989_v6, %v2543_v21  ;;  %v2705_v31 = vsel %vm2702_vm15, %v2704_v11, %v2700_v4  ;;  %v3117_v8 = vld [vmem:[#allocation13 + $0x440] sm:$0xff]  ;;  %v3166_v21 = vld [vmem:[#allocation13 + $0x5c8] sm:$0xff] }
 0x442   : > { %v3991_v37 = vpop.eup %3990  ;;  %v2706_v33 = vmul.f32 %v4852_v36, %v2705_v31  ;;  %v3033_v36 = vld [vmem:[#allocation13 + $0x1a0] sm:$0xff]  ;;  %3291 = vmatpush.msra.mxu2 %v3153_v47  ;;  %v3138_v31 = vld [vmem:[#allocation13 + $0x4e8] sm:$0xff] }
 0x443   : > { %v2548_v22 = vsel %vm2547_vm11, %v3989_v6, %v2544_v9  ;;  %v2845_v16 = vmul.f32 %v3991_v37, %v2843_v14  ;;  %vm2850_vm2 = vweird.f32 %v3991_v37  ;;  %v2993_v6 = vld [vmem:[#allocation13 + $0x60] sm:$0xff]  ;;  %v3162_v9 = vld [vmem:[#allocation13 + $0x5a8] sm:$0xff] }
 0x444   : > { %v2553_v23 = vsel %vm2550_vm12, %v2552_v17, %v2548_v22  ;;  %vm2851_vm4 = vmor %vm2849_vm3, %vm2850_vm2  ;;  %3292 = vmatpush.msra.mxu2 %v3149_v32  ;;  %v2985_v44 = vld [vmem:[#allocation13 + $0x20] sm:$0xff]  ;;  %v3158_v17 = vld [vmem:[#allocation13 + $0x588] sm:$0xff] }
 0x445   : > { %v2846_v27 = vsub.f32 1.0, %v2845_v16  ;;  %v2554_v62 = vmul.f32 %v4867_v58, %v2553_v23  ;;  %v2856_v58 = vor.u32 1.1754944e-38, %v2855_v46  ;;  %v3113_v14 = vld [vmem:[#allocation13 + $0x420] sm:$0xff]  ;;  %v3154_v22 = vld [vmem:[#allocation13 + $0x568] sm:$0xff] }
 0x446   : > { %3293 = vmatpush.msra.mxu2 %v3145_v50  ;;  %v2981_v15 = vld [vmem:[#allocation13] sm:$0xff]  ;;  %v3022_v16 = vld [vmem:[#allocation13 + $0x148] sm:$0xff] }
 0x447   : > { %v2847_v28 = vmul.f32 %v3991_v37, %v2846_v27  ;;  %3795 = vmatmul.msk.f32.vlgmr.msrb.gmra.mxu1 %vm2378_vm1, %v2554_v62  ;;  %v3109_v42 = vld [vmem:[#allocation13 + $0x400] sm:$0xff]  ;;  %v3018_v23 = vld [vmem:[#allocation13 + $0x128] sm:$0xff] }
 0x448   : > { %2877 = vmatpush.msrb.mxu1 %v4848_v34  ;;  %v3041_v34 = vld [vmem:[#allocation13 + $0x1e0] sm:$0xff]  ;;  %3294 = vmatpush.msra.mxu2 %v3141_v56  ;;  %v3014_v27 = vld [vmem:[#allocation13 + $0x108] sm:$0xff] }
 0x449   : > { %v2848_v26 = vadd.f32 %v3991_v37, %v2847_v28  ;;  %3247 = vmatpush.msra.mxu0 %v3041_v34  ;;  %v3142_v62 = vld [vmem:[#allocation13 + $0x508] sm:$0xff]  ;;  %v3105_v43 = vld [vmem:[#allocation13 + $0x3e0] sm:$0xff] }
 0x44a   : > { %3295 = vmatpush.msra.mxu2 %v3137_v0  ;;  %v3010_v28 = vld [vmem:[#allocation13 + $0xe8] sm:$0xff]  ;;  %v3101_v47 = vld [vmem:[#allocation13 + $0x3c0] sm:$0xff] }
 0x44b   : > { %v2852_v59 = vsel %vm2851_vm4, %v3991_v37, %v2848_v26  ;;  %3248 = vmatpush.msra.mxu0 %v3037_v24  ;;  %v3030_v37 = vld [vmem:[#allocation13 + $0x188] sm:$0xff]  ;;  %v3097_v32 = vld [vmem:[#allocation13 + $0x3a0] sm:$0xff] }
 0x44c   : > { %v2857_v38 = vsel %vm2854_vm5, %v2856_v58, %v2852_v59  ;;  %3296 = vmatpush.msra.mxu2 %v3133_v1  ;;  %v3006_v26 = vld [vmem:[#allocation13 + $0xc8] sm:$0xff]  ;;  %v3093_v50 = vld [vmem:[#allocation13 + $0x380] sm:$0xff] }
 0x44d   : > { %v2858_v61 = vmul.f32 %v4871_v54, %v2857_v38  ;;  %3249 = vmatpush.msra.mxu0 %v3033_v36  ;;  %v3021_v54 = vld [vmem:[#allocation13 + $0x140] sm:$0xff]  ;;  %v3134_v46 = vld [vmem:[#allocation13 + $0x4c8] sm:$0xff] }
 0x44e   : > { %3297 = vmatpush.msra.mxu2 %v3129_v12  ;;  %v3130_v35 = vld [vmem:[#allocation13 + $0x4a8] sm:$0xff]  ;;  %v3213_v56 = vld [vmem:[#allocation13 + $0x740] sm:$0xff] }
 0x44f   : > { %3801 = vmatmul.msk.f32.vlgmr.msra.gmra.mxu1 %vm2378_vm1, %v2706_v33  ;;  %3250 = vmatpush.msra.mxu0 %v3029_v57  ;;  %v3002_v33 = vld [vmem:[#allocation13 + $0xa8] sm:$0xff]  ;;  %v3209_v0 = vld [vmem:[#allocation13 + $0x720] sm:$0xff] }
 0x450   : > { %3298 = vmatpush.msra.mxu2 %v3125_v3  ;;  %v2998_v59 = vld [vmem:[#allocation13 + $0x88] sm:$0xff]  ;;  %3267 = vmatpush.msra.mxu1 %v3105_v43  ;;  %v3205_v1 = vld [vmem:[#allocation13 + $0x700] sm:$0xff] }
 0x451   : > { %3251 = vmatpush.msra.mxu0 %v3025_v45  ;;  %v3126_v58 = vld [vmem:[#allocation13 + $0x488] sm:$0xff]  ;;  %v3233_v45 = vld [vmem:[#allocation13 + $0x7e0] sm:$0xff] }
 0x452   : > { %3299 = vmatpush.msra.mxu2 %v3121_v7  ;;  %v2994_v38 = vld [vmem:[#allocation13 + $0x68] sm:$0xff]  ;;  %3307 = vmatpush.msra.mxu3 %v3233_v45  ;;  %v3201_v12 = vld [vmem:[#allocation13 + $0x6e0] sm:$0xff]  ;;  %v3003_v45 = vld [vmem:[#allocation13 + $0xb0] sm:$0xff] }
 0x453   : > { %3252 = vmatpush.msra.mxu0 %v3021_v54  ;;  %v2990_v34 = vld [vmem:[#allocation13 + $0x48] sm:$0xff]  ;;  %v3229_v54 = vld [vmem:[#allocation13 + $0x7c0] sm:$0xff]  ;;  %3268 = vmatpush.msra.mxu1 %v3101_v47  ;;  %v3131_v47 = vld [vmem:[#allocation13 + $0x4b0] sm:$0xff] }
 0x454   : > { %3300 = vmatpush.msra.mxu2 %v3117_v8  ;;  %v2986_v24 = vld [vmem:[#allocation13 + $0x28] sm:$0xff]  ;;  %3308 = vmatpush.msra.mxu3 %v3229_v54  ;;  %v3069_v7 = vld [vmem:[#allocation13 + $0x2c0] sm:$0xff] }
 0x455   : > { %3253 = vmatpush.msra.mxu0 %v3017_v48  ;;  %v2982_v36 = vld [vmem:[#allocation13 + $0x8] sm:$0xff]  ;;  %v3225_v48 = vld [vmem:[#allocation13 + $0x7a0] sm:$0xff]  ;;  %3269 = vmatpush.msra.mxu1 %v3097_v32 }
 0x456   : > { %3301 = vmatpush.msra.mxu2 %v3113_v14  ;;  %3309 = vmatpush.msra.mxu3 %v3225_v48  ;;  %v3171_v14 = vld [vmem:[#allocation13 + $0x5f0] sm:$0xff]  ;;  %v3226_v43 = vld [vmem:[#allocation13 + $0x7a8] sm:$0xff] }
 0x457   : > { %3807 = vmatmul.msk.f32.vlgmr.msrb.gmra.mxu1 %vm2378_vm1, %v2858_v61  ;;  %3254 = vmatpush.msra.mxu0 %v3013_v30  ;;  %v3122_v61 = vld [vmem:[#allocation13 + $0x468] sm:$0xff]  ;;  %v3085_v30 = vld [vmem:[#allocation13 + $0x340] sm:$0xff]  ;;  %v2999_v48 = vld [vmem:[#allocation13 + $0x90] sm:$0xff] }
 0x458   : > { %3302 = vmatpush.msra.mxu2 %v3109_v42  ;;  %3270 = vmatpush.msra.mxu1 %v3093_v50  ;;  %v3094_v54 = vld [vmem:[#allocation13 + $0x388] sm:$0xff]  ;;  %v3127_v50 = vld [vmem:[#allocation13 + $0x490] sm:$0xff] }
 0x459   : > { %v2502_v29 = vpop.f32.mrf.mxu3  ;;  %3255 = vmatpush.msra.mxu0 %v3009_v63  ;;  %v3081_v63 = vld [vmem:[#allocation13 + $0x320] sm:$0xff]  ;;  %v3222_v32 = vld [vmem:[#allocation13 + $0x788] sm:$0xff] }
 0x45a   : > { %3367 = vmatpush.msrb.mxu2 %v3170_v10  ;;  %v3193_v10 = vld [vmem:[#allocation13 + $0x6a0] sm:$0xff] }
 0x45b   : > { %3256 = vmatpush.msra.mxu0 %v3005_v60  ;;  %v3077_v60 = vld [vmem:[#allocation13 + $0x300] sm:$0xff] }
 0x45c   : > { %3368 = vmatpush.msrb.mxu2 %v3166_v21  ;;  %v3167_v21 = vld [vmem:[#allocation13 + $0x5d0] sm:$0xff] }
 0x45d   : > { %3257 = vmatpush.msra.mxu0 %v3001_v2  ;;  %v3073_v2 = vld [vmem:[#allocation13 + $0x2e0] sm:$0xff] }
 0x45e   : > { %3369 = vmatpush.msrb.mxu2 %v3162_v9  ;;  %v3189_v9 = vld [vmem:[#allocation13 + $0x680] sm:$0xff] }
 0x45f   : > { %3258 = vmatpush.msra.mxu0 %v2997_v5 }
 0x460   : > { %3370 = vmatpush.msrb.mxu2 %v3158_v17  ;;  %v3163_v17 = vld [vmem:[#allocation13 + $0x5b0] sm:$0xff] }
 0x461   : > { %3259 = vmatpush.msra.mxu0 %v2993_v6 }
 0x462   : > { %3371 = vmatpush.msrb.mxu2 %v3154_v22  ;;  %v3185_v22 = vld [vmem:[#allocation13 + $0x660] sm:$0xff] }
 0x463   : > { %3260 = vmatpush.msra.mxu0 %v2989_v20  ;;  %v3197_v20 = vld [vmem:[#allocation13 + $0x6c0] sm:$0xff] }
 0x464   : > { %3372 = vmatpush.msrb.mxu2 %v3150_v49  ;;  %v3159_v49 = vld [vmem:[#allocation13 + $0x590] sm:$0xff] }
 0x465   : > { %3261 = vmatpush.msra.mxu0 %v2985_v44  ;;  %v3043_v44 = vld [vmem:[#allocation13 + $0x1f0] sm:$0xff] }
 0x466   : > { %3373 = vmatpush.msrb.mxu2 %v3146_v25  ;;  %v3155_v25 = vld [vmem:[#allocation13 + $0x570] sm:$0xff] }
 0x467   : > { %3262 = vmatpush.msra.mxu0 %v2981_v15 }
 0x468   : > { %3374 = vmatpush.msrb.mxu2 %v3142_v62  ;;  %v3181_v62 = vld [vmem:[#allocation13 + $0x640] sm:$0xff] }
 0x469   : > { %3327 = vmatpush.msrb.mxu0 %v3042_v18  ;;  %v3065_v18 = vld [vmem:[#allocation13 + $0x2a0] sm:$0xff] }
 0x46a   : > { %3375 = vmatpush.msrb.mxu2 %v3138_v31  ;;  %v3177_v31 = vld [vmem:[#allocation13 + $0x620] sm:$0xff] }
 0x46b   : > { %3328 = vmatpush.msrb.mxu0 %v3038_v55  ;;  %v3039_v55 = vld [vmem:[#allocation13 + $0x1d0] sm:$0xff] }
 0x46c   : > { %3376 = vmatpush.msrb.mxu2 %v3134_v46  ;;  %v3147_v46 = vld [vmem:[#allocation13 + $0x530] sm:$0xff] }
 0x46d   : > { %3329 = vmatpush.msrb.mxu0 %v3034_v13  ;;  %v3061_v13 = vld [vmem:[#allocation13 + $0x280] sm:$0xff] }
 0x46e   : > { %3377 = vmatpush.msrb.mxu2 %v3130_v35  ;;  %v3173_v35 = vld [vmem:[#allocation13 + $0x600] sm:$0xff] }
 0x46f   : > { %3330 = vmatpush.msrb.mxu0 %v3030_v37  ;;  %v3035_v37 = vld [vmem:[#allocation13 + $0x1b0] sm:$0xff] }
 0x470   : > { %3378 = vmatpush.msrb.mxu2 %v3126_v58  ;;  %v3143_v58 = vld [vmem:[#allocation13 + $0x510] sm:$0xff] }
 0x471   : > { %3331 = vmatpush.msrb.mxu0 %v3026_v19  ;;  %v3057_v19 = vld [vmem:[#allocation13 + $0x260] sm:$0xff] }
 0x472   : > { %3379 = vmatpush.msrb.mxu2 %v3122_v61  ;;  %v3234_v61 = vld [vmem:[#allocation13 + $0x7e8] sm:$0xff] }
 0x473   : > { %3332 = vmatpush.msrb.mxu0 %v3022_v16  ;;  %v3031_v16 = vld [vmem:[#allocation13 + $0x190] sm:$0xff] }
 0x474   : > { %3380 = vmatpush.msrb.mxu2 %v3118_v39  ;;  %v3139_v39 = vld [vmem:[#allocation13 + $0x4f0] sm:$0xff] }
 0x475   : > { %3333 = vmatpush.msrb.mxu0 %v3018_v23  ;;  %v3027_v23 = vld [vmem:[#allocation13 + $0x170] sm:$0xff] }
 0x476   : > { %3381 = vmatpush.msrb.mxu2 %v3114_v40  ;;  %v3230_v40 = vld [vmem:[#allocation13 + $0x7c8] sm:$0xff] }
 0x477   : > { %3334 = vmatpush.msrb.mxu0 %v3014_v27  ;;  %v3053_v27 = vld [vmem:[#allocation13 + $0x240] sm:$0xff] }
 0x478   : > { %v4900_v51 = vpop.f32.mrf.mxu3  ;;  %3382 = vmatpush.msrb.mxu2 %v3110_v41  ;;  %v3135_v41 = vld [vmem:[#allocation13 + $0x4d0] sm:$0xff] }
 0x479   : > { %3335 = vmatpush.msrb.mxu0 %v3010_v28  ;;  %v3151_v28 = vld [vmem:[#allocation13 + $0x550] sm:$0xff] }
 0x47b   : > { %3336 = vmatpush.msrb.mxu0 %v3006_v26  ;;  %v3019_v26 = vld [vmem:[#allocation13 + $0x130] sm:$0xff] }
 0x47d   : > { %3337 = vmatpush.msrb.mxu0 %v3002_v33  ;;  %v3045_v33 = vld [vmem:[#allocation13 + $0x200] sm:$0xff] }
 0x47f   : > { %3338 = vmatpush.msrb.mxu0 %v2998_v59  ;;  %v3015_v59 = vld [vmem:[#allocation13 + $0x110] sm:$0xff] }
 0x481   : > { %3339 = vmatpush.msrb.mxu0 %v2994_v38  ;;  %v3106_v38 = vld [vmem:[#allocation13 + $0x3e8] sm:$0xff] }
 0x482   : > { %v2806_v52 = vpop.f32.mrf.mxu3 }
 0x483   : > { %v3950_v53 = vpack.i.bf16 %v2502_v29, %v2806_v52  ;;  %3340 = vmatpush.msrb.mxu0 %v2990_v34  ;;  %v3221_v29 = vld [vmem:[#allocation13 + $0x780] sm:$0xff]  ;;  %v3011_v34 = vld [vmem:[#allocation13 + $0xf0] sm:$0xff] }
 0x484   : > { %3310 = vmatpush.msra.mxu3 %v3221_v29  ;;  %v3217_v52 = vld [vmem:[#allocation13 + $0x760] sm:$0xff]  ;;  %v3090_v29 = vld [vmem:[#allocation13 + $0x368] sm:$0xff] }
 0x485   : > { %3951 = vrot.lane.b32.xlu2 %v3950_v53, %s4354_s1  ;;  %3341 = vmatpush.msrb.mxu0 %v2986_v24  ;;  %v3102_v24 = vld [vmem:[#allocation13 + $0x3c8] sm:$0xff] }
 0x486   : > { %3311 = vmatpush.msra.mxu3 %v3217_v52  ;;  %v2995_v52 = vld [vmem:[#allocation13 + $0x70] sm:$0xff] }
 0x487   : > { %3342 = vmatpush.msrb.mxu0 %v2982_v36  ;;  %v3007_v36 = vld [vmem:[#allocation13 + $0xd0] sm:$0xff] }
 0x488   : > { %3312 = vmatpush.msra.mxu3 %v3213_v56  ;;  %v3086_v56 = vld [vmem:[#allocation13 + $0x348] sm:$0xff] }
 0x48a   : > { %3313 = vmatpush.msra.mxu3 %v3209_v0  ;;  %v2991_v0 = vld [vmem:[#allocation13 + $0x50] sm:$0xff] }
 0x48c   : > { %3314 = vmatpush.msra.mxu3 %v3205_v1  ;;  %v3082_v1 = vld [vmem:[#allocation13 + $0x328] sm:$0xff] }
 0x48e   : > { %3315 = vmatpush.msra.mxu3 %v3201_v12  ;;  %v2987_v12 = vld [vmem:[#allocation13 + $0x30] sm:$0xff] }
 0x490   : > { %3316 = vmatpush.msra.mxu3 %v3197_v20  ;;  %v3111_v20 = vld [vmem:[#allocation13 + $0x410] sm:$0xff] }
 0x492   : > { %3317 = vmatpush.msra.mxu3 %v3193_v10  ;;  %v3040_v10 = vld [vmem:[#allocation13 + $0x1d8] sm:$0xff] }
 0x494   : > { %3318 = vmatpush.msra.mxu3 %v3189_v9  ;;  %v3036_v9 = vld [vmem:[#allocation13 + $0x1b8] sm:$0xff] }
 0x496   : > { %3319 = vmatpush.msra.mxu3 %v3185_v22  ;;  %v3032_v22 = vld [vmem:[#allocation13 + $0x198] sm:$0xff] }
 0x498   : > { %3320 = vmatpush.msra.mxu3 %v3181_v62  ;;  %v3058_v62 = vld [vmem:[#allocation13 + $0x268] sm:$0xff] }
 0x49a   : > { %3321 = vmatpush.msra.mxu3 %v3177_v31  ;;  %v3054_v31 = vld [vmem:[#allocation13 + $0x248] sm:$0xff] }
 0x49c   : > { %3322 = vmatpush.msra.mxu3 %v3173_v35  ;;  %v3050_v35 = vld [vmem:[#allocation13 + $0x228] sm:$0xff] }
 0x49e   : > { %3387 = vmatpush.msrb.mxu3 %v3234_v61  ;;  %v3046_v61 = vld [vmem:[#allocation13 + $0x208] sm:$0xff] }
 0x4a0   : > { %3388 = vmatpush.msrb.mxu3 %v3230_v40  ;;  %v3008_v40 = vld [vmem:[#allocation13 + $0xd8] sm:$0xff] }
 0x4a2   : > { %3389 = vmatpush.msrb.mxu3 %v3226_v43  ;;  %v3000_v43 = vld [vmem:[#allocation13 + $0x98] sm:$0xff] }
 0x4a4   : > { %3390 = vmatpush.msrb.mxu3 %v3222_v32  ;;  %v2992_v32 = vld [vmem:[#allocation13 + $0x58] sm:$0xff] }
 0x4ba   : > { %v2958_v4 = vpop.f32.mrf.mxu3 }
 0x4bb   : > { %v3955_v11 = vpack.i.bf16 %v4900_v51, %v2958_v4  ;;  %v3089_v51 = vld [vmem:[#allocation13 + $0x360] sm:$0xff]  ;;  %v3023_v4 = vld [vmem:[#allocation13 + $0x150] sm:$0xff] }
 0x4bc   : > { %v2423_v57 = vpop.f32.mrf.mxu1  ;;  %3271 = vmatpush.msra.mxu1 %v3089_v51  ;;  %v3218_v51 = vld [vmem:[#allocation13 + $0x768] sm:$0xff] }
 0x4bd   : > { %3956 = vrot.lane.b32.xlu1 %v3955_v11, %s4354_s1  ;;  %v3049_v11 = vld [vmem:[#allocation13 + $0x220] sm:$0xff]  ;;  %3391 = vmatpush.msrb.mxu3 %v3218_v51  ;;  %v2984_v51 = vld [vmem:[#allocation13 + $0x18] sm:$0xff] }
 0x4be   : > { %3272 = vmatpush.msra.mxu1 %v3085_v30  ;;  %v3123_v30 = vld [vmem:[#allocation13 + $0x470] sm:$0xff] }
 0x4c0   : > { %3273 = vmatpush.msra.mxu1 %v3081_v63  ;;  %v3214_v63 = vld [vmem:[#allocation13 + $0x748] sm:$0xff] }
 0x4c1   : > { %3392 = vmatpush.msrb.mxu3 %v3214_v63 }
 0x4c2   : > { %3274 = vmatpush.msra.mxu1 %v3077_v60  ;;  %v3119_v60 = vld [vmem:[#allocation13 + $0x450] sm:$0xff] }
 0x4c4   : > { %v4905_v53 = vpop.f32.mrf.mxu1  ;;  %3275 = vmatpush.msra.mxu1 %v3073_v2  ;;  %v3210_v2 = vld [vmem:[#allocation13 + $0x728] sm:$0xff] }
 0x4c5   : > { %3393 = vmatpush.msrb.mxu3 %v3210_v2 }
 0x4c6   : > { %3276 = vmatpush.msra.mxu1 %v3069_v7  ;;  %v2983_v7 = vld [vmem:[#allocation13 + $0x10] sm:$0xff] }
 0x4c8   : > { %3277 = vmatpush.msra.mxu1 %v3065_v18  ;;  %v3202_v18 = vld [vmem:[#allocation13 + $0x6e8] sm:$0xff] }
 0x4ca   : > { %3278 = vmatpush.msra.mxu1 %v3061_v13  ;;  %v3198_v13 = vld [vmem:[#allocation13 + $0x6c8] sm:$0xff] }
 0x4cc   : > { %v2727_v8 = vpop.f32.mrf.mxu1  ;;  %3279 = vmatpush.msra.mxu1 %v3057_v19  ;;  %v3194_v19 = vld [vmem:[#allocation13 + $0x6a8] sm:$0xff] }
 0x4ce   : > { %3280 = vmatpush.msra.mxu1 %v3053_v27  ;;  %v3156_v27 = vld [vmem:[#allocation13 + $0x578] sm:$0xff] }
 0x4d0   : > { %3281 = vmatpush.msra.mxu1 %v3049_v11  ;;  %v3152_v11 = vld [vmem:[#allocation13 + $0x558] sm:$0xff] }
 0x4d2   : > { %3282 = vmatpush.msra.mxu1 %v3045_v33  ;;  %v3148_v33 = vld [vmem:[#allocation13 + $0x538] sm:$0xff] }
 0x4d4   : > { %3347 = vmatpush.msrb.mxu1 %v3106_v38  ;;  %v3144_v38 = vld [vmem:[#allocation13 + $0x518] sm:$0xff] }
 0x4d6   : > { %3348 = vmatpush.msrb.mxu1 %v3102_v24  ;;  %v3140_v24 = vld [vmem:[#allocation13 + $0x4f8] sm:$0xff] }
 0x4df   : > { %v3952_v5 = vpop.permute.xlu2 %3951 }
 0x4e0   : > { %v3954_v3 = vunpack.i.h.bf16 %v3952_v5  ;;  %v3953_v6 = vunpack.i.l.bf16 %v3952_v5  ;;  %v3115_v5 = vld [vmem:[#allocation13 + $0x430] sm:$0xff] }
 0x4e2   : > { %v4908_v15 = vsel %vm2351_vm0, %v2423_v57, %v3954_v3  ;;  %v4911_v42 = vsel %vm2351_vm0, %v2727_v8, %v3953_v6  ;;  %v3098_v57 = vld [vmem:[#allocation13 + $0x3a8] sm:$0xff]  ;;  %v3044_v8 = vld [vmem:[#allocation13 + $0x1f8] sm:$0xff] }
 0x4e3   : > { %3263 = vmatmul.f32.vlgmr.msra.gmra.mxu0 %v4908_v15  ;;  %3303 = vmatmul.f32.vlgmr.msra.gmra.mxu2 %v4911_v42  ;;  %v3078_v3 = vld [vmem:[#allocation13 + $0x308] sm:$0xff] }
 0x4e4   : > { %3407 = vmatpush.msra.mxu0 %v3043_v44  ;;  %3447 = vmatpush.msra.mxu2 %v3171_v14  ;;  %v3206_v6 = vld [vmem:[#allocation13 + $0x708] sm:$0xff]  ;;  %v3172_v44 = vld [vmem:[#allocation13 + $0x5f8] sm:$0xff] }
 0x4e5   : > { %3349 = vmatpush.msrb.mxu1 %v3098_v57  ;;  %3394 = vmatpush.msrb.mxu3 %v3206_v6  ;;  %v3074_v14 = vld [vmem:[#allocation13 + $0x2e8] sm:$0xff]  ;;  %v3132_v57 = vld [vmem:[#allocation13 + $0x4b8] sm:$0xff]  ;;  %v3095_v6 = vld [vmem:[#allocation13 + $0x390] sm:$0xff] }
 0x4e6   : > { %3408 = vmatpush.msra.mxu0 %v3039_v55  ;;  %3448 = vmatpush.msra.mxu2 %v3167_v21  ;;  %v3168_v55 = vld [vmem:[#allocation13 + $0x5d8] sm:$0xff]  ;;  %v3070_v21 = vld [vmem:[#allocation13 + $0x2c8] sm:$0xff] }
 0x4e7   : > { %3350 = vmatpush.msrb.mxu1 %v3094_v54  ;;  %3395 = vmatpush.msrb.mxu3 %v3202_v18  ;;  %v3124_v54 = vld [vmem:[#allocation13 + $0x478] sm:$0xff]  ;;  %v3211_v18 = vld [vmem:[#allocation13 + $0x730] sm:$0xff] }
 0x4e8   : > { %3409 = vmatpush.msra.mxu0 %v3035_v37  ;;  %3449 = vmatpush.msra.mxu2 %v3163_v17  ;;  %v3164_v37 = vld [vmem:[#allocation13 + $0x5b8] sm:$0xff]  ;;  %v3066_v17 = vld [vmem:[#allocation13 + $0x2a8] sm:$0xff] }
 0x4e9   : > { %3351 = vmatpush.msrb.mxu1 %v3090_v29  ;;  %3396 = vmatpush.msrb.mxu3 %v3198_v13  ;;  %v3116_v29 = vld [vmem:[#allocation13 + $0x438] sm:$0xff]  ;;  %v3203_v13 = vld [vmem:[#allocation13 + $0x6f0] sm:$0xff] }
 0x4ea   : > { %3410 = vmatpush.msra.mxu0 %v3031_v16  ;;  %3450 = vmatpush.msra.mxu2 %v3159_v49  ;;  %v3160_v16 = vld [vmem:[#allocation13 + $0x598] sm:$0xff]  ;;  %v3062_v49 = vld [vmem:[#allocation13 + $0x288] sm:$0xff] }
 0x4eb   : > { %3343 = vmatmul.f32.vlgmr.msrb.gmra.mxu0 %v4908_v15  ;;  %3383 = vmatmul.f32.vlgmr.msrb.gmra.mxu2 %v4911_v42 }
 0x4ec   : > { %3411 = vmatpush.msra.mxu0 %v3027_v23  ;;  %3451 = vmatpush.msra.mxu2 %v3155_v25  ;;  %v3190_v23 = vld [vmem:[#allocation13 + $0x688] sm:$0xff]  ;;  %v3028_v25 = vld [vmem:[#allocation13 + $0x178] sm:$0xff] }
 0x4ed   : > { %3352 = vmatpush.msrb.mxu1 %v3086_v56  ;;  %3397 = vmatpush.msrb.mxu3 %v3194_v19  ;;  %v3195_v19 = vld [vmem:[#allocation13 + $0x6b0] sm:$0xff] }
 0x4ee   : > { %3412 = vmatpush.msra.mxu0 %v3023_v4  ;;  %3452 = vmatpush.msra.mxu2 %v3151_v28  ;;  %v3186_v4 = vld [vmem:[#allocation13 + $0x668] sm:$0xff]  ;;  %v3024_v28 = vld [vmem:[#allocation13 + $0x158] sm:$0xff] }
 0x4ef   : > { %3353 = vmatpush.msrb.mxu1 %v3082_v1  ;;  %3398 = vmatpush.msrb.mxu3 %v3190_v23  ;;  %v3235_v1 = vld [vmem:[#allocation13 + $0x7f0] sm:$0xff] }
 0x4f0   : > { %3413 = vmatpush.msra.mxu0 %v3019_v26  ;;  %3453 = vmatpush.msra.mxu2 %v3147_v46  ;;  %v3182_v26 = vld [vmem:[#allocation13 + $0x648] sm:$0xff]  ;;  %v3020_v46 = vld [vmem:[#allocation13 + $0x138] sm:$0xff]  ;;  %v3187_v23 = vld [vmem:[#allocation13 + $0x670] sm:$0xff] }
 0x4f1   : > { %3354 = vmatpush.msrb.mxu1 %v3078_v3  ;;  %3399 = vmatpush.msrb.mxu3 %v3186_v4  ;;  %v3227_v3 = vld [vmem:[#allocation13 + $0x7b0] sm:$0xff] }
 0x4f2   : > { %3414 = vmatpush.msra.mxu0 %v3015_v59  ;;  %3454 = vmatpush.msra.mxu2 %v3143_v58  ;;  %v3178_v59 = vld [vmem:[#allocation13 + $0x628] sm:$0xff]  ;;  %v3016_v58 = vld [vmem:[#allocation13 + $0x118] sm:$0xff]  ;;  %v3179_v4 = vld [vmem:[#allocation13 + $0x630] sm:$0xff] }
 0x4f3   : > { %3355 = vmatpush.msrb.mxu1 %v3074_v14  ;;  %3400 = vmatpush.msrb.mxu3 %v3182_v26  ;;  %v3083_v14 = vld [vmem:[#allocation13 + $0x330] sm:$0xff]  ;;  %v3236_v26 = vld [vmem:[#allocation13 + $0x7f8] sm:$0xff] }
 0x4f4   : > { %3415 = vmatpush.msra.mxu0 %v3011_v34  ;;  %3455 = vmatpush.msra.mxu2 %v3139_v39  ;;  %v3174_v34 = vld [vmem:[#allocation13 + $0x608] sm:$0xff]  ;;  %v3012_v39 = vld [vmem:[#allocation13 + $0xf8] sm:$0xff] }
 0x4f5   : > { %3356 = vmatpush.msrb.mxu1 %v3070_v21  ;;  %3401 = vmatpush.msrb.mxu3 %v3178_v59  ;;  %v3075_v21 = vld [vmem:[#allocation13 + $0x2f0] sm:$0xff]  ;;  %v3228_v59 = vld [vmem:[#allocation13 + $0x7b8] sm:$0xff] }
 0x4f6   : > { %3416 = vmatpush.msra.mxu0 %v3007_v36  ;;  %3456 = vmatpush.msra.mxu2 %v3135_v41  ;;  %v3136_v36 = vld [vmem:[#allocation13 + $0x4d8] sm:$0xff] }
 0x4f7   : > { %3357 = vmatpush.msrb.mxu1 %v3066_v17  ;;  %3402 = vmatpush.msrb.mxu3 %v3174_v34  ;;  %v3004_v41 = vld [vmem:[#allocation13 + $0xb8] sm:$0xff]  ;;  %v3067_v17 = vld [vmem:[#allocation13 + $0x2b0] sm:$0xff] }
 0x4f8   : > { %3417 = vmatpush.msra.mxu0 %v3003_v45  ;;  %3457 = vmatpush.msra.mxu2 %v3131_v47  ;;  %v3128_v45 = vld [vmem:[#allocation13 + $0x498] sm:$0xff] }
 0x4f9   : > { %3358 = vmatpush.msrb.mxu1 %v3062_v49  ;;  %v2996_v47 = vld [vmem:[#allocation13 + $0x78] sm:$0xff]  ;;  %v3059_v49 = vld [vmem:[#allocation13 + $0x270] sm:$0xff] }
 0x4fa   : > { %3418 = vmatpush.msra.mxu0 %v2999_v48  ;;  %3458 = vmatpush.msra.mxu2 %v3127_v50  ;;  %v3120_v48 = vld [vmem:[#allocation13 + $0x458] sm:$0xff] }
 0x4fb   : > { %3359 = vmatpush.msrb.mxu1 %v3058_v62  ;;  %v2988_v50 = vld [vmem:[#allocation13 + $0x38] sm:$0xff]  ;;  %v3051_v62 = vld [vmem:[#allocation13 + $0x230] sm:$0xff] }
 0x4fc   : > { %3419 = vmatpush.msra.mxu0 %v2995_v52  ;;  %3459 = vmatpush.msra.mxu2 %v3123_v30  ;;  %v3112_v52 = vld [vmem:[#allocation13 + $0x418] sm:$0xff] }
 0x4fd   : > { %3360 = vmatpush.msrb.mxu1 %v3054_v31  ;;  %v3108_v31 = vld [vmem:[#allocation13 + $0x3f8] sm:$0xff] }
 0x4fe   : > { %3420 = vmatpush.msra.mxu0 %v2991_v0  ;;  %3460 = vmatpush.msra.mxu2 %v3119_v60  ;;  %v2879_v0 = vpop.f32.mrf.mxu1  ;;  %v3107_v60 = vld [vmem:[#allocation13 + $0x3f0] sm:$0xff]  ;;  %v3220_v34 = vld [vmem:[#allocation13 + $0x778] sm:$0xff] }
 0x4ff   : > { %3361 = vmatpush.msrb.mxu1 %v3050_v35  ;;  %v3100_v35 = vld [vmem:[#allocation13 + $0x3b8] sm:$0xff] }
 0x500   : > { %3421 = vmatpush.msra.mxu0 %v2987_v12  ;;  %3461 = vmatpush.msra.mxu2 %v3115_v5  ;;  %v3231_v5 = vld [vmem:[#allocation13 + $0x7d0] sm:$0xff] }
 0x501   : > { %3362 = vmatpush.msrb.mxu1 %v3046_v61  ;;  %v3092_v61 = vld [vmem:[#allocation13 + $0x378] sm:$0xff] }
 0x502   : > { %3422 = vmatpush.msra.mxu0 %v2983_v7  ;;  %3462 = vmatpush.msra.mxu2 %v3111_v20  ;;  %v3223_v7 = vld [vmem:[#allocation13 + $0x790] sm:$0xff] }
 0x503   : > { %3423 = vmatmul.f32.vlgmr.msra.gmra.mxu0 %v4908_v15  ;;  %3463 = vmatmul.f32.vlgmr.msra.gmra.mxu2 %v4911_v42  ;;  %v3219_v20 = vld [vmem:[#allocation13 + $0x770] sm:$0xff] }
 0x504   : > { %3487 = vmatpush.msrb.mxu0 %v3044_v8  ;;  %3527 = vmatpush.msrb.mxu2 %v3172_v44  ;;  %v3087_v8 = vld [vmem:[#allocation13 + $0x350] sm:$0xff] }
 0x505   : > { %v3215_v44 = vld [vmem:[#allocation13 + $0x750] sm:$0xff] }
 0x506   : > { %3488 = vmatpush.msrb.mxu0 %v3040_v10  ;;  %3528 = vmatpush.msrb.mxu2 %v3168_v55  ;;  %v3079_v10 = vld [vmem:[#allocation13 + $0x310] sm:$0xff] }
 0x507   : > { %v3207_v55 = vld [vmem:[#allocation13 + $0x710] sm:$0xff] }
 0x508   : > { %3489 = vmatpush.msrb.mxu0 %v3036_v9  ;;  %3529 = vmatpush.msrb.mxu2 %v3164_v37  ;;  %v3071_v9 = vld [vmem:[#allocation13 + $0x2d0] sm:$0xff] }
 0x509   : > { %v3199_v37 = vld [vmem:[#allocation13 + $0x6d0] sm:$0xff] }
 0x50a   : > { %3490 = vmatpush.msrb.mxu0 %v3032_v22  ;;  %3530 = vmatpush.msrb.mxu2 %v3160_v16  ;;  %v3063_v22 = vld [vmem:[#allocation13 + $0x290] sm:$0xff] }
 0x50b   : > { %v3191_v16 = vld [vmem:[#allocation13 + $0x690] sm:$0xff] }
 0x50c   : > { %3491 = vmatpush.msrb.mxu0 %v3028_v25  ;;  %3531 = vmatpush.msrb.mxu2 %v3156_v27  ;;  %v3055_v25 = vld [vmem:[#allocation13 + $0x250] sm:$0xff] }
 0x50d   : > { %v3183_v27 = vld [vmem:[#allocation13 + $0x650] sm:$0xff] }
 0x50e   : > { %3492 = vmatpush.msrb.mxu0 %v3024_v28  ;;  %3532 = vmatpush.msrb.mxu2 %v3152_v11  ;;  %v3047_v28 = vld [vmem:[#allocation13 + $0x210] sm:$0xff] }
 0x50f   : > { %v3175_v11 = vld [vmem:[#allocation13 + $0x610] sm:$0xff] }
 0x510   : > { %3493 = vmatpush.msrb.mxu0 %v3020_v46  ;;  %3533 = vmatpush.msrb.mxu2 %v3148_v33  ;;  %v3104_v46 = vld [vmem:[#allocation13 + $0x3d8] sm:$0xff] }
 0x511   : > { %v3232_v33 = vld [vmem:[#allocation13 + $0x7d8] sm:$0xff] }
 0x512   : > { %3494 = vmatpush.msrb.mxu0 %v3016_v58  ;;  %3534 = vmatpush.msrb.mxu2 %v3144_v38  ;;  %v3096_v58 = vld [vmem:[#allocation13 + $0x398] sm:$0xff] }
 0x513   : > { %v3224_v38 = vld [vmem:[#allocation13 + $0x798] sm:$0xff] }
 0x514   : > { %3495 = vmatpush.msrb.mxu0 %v3012_v39  ;;  %3535 = vmatpush.msrb.mxu2 %v3140_v24  ;;  %v3088_v39 = vld [vmem:[#allocation13 + $0x358] sm:$0xff] }
 0x515   : > { %v3216_v24 = vld [vmem:[#allocation13 + $0x758] sm:$0xff] }
 0x516   : > { %3496 = vmatpush.msrb.mxu0 %v3008_v40  ;;  %3536 = vmatpush.msrb.mxu2 %v3136_v36  ;;  %v3084_v40 = vld [vmem:[#allocation13 + $0x338] sm:$0xff] }
 0x517   : > { %v3212_v36 = vld [vmem:[#allocation13 + $0x738] sm:$0xff] }
 0x518   : > { %3497 = vmatpush.msrb.mxu0 %v3004_v41  ;;  %3537 = vmatpush.msrb.mxu2 %v3132_v57  ;;  %v3080_v41 = vld [vmem:[#allocation13 + $0x318] sm:$0xff] }
 0x519   : > { %v3208_v57 = vld [vmem:[#allocation13 + $0x718] sm:$0xff] }
 0x51a   : > { %3498 = vmatpush.msrb.mxu0 %v3000_v43  ;;  %3538 = vmatpush.msrb.mxu2 %v3128_v45  ;;  %v3076_v43 = vld [vmem:[#allocation13 + $0x2f8] sm:$0xff] }
 0x51b   : > { %v3204_v45 = vld [vmem:[#allocation13 + $0x6f8] sm:$0xff] }
 0x51c   : > { %3499 = vmatpush.msrb.mxu0 %v2996_v47  ;;  %3539 = vmatpush.msrb.mxu2 %v3124_v54  ;;  %v3072_v47 = vld [vmem:[#allocation13 + $0x2d8] sm:$0xff] }
 0x51d   : > { %v3200_v54 = vld [vmem:[#allocation13 + $0x6d8] sm:$0xff] }
 0x51e   : > { %3500 = vmatpush.msrb.mxu0 %v2992_v32  ;;  %3540 = vmatpush.msrb.mxu2 %v3120_v48  ;;  %v3068_v32 = vld [vmem:[#allocation13 + $0x2b8] sm:$0xff] }
 0x51f   : > { %v3196_v48 = vld [vmem:[#allocation13 + $0x6b8] sm:$0xff] }
 0x520   : > { %3501 = vmatpush.msrb.mxu0 %v2988_v50  ;;  %3541 = vmatpush.msrb.mxu2 %v3116_v29  ;;  %v3064_v50 = vld [vmem:[#allocation13 + $0x298] sm:$0xff] }
 0x521   : > { %v3192_v29 = vld [vmem:[#allocation13 + $0x698] sm:$0xff] }
 0x522   : > { %3502 = vmatpush.msrb.mxu0 %v2984_v51  ;;  %3542 = vmatpush.msrb.mxu2 %v3112_v52  ;;  %v3060_v51 = vld [vmem:[#allocation13 + $0x278] sm:$0xff] }
 0x523   : > { %3503 = vmatmul.f32.vlgmr.msrb.gmra.mxu0 %v4908_v15  ;;  %3543 = vmatmul.f32.vlgmr.msrb.gmra.mxu2 %v4911_v42  ;;  %v3103_v15 = vld [vmem:[#allocation13 + $0x3d0] sm:$0xff]  ;;  %v3188_v52 = vld [vmem:[#allocation13 + $0x678] sm:$0xff] }
 0x524   : > { %v3099_v42 = vld [vmem:[#allocation13 + $0x3b0] sm:$0xff] }
 0x52f   : > { %v3957_v30 = vpop.permute.xlu1 %3956 }
 0x530   : > { %v3959_v56 = vunpack.i.h.bf16 %v3957_v30  ;;  %v3958_v63 = vunpack.i.l.bf16 %v3957_v30  ;;  %v3056_v30 = vld [vmem:[#allocation13 + $0x258] sm:$0xff] }
 0x532   : > { %v4923_v2 = vsel %vm2351_vm0, %v4905_v53, %v3959_v56  ;;  %v4926_v12 = vsel %vm2351_vm0, %v2879_v0, %v3958_v63  ;;  %v3091_v53 = vld [vmem:[#allocation13 + $0x370] sm:$0xff]  ;;  %v3184_v56 = vld [vmem:[#allocation13 + $0x658] sm:$0xff] }
 0x533   : > { %3283 = vmatmul.f32.vlgmr.msra.gmra.mxu1 %v4923_v2  ;;  %3323 = vmatmul.f32.vlgmr.msra.gmra.mxu3 %v4926_v12  ;;  %v3052_v63 = vld [vmem:[#allocation13 + $0x238] sm:$0xff] }
 0x534   : > { %3427 = vmatpush.msra.mxu1 %v3107_v60  ;;  %3467 = vmatpush.msra.mxu3 %v3235_v1  ;;  %v3180_v0 = vld [vmem:[#allocation13 + $0x638] sm:$0xff] }
 0x535   : > { %v3048_v60 = vld [vmem:[#allocation13 + $0x218] sm:$0xff] }
 0x536   : > { %3428 = vmatpush.msra.mxu1 %v3103_v15  ;;  %3468 = vmatpush.msra.mxu3 %v3231_v5  ;;  %v3176_v1 = vld [vmem:[#allocation13 + $0x618] sm:$0xff]  ;;  %v3237_v15 = vld [vmem:[#allocation16] sm:$0xf] }
 0x538   : > { %3429 = vmatpush.msra.mxu1 %v3099_v42  ;;  %3469 = vmatpush.msra.mxu3 %v3227_v3  ;;  %v3239_v42 = vperm.slane %v3237_v15, 0 }
 0x53a   : > { %3430 = vmatpush.msra.mxu1 %v3095_v6  ;;  %3470 = vmatpush.msra.mxu3 %v3223_v7 }
 0x53b   : > { %3363 = vmatmul.f32.vlgmr.msrb.gmra.mxu1 %v4923_v2  ;;  %3403 = vmatmul.f32.vlgmr.msrb.gmra.mxu3 %v4926_v12 }
 0x53c   : > { %3431 = vmatpush.msra.mxu1 %v3091_v53  ;;  %3471 = vmatpush.msra.mxu3 %v3219_v20  ;;  %v3240_v20 = vperm.slane %v3237_v15, 1 }
 0x53e   : > { %3432 = vmatpush.msra.mxu1 %v3087_v8  ;;  %3472 = vmatpush.msra.mxu3 %v3215_v44 }
 0x540   : > { %3433 = vmatpush.msra.mxu1 %v3083_v14  ;;  %3473 = vmatpush.msra.mxu3 %v3211_v18 }
 0x542   : > { %3434 = vmatpush.msra.mxu1 %v3079_v10  ;;  %3474 = vmatpush.msra.mxu3 %v3207_v55 }
 0x544   : > { %3435 = vmatpush.msra.mxu1 %v3075_v21  ;;  %3475 = vmatpush.msra.mxu3 %v3203_v13 }
 0x546   : > { %3436 = vmatpush.msra.mxu1 %v3071_v9  ;;  %3476 = vmatpush.msra.mxu3 %v3199_v37  ;;  %v3241_v37 = vperm.slane %v3237_v15, 2 }
 0x548   : > { %3437 = vmatpush.msra.mxu1 %v3067_v17  ;;  %3477 = vmatpush.msra.mxu3 %v3195_v19 }
 0x54a   : > { %3438 = vmatpush.msra.mxu1 %v3063_v22  ;;  %3478 = vmatpush.msra.mxu3 %v3191_v16 }
 0x54c   : > { %3439 = vmatpush.msra.mxu1 %v3059_v49  ;;  %3479 = vmatpush.msra.mxu3 %v3187_v23 }
 0x54e   : > { %3440 = vmatpush.msra.mxu1 %v3055_v25  ;;  %3480 = vmatpush.msra.mxu3 %v3183_v27 }
 0x550   : > { %3441 = vmatpush.msra.mxu1 %v3051_v62  ;;  %3481 = vmatpush.msra.mxu3 %v3179_v4  ;;  %v3242_v62 = vperm.slane %v3237_v15, 3 }
 0x552   : > { %3442 = vmatpush.msra.mxu1 %v3047_v28  ;;  %3482 = vmatpush.msra.mxu3 %v3175_v11 }
 0x553   : > { %3443 = vmatmul.f32.vlgmr.msra.gmra.mxu1 %v4923_v2  ;;  %3483 = vmatmul.f32.vlgmr.msra.gmra.mxu3 %v4926_v12 }
 0x554   : > { %3507 = vmatpush.msrb.mxu1 %v3108_v31  ;;  %3547 = vmatpush.msrb.mxu3 %v3236_v26 }
 0x556   : > { %3508 = vmatpush.msrb.mxu1 %v3104_v46  ;;  %3548 = vmatpush.msrb.mxu3 %v3232_v33 }
 0x558   : > { %3509 = vmatpush.msrb.mxu1 %v3100_v35  ;;  %3549 = vmatpush.msrb.mxu3 %v3228_v59 }
 0x55a   : > { %3510 = vmatpush.msrb.mxu1 %v3096_v58  ;;  %3550 = vmatpush.msrb.mxu3 %v3224_v38 }
 0x55c   : > { %3511 = vmatpush.msrb.mxu1 %v3092_v61  ;;  %3551 = vmatpush.msrb.mxu3 %v3220_v34 }
 0x55e   : > { %3512 = vmatpush.msrb.mxu1 %v3088_v39  ;;  %3552 = vmatpush.msrb.mxu3 %v3216_v24 }
 0x560   : > { %3513 = vmatpush.msrb.mxu1 %v3084_v40  ;;  %3553 = vmatpush.msrb.mxu3 %v3212_v36  ;;  %v3264_v5 = vpop.f32.mrf.mxu0 }
 0x561   : > { %v3265_v3 = vadd.f32 %v3264_v5, %v3239_v42 }
 0x562   : > { %3514 = vmatpush.msrb.mxu1 %v3080_v41  ;;  %3554 = vmatpush.msrb.mxu3 %v3208_v57 }
 0x564   : > { %3515 = vmatpush.msrb.mxu1 %v3076_v43  ;;  %3555 = vmatpush.msrb.mxu3 %v3204_v45 }
 0x566   : > { %3516 = vmatpush.msrb.mxu1 %v3072_v47  ;;  %3556 = vmatpush.msrb.mxu3 %v3200_v54  ;;  %v3304_v53 = vpop.f32.mrf.mxu2 }
 0x568   : > { %3517 = vmatpush.msrb.mxu1 %v3068_v32  ;;  %3557 = vmatpush.msrb.mxu3 %v3196_v48  ;;  %v3344_v8 = vpop.f32.mrf.mxu0 }
 0x569   : > { %v3345_v18 = vadd.f32 %v3344_v8, %v3240_v20 }
 0x56a   : > { %3518 = vmatpush.msrb.mxu1 %v3064_v50  ;;  %3558 = vmatpush.msrb.mxu3 %v3192_v29 }
 0x56c   : > { %3519 = vmatpush.msrb.mxu1 %v3060_v51  ;;  %3559 = vmatpush.msrb.mxu3 %v3188_v52 }
 0x56e   : > { %3520 = vmatpush.msrb.mxu1 %v3056_v30  ;;  %3560 = vmatpush.msrb.mxu3 %v3184_v56 }
 0x570   : > { %3521 = vmatpush.msrb.mxu1 %v3052_v63  ;;  %3561 = vmatpush.msrb.mxu3 %v3180_v0 }
 0x572   : > { %3522 = vmatpush.msrb.mxu1 %v3048_v60  ;;  %3562 = vmatpush.msrb.mxu3 %v3176_v1 }
 0x573   : > { %3523 = vmatmul.f32.vlgmr.msrb.gmra.mxu1 %v4923_v2  ;;  %3563 = vmatmul.f32.vlgmr.msrb.gmra.mxu3 %v4926_v12  ;;  %v3384_v12 = vpop.f32.mrf.mxu2 }
 0x580   : > { %v3424_v17 = vpop.f32.mrf.mxu0 }
 0x581   : > { %v3425_v19 = vadd.f32 %v3424_v17, %v3241_v37 }
 0x586   : > { %v3464_v49 = vpop.f32.mrf.mxu2 }
 0x5a0   : > { %v3504_v4 = vpop.f32.mrf.mxu0 }
 0x5a1   : > { %v3505_v28 = vadd.f32 %v3504_v4, %v3242_v62 }
 0x5a6   : > { %v3544_v26 = vpop.f32.mrf.mxu2 }
 0x5b0   : > { %v3284_v6 = vpop.f32.mrf.mxu1 }
 0x5b1   : > { %v3285_v7 = vadd.f32 %v3284_v6, %v3265_v3 }
 0x5b3   : > { %v3305_v44 = vadd.f32 %v3304_v53, %v3285_v7 }
 0x5b6   : > { %v3324_v14 = vpop.f32.mrf.mxu3 }
 0x5b7   : > { %v3325_v10 = vadd.f32 %v3324_v14, %v3305_v44 }
 0x5b8   : > { %v3364_v55 = vpop.f32.mrf.mxu1 }
 0x5b9   : > { %3567 = vst [vmem:[%s4937_s28] sm:$0xff] %v3325_v10  ;;  %v3365_v2 = vadd.f32 %v3364_v55, %v3345_v18 }
 0x5bb   : > { %v3385_v21 = vadd.f32 %v3384_v12, %v3365_v2 }
 0x5be   : > { %v3404_v13 = vpop.f32.mrf.mxu3 }
 0x5bf   : > { %v3405_v9 = vadd.f32 %v3404_v13, %v3385_v21 }
 0x5c1   : > { %3568 = vst [vmem:[%s4937_s28 + $0x8] sm:$0xff] %v3405_v9 }
 0x5d0   : > { %v3444_v22 = vpop.f32.mrf.mxu1 }
 0x5d1   : > { %v3445_v16 = vadd.f32 %v3444_v22, %v3425_v19 }
 0x5d3   : > { %v3465_v23 = vadd.f32 %v3464_v49, %v3445_v16 }
 0x5d6   : > { %v3484_v25 = vpop.f32.mrf.mxu3 }
 0x5d7   : > { %v3485_v27 = vadd.f32 %v3484_v25, %v3465_v23 }
 0x5d9   : > { %3569 = vst [vmem:[%s4937_s28 + $0x10] sm:$0xff] %v3485_v27 }
 0x5f0   : > { %v3524_v11 = vpop.f32.mrf.mxu1 }
 0x5f1   : > { %v3525_v31 = vadd.f32 %v3524_v11, %v3505_v28 }
 0x5f3   : > { %v3545_v46 = vadd.f32 %v3544_v26, %v3525_v31 }
 0x5f6   : > { %v3564_v33 = vpop.f32.mrf.mxu3 }
 0x5f7   : > { %v3565_v35 = vadd.f32 %v3564_v33, %v3545_v46 }
 0x5f9   : > { %3570 = vst [vmem:[%s4937_s28 + $0x18] sm:$0xff] %v3565_v35 }
 0x5fa   : > { %4289 = shalt.err (!%p4286_p3)
}
 0x5fb   : > { %3850 = dma.vmem_to_hbm [thread:$0]  (%p4497_p0), %s3586_s4, 512, %s3588_s22, %s3572_s30  }
 0x5fc PF: > { %s5039_s29 = sld [smem:[#allocation24_spill]] }
 0x5fd   : > { %s5041_s15 = sld [smem:[#allocation25_spill]] }
 0x602   : > { %s3599_s26 = sand.u32 1, %s5039_s29  }
 0x603   : > { %p5042_p8 = scmp.ge.s32.totalorder %s5041_s15, 2  ;;  %s3600_s1 = scalar_lea.sflag [#allocation4], %s3599_s26 }
 0x605   : > { %p3882_p9 = pnand %p5042_p8, %p4503_p5 }
 0x607   : > { %p3883_p2 = pneg %p3882_p9 }
 0x609   : > { %4327 = dma.done.wait (%p3883_p2), %s3600_s1, 512  }
 0x60a   : > { %4329 = vsyncadd (%p3883_p2), %s3600_s1, 4294966784  ;;  %s5043_s20 = sld [smem:[#allocation26_spill]]  ;;  %s5045_s17 = smov %s4336_s18 }
 0x60b   : > { %s5044_s14 = sld [smem:[#allocation27_spill]]  ;;  %s5046_s18 = smov %s4340_s19 }
 0x610   : > { %p30_p4 = scmp.ge.s32.totalorder %s5043_s20, 4  }
 0x611   : > { %s5047_s19 = smov %s5044_s14 }
 0x612   :  { %32 = sbr.rel (!%p30_p4) target bundleno = 18 (0x12), region = 157 }
 0x617   :  { %3606 = vsyncpa [#allocation3], 1 }
 0x618   :  { %3608 = vsyncpa [#allocation3 + $0x1], 1 }
 0x619   :  { %3609 = vsyncpa [#allocation6], 1 }
 0x61a   :  { %3611 = vsyncpa [#allocation6 + $0x1], 1 }
 0x61b   :  { %3612 = vsyncpa [#allocation9], 1 }
 0x61c   :  { %3613 = vsyncpa [#allocation12], 1 }
 0x61d   :  { %3614 = vsyncpa [#allocation15], 1 }
 0x61e   :  { %3615 = vsyncpa [#allocation4], 1 }
 0x61f   :  { %3617 = vsyncpa [#allocation4 + $0x1], 1 }

</bundles_post_ra>
